<compile_context>
chip_gen: v5e
topology: v5e:2x2
jax: 0.10.0
libtpu: 0.0.40
codegen_flags: <defaults>
</compile_context>

<pallas_src>
import functools

import numpy as np
import jax
import jax.numpy as jnp
from jax import lax
from jax.experimental import pallas as pl
from jax.experimental.pallas import tpu as pltpu

EPS = 1e-5                       # BatchNorm2d default eps
LANES = 128                      # channel padding target (TPU lane width)
VMEM_LIMIT = 48 * 1024 * 1024    # <= 64 MiB v7x physical VMEM, roomy on v5e/v6e


def _round_up(a, b):
    return (a + b - 1) // b * b


def _choose_m_tile(m, max_tile):
    """Largest multiple-of-8 divisor of m that is <= max_tile; else pad m."""
    best = None
    for t in range(8, min(m, max_tile) + 1, 8):
        if m % t == 0:
            best = t
    if best is not None:
        return best, m
    tile = min(max_tile, _round_up(m, 8))
    return tile, _round_up(m, tile)


def _choose_row_tile(n, max_tile=64):
    """Row tile for the interpolation kernels (divides n; multiple of 8 if < n)."""
    if n <= max_tile:
        return n
    best = n
    for t in range(8, max_tile + 1, 8):
        if n % t == 0:
            best = t
    return best


# ----------------------------- Pallas kernels ------------------------------

def matmul_bn_relu_kernel(x_ref, w_ref, scale_ref, shift_ref, o_ref):
    # ConvBlock as matmul: x (TM, Kp) bf16 patches, w (Kp, Cp) bf16,
    # scale/shift (1, Cp) f32 folded BN.  Output bf16.
    y = jnp.dot(x_ref[...], w_ref[...], preferred_element_type=jnp.float32)
    y = y * scale_ref[...] + shift_ref[...]
    o_ref[...] = jnp.maximum(y, 0.0).astype(o_ref.dtype)


def h_interp_kernel(ah_ref, x_ref, o_ref):
    # Row (H) interpolation: (TH, Hi) @ (Hi, Wi*Cp) -> (TH, Wi*Cp), bf16 out.
    y = jnp.dot(ah_ref[...], x_ref[0], preferred_element_type=jnp.float32)
    o_ref[0] = y.astype(o_ref.dtype)


def w_interp_add_kernel(aw_ref, zh_ref, add_ref, o_ref):
    # Column (W) interpolation fused with the pyramid "+ add".
    # aw: (Wo, Wi) bf16, zh: (1, TR, Wi, Cp) bf16, add/o: (1, TR, Wo, Cp) bf16.
    zh = zh_ref[0]
    tr = zh.shape[0]
    wo, wi = aw_ref.shape
    awb = jnp.broadcast_to(aw_ref[...], (tr, wo, wi))
    y = lax.dot_general(awb, zh, (((2,), (1,)), ((0,), (0,))),
                        preferred_element_type=jnp.float32)      # (TR, Wo, Cp)
    o_ref[0] = (y + add_ref[0].astype(jnp.float32)).astype(o_ref.dtype)


def w_interp_merge_kernel(aw_ref, zh_ref, l4_ref, l5_ref, o_ref):
    # out = W-interp(zh) * level4 + level5 (level5 broadcast in-kernel).
    zh = zh_ref[0]
    tr = zh.shape[0]
    wo, wi = aw_ref.shape
    awb = jnp.broadcast_to(aw_ref[...], (tr, wo, wi))
    y = lax.dot_general(awb, zh, (((2,), (1,)), ((0,), (0,))),
                        preferred_element_type=jnp.float32)      # (TR, Wo, Cp)
    out = y * l4_ref[0].astype(jnp.float32) + l5_ref[...].astype(jnp.float32)
    o_ref[0] = out.astype(o_ref.dtype)


def level4_and_pool5_kernel(x_ref, w4_ref, s4_ref, b4_ref,
                            w5_ref, s5_ref, b5_ref,
                            l4_ref, l5_ref, acc_ref, *, inv_hw):
    # Single pass over the full-resolution input: 1x1 level4 ConvBlock on the
    # tile + global-average-pool accumulation; level5 ConvBlock epilogue on
    # the last HW step of each batch element.
    h = pl.program_id(1)

    @pl.when(h == 0)
    def _init():
        acc_ref[...] = jnp.zeros_like(acc_ref)

    xt = x_ref[0]                                                # (T, Cp) bf16
    y4 = jnp.dot(xt, w4_ref[...], preferred_element_type=jnp.float32)
    y4 = y4 * s4_ref[...] + b4_ref[...]
    l4_ref[0] = jnp.maximum(y4, 0.0).astype(l4_ref.dtype)
    acc_ref[...] += jnp.sum(xt.astype(jnp.float32), axis=0, keepdims=True)

    @pl.when(h == pl.num_programs(1) - 1)
    def _fini():
        xm = acc_ref[...] * inv_hw                               # (1, Cp) f32
        y5 = jnp.dot(xm, w5_ref[...].astype(jnp.float32),
                     preferred_element_type=jnp.float32)
        y5 = y5 * s5_ref[...] + b5_ref[...]
        l5_ref[0] = jnp.maximum(y5, 0.0).astype(l5_ref.dtype)


# ------------------------------- glue helpers ------------------------------

def _im2col(x, k, pad, stride):
    # x: (N, H, W, C_real) -> patches (N*Ho*Wo, k*k*C_real), inner (ky, kx, c).
    N, H, W, C = x.shape
    xp = jnp.pad(x, ((0, 0), (pad, pad), (pad, pad), (0, 0)))
    Ho = (H + 2 * pad - k) // stride + 1
    Wo = (W + 2 * pad - k) // stride + 1
    cols = []
    for dy in range(k):
        for dx in range(k):
            cols.append(xp[:, dy:dy + stride * (Ho - 1) + 1:stride,
                           dx:dx + stride * (Wo - 1) + 1:stride, :])
    patches = jnp.stack(cols, axis=3)                            # (N,Ho,Wo,kk,C)
    return patches.reshape(N * Ho * Wo, k * k * C), Ho, Wo


def bilinear_matrix(s_in, s_out):
    # 1-D interpolation matrix matching F.interpolate(mode='bilinear',
    # align_corners=True) -- as used by APNModule's `scale`.
    A = np.zeros((s_out, s_in), np.float32)
    if s_in == 1 or s_out == 1:
        A[:, 0] = 1.0
        return A
    ratio = (s_in - 1) / (s_out - 1)
    for i in range(s_out):
        src = i * ratio
        i0 = int(np.floor(src))
        i1 = min(i0 + 1, s_in - 1)
        w1 = src - i0
        A[i, i0] += 1.0 - w1
        A[i, i1] += w1
    return A


def prepare_convblock(raw, k, cp):
    # Fold BN into per-channel scale/shift and flatten the conv weight.
    #  k == 1 : weight rows indexed by the (Cp-padded) input channel, Kp = cp.
    #  k  > 1 : weight rows in (ky, kx, cin_real) order, Kp = round_up(k*k*cin, 128).
    w, gamma, beta, mean, var = raw
    cout, cin = w.shape[0], w.shape[1]
    scale_c = gamma / jnp.sqrt(var + EPS)
    shift_c = beta - mean * scale_c
    if k == 1:
        kp = cp
        w2 = w.reshape(cout, cin).T                              # (cin, cout)
        wk = jnp.zeros((kp, cp), jnp.float32).at[:cin, :cout].set(w2)
    else:
        kk = k * k * cin
        kp = _round_up(kk, LANES)
        w2 = jnp.transpose(w, (2, 3, 1, 0)).reshape(kk, cout)    # (ky,kx,cin) rows
        wk = jnp.zeros((kp, cp), jnp.float32).at[:kk, :cout].set(w2)
    scale = jnp.zeros((1, cp), jnp.float32).at[0, :cout].set(scale_c)
    shift = jnp.zeros((1, cp), jnp.float32).at[0, :cout].set(shift_c)
    return wk.astype(jnp.bfloat16), scale, shift


def prepare_params(params, cp):
    ks = {'conv1': 3, 'conv2': 5, 'conv3': 7,
          'level1': 1, 'level2': 1, 'level3': 1, 'level4': 1, 'level5': 1}
    return {name: prepare_convblock(params[name], k, cp) for name, k in ks.items()}


# ------------------------------ pallas wrappers -----------------------------

def conv_block(x, prepared, k, pad, stride, cin_real):
    # ConvBlock = Conv2d(k, pad, stride, bias=False) + BN(eval) + ReLU.
    # x: (N, H, W, C) bf16.  Matmul tiled over the im2col row dimension M.
    N, H, W, C = x.shape
    w_flat, scale, shift = prepared
    Kp, Cp = w_flat.shape
    if k == 1 and pad == 0 and stride == 1:
        patches = x.reshape(N * H * W, C)                        # C == Kp == Cp
        Ho, Wo = H, W
    else:
        patches, Ho, Wo = _im2col(x[..., :cin_real], k, pad, stride)
        kk = k * k * cin_real
        if kk != Kp:
            patches = jnp.pad(patches, ((0, 0), (0, Kp - kk)))   # fused by XLA
    M = patches.shape[0]
    tile_m, Mp = _choose_m_tile(M, 512)
    if Mp != M:
        patches = jnp.pad(patches, ((0, Mp - M), (0, 0)))
    cost = pl.CostEstimate(
        flops=2 * Mp * Kp * Cp, transcendentals=0,
        bytes_accessed=Mp * Kp * 2 + Kp * Cp * 2 + Mp * Cp * 2 + 2 * Cp * 4)
    out = pl.pallas_call(
        matmul_bn_relu_kernel,
        out_shape=jax.ShapeDtypeStruct((Mp, Cp), jnp.bfloat16),
        grid=(Mp // tile_m,),
        in_specs=[pl.BlockSpec((tile_m, Kp), lambda i: (i, 0)),
                  pl.BlockSpec((Kp, Cp), lambda i: (0, 0)),
                  pl.BlockSpec((1, Cp), lambda i: (0, 0)),
                  pl.BlockSpec((1, Cp), lambda i: (0, 0))],
        out_specs=pl.BlockSpec((tile_m, Cp), lambda i: (i, 0)),
        compiler_params=pltpu.CompilerParams(
            dimension_semantics=("parallel",),
            vmem_limit_bytes=VMEM_LIMIT),
        cost_estimate=cost,
    )(patches, w_flat, scale, shift)
    if Mp != M:
        out = out[:M]
    return out.reshape(N, Ho, Wo, Cp)


def _h_interp(x, Ho):
    # H (row) interpolation: x (N, Hi, Wi, Cp) bf16 -> (N, Ho, Wi, Cp) bf16.
    N, Hi, Wi, Cp = x.shape
    ah = jnp.asarray(bilinear_matrix(Hi, Ho), dtype=jnp.bfloat16)   # (Ho, Hi)
    xf = x.reshape(N, Hi, Wi * Cp)
    th = _choose_row_tile(Ho)
    cost = pl.CostEstimate(
        flops=2 * N * Ho * Hi * Wi * Cp, transcendentals=0,
        bytes_accessed=N * (Hi + Ho) * Wi * Cp * 2 + Ho * Hi * 2)
    zh = pl.pallas_call(
        h_interp_kernel,
        out_shape=jax.ShapeDtypeStruct((N, Ho, Wi * Cp), jnp.bfloat16),
        grid=(N, Ho // th),
        in_specs=[pl.BlockSpec((th, Hi), lambda n, r: (r, 0)),
                  pl.BlockSpec((1, Hi, Wi * Cp), lambda n, r: (n, 0, 0))],
        out_specs=pl.BlockSpec((1, th, Wi * Cp), lambda n, r: (n, r, 0)),
        compiler_params=pltpu.CompilerParams(
            dimension_semantics=("parallel", "parallel"),
            vmem_limit_bytes=VMEM_LIMIT),
        cost_estimate=cost,
    )(ah, xf)
    return zh.reshape(N, Ho, Wi, Cp)


def upsample_add(x, add):
    # bilinear x2 upsample of x (align_corners=True) + add.
    # x: (N, Hi, Wi, Cp) bf16, add: (N, Ho, Wo, Cp) bf16 -> (N, Ho, Wo, Cp) bf16.
    N, Hi, Wi, Cp = x.shape
    _, Ho, Wo, _ = add.shape
    zh = _h_interp(x, Ho)                                           # (N,Ho,Wi,Cp)
    aw = jnp.asarray(bilinear_matrix(Wi, Wo), dtype=jnp.bfloat16)   # (Wo, Wi)
    tr = _choose_row_tile(Ho)
    cost = pl.CostEstimate(
        flops=2 * N * Ho * Wo * Wi * Cp, transcendentals=0,
        bytes_accessed=N * Ho * (Wi + 2 * Wo) * Cp * 2 + Wo * Wi * 2)
    out = pl.pallas_call(
        w_interp_add_kernel,
        out_shape=jax.ShapeDtypeStruct((N, Ho, Wo, Cp), jnp.bfloat16),
        grid=(N, Ho // tr),
        in_specs=[pl.BlockSpec((Wo, Wi), lambda n, r: (0, 0)),
                  pl.BlockSpec((1, tr, Wi, Cp), lambda n, r: (n, r, 0, 0)),
                  pl.BlockSpec((1, tr, Wo, Cp), lambda n, r: (n, r, 0, 0))],
        out_specs=pl.BlockSpec((1, tr, Wo, Cp), lambda n, r: (n, r, 0, 0)),
        input_output_aliases={2: 0},                 # write "+ add" in place
        compiler_params=pltpu.CompilerParams(
            dimension_semantics=("parallel", "parallel"),
            vmem_limit_bytes=VMEM_LIMIT),
        cost_estimate=cost,
    )(aw, zh, add)
    return out


def upsample_merge(x, l4, l5):
    # out = upsample(x) * level4(input) + level5(pool(input)), f32 output.
    # x: (N, Hi, Wi, Cp) bf16, l4: (N, Ho, Wo, Cp) bf16, l5: (N, 1, Cp) f32.
    N, Hi, Wi, Cp = x.shape
    _, Ho, Wo, _ = l4.shape
    zh = _h_interp(x, Ho)
    aw = jnp.asarray(bilinear_matrix(Wi, Wo), dtype=jnp.bfloat16)
    tr = _choose_row_tile(Ho)
    cost = pl.CostEstimate(
        flops=2 * N * Ho * Wo * Wi * Cp, transcendentals=0,
        bytes_accessed=N * Ho * (Wi * 2 + Wo * 2 + Wo * 4) * Cp + Wo * Wi * 2)
    out = pl.pallas_call(
        w_interp_merge_kernel,
        out_shape=jax.ShapeDtypeStruct((N, Ho, Wo, Cp), jnp.float32),
        grid=(N, Ho // tr),
        in_specs=[pl.BlockSpec((Wo, Wi), lambda n, r: (0, 0)),
                  pl.BlockSpec((1, tr, Wi, Cp), lambda n, r: (n, r, 0, 0)),
                  pl.BlockSpec((1, tr, Wo, Cp), lambda n, r: (n, r, 0, 0)),
                  pl.BlockSpec((1, 1, Cp), lambda n, r: (n, 0, 0))],
        out_specs=pl.BlockSpec((1, tr, Wo, Cp), lambda n, r: (n, r, 0, 0)),
        compiler_params=pltpu.CompilerParams(
            dimension_semantics=("parallel", "parallel"),
            vmem_limit_bytes=VMEM_LIMIT),
        cost_estimate=cost,
    )(aw, zh, l4, l5)
    return out


def level4_and_pool5(x_pad, prep4, prep5):
    # One streaming pass over the (N, H, W, Cp) bf16 input:
    #   level4 = ConvBlock_1x1(x), level5 = ConvBlock_1x1(adaptive_avg_pool(x, 1)).
    N, H, W, Cp = x_pad.shape
    HW = H * W
    xr = x_pad.reshape(N, HW, Cp)
    w4, s4, b4 = prep4
    w5, s5, b5 = prep5
    tile, HWp = _choose_m_tile(HW, 2048)
    if HWp != HW:
        xr = jnp.pad(xr, ((0, 0), (0, HWp - HW), (0, 0)))        # zeros: sum-safe
    cost = pl.CostEstimate(
        flops=2 * N * HWp * Cp * Cp, transcendentals=0,
        bytes_accessed=N * HWp * Cp * 4 + 2 * Cp * Cp * 2)
    l4, l5 = pl.pallas_call(
        functools.partial(level4_and_pool5_kernel, inv_hw=1.0 / HW),
        out_shape=(jax.ShapeDtypeStruct((N, HWp, Cp), jnp.bfloat16),
                   jax.ShapeDtypeStruct((N, 1, Cp), jnp.float32)),
        grid=(N, HWp // tile),
        in_specs=[pl.BlockSpec((1, tile, Cp), lambda n, h: (n, h, 0)),
                  pl.BlockSpec((Cp, Cp), lambda n, h: (0, 0)),
                  pl.BlockSpec((1, Cp), lambda n, h: (0, 0)),
                  pl.BlockSpec((1, Cp), lambda n, h: (0, 0)),
                  pl.BlockSpec((Cp, Cp), lambda n, h: (0, 0)),
                  pl.BlockSpec((1, Cp), lambda n, h: (0, 0)),
                  pl.BlockSpec((1, Cp), lambda n, h: (0, 0))],
        out_specs=(pl.BlockSpec((1, tile, Cp), lambda n, h: (n, h, 0)),
                   pl.BlockSpec((1, 1, Cp), lambda n, h: (n, 0, 0))),
        scratch_shapes=[pltpu.VMEM((1, Cp), jnp.float32)],
        compiler_params=pltpu.CompilerParams(
            dimension_semantics=("parallel", "arbitrary"),
            vmem_limit_bytes=VMEM_LIMIT),
        cost_estimate=cost,
    )(xr, w4, s4, b4, w5, s5, b5)
    if HWp != HW:
        l4 = l4[:, :HW]
    return l4.reshape(N, H, W, Cp), l5


# ------------------------------- full forward ------------------------------

def apn_forward(x_nchw, prepared, out_channels, cp):
    N, Cin, H, W = x_nchw.shape
    x_nhwc = jnp.transpose(x_nchw, (0, 2, 3, 1)).astype(jnp.bfloat16)  # NHWC, Cin
    x_pad = jnp.pad(x_nhwc, ((0, 0), (0, 0), (0, 0), (0, cp - Cin)))   # lane-pad C

    b3 = conv_block(x_nhwc, prepared['conv1'], 3, 1, 2, Cin)     # (N, H/2, W/2, cp)
    b2 = conv_block(b3, prepared['conv2'], 5, 2, 2, Cin)         # (N, H/4, W/4, cp)
    b1 = conv_block(b2, prepared['conv3'], 7, 3, 2, Cin)         # (N, H/8, W/8, cp)

    b1 = conv_block(b1, prepared['level1'], 1, 0, 1, Cin)
    b2 = conv_block(b2, prepared['level2'], 1, 0, 1, Cin)
    b3 = conv_block(b3, prepared['level3'], 1, 0, 1, Cin)

    l4, l5 = level4_and_pool5(x_pad, prepared['level4'], prepared['level5'])

    t = upsample_add(b1, b2)            # scale(b1) + b2            @ H/4
    t = upsample_add(t, b3)             # scale(.)  + b3            @ H/2
    out = upsample_merge(t, l4, l5)     # scale(.) * level4 + level5 @ H

    out = out[..., :out_channels]
    return jnp.transpose(out, (0, 3, 1, 2))                      # NHWC -> NCHW


# ------------------------------- params / main ------------------------------

def init_convblock_params(key, cin, cout, k):
    kw, kg, kb, km, kv = jax.random.split(key, 5)
    w = 0.1 * jax.random.normal(kw, (cout, cin, k, k), jnp.float32)
    gamma = 1.0 + 0.1 * jax.random.normal(kg, (cout,), jnp.float32)
    beta = 0.1 * jax.random.normal(kb, (cout,), jnp.float32)
    mean = 0.1 * jax.random.normal(km, (cout,), jnp.float32)
    var = 1.0 + 0.1 * jnp.abs(jax.random.normal(kv, (cout,), jnp.float32))
    return (w, gamma, beta, mean, var)


if __name__ == "__main__":
    key = jax.random.PRNGKey(0)
    N, Cin, Cout, H, W = 2, 4, 8, 16, 16
    Cp = _round_up(max(Cin, Cout), LANES)
    keys = jax.random.split(key, 9)
    raw_params = {
        'conv1':  init_convblock_params(keys[0], Cin, Cin, 3),
        'conv2':  init_convblock_params(keys[1], Cin, Cin, 5),
        'conv3':  init_convblock_params(keys[2], Cin, Cin, 7),
        'level1': init_convblock_params(keys[3], Cin, Cout, 1),
        'level2': init_convblock_params(keys[4], Cin, Cout, 1),
        'level3': init_convblock_params(keys[5], Cin, Cout, 1),
        'level4': init_convblock_params(keys[6], Cin, Cout, 1),
        'level5': init_convblock_params(keys[7], Cin, Cout, 1),
    }
    prepared = prepare_params(raw_params, Cp)
    x = jax.random.normal(keys[8], (N, Cin, H, W), jnp.float32)

    fwd = jax.jit(functools.partial(apn_forward, out_channels=Cout, cp=Cp))
    out = jax.block_until_ready(fwd(x, prepared))
    assert out.shape == (N, Cout, H, W), out.shape
    assert bool(jnp.all(jnp.isfinite(out)))
    print("KERNEL_OK")
</pallas_src>

<mosaic_0001>
module attributes {stable_mosaic.version = 11 : i64} {
  func.func @matmul_bn_relu_kernel(%arg0: i32, %arg1: memref<128x128xbf16, #tpu.memory_space<vmem>>, %arg2: memref<128x128xbf16, #tpu.memory_space<vmem>>, %arg3: memref<1x128xf32, #tpu.memory_space<vmem>>, %arg4: memref<1x128xf32, #tpu.memory_space<vmem>>, %arg5: memref<128x128xbf16, #tpu.memory_space<vmem>>) attributes {dimension_semantics = [#tpu.dimension_semantics<parallel>], iteration_bounds = array<i64: 1>, scalar_prefetch = 0 : i64, scratch_operands = 0 : i64, tpu.core_type = #tpu.core_type<tc>, window_params = [{transform_indices = @transform_0, window_bounds = array<i64: 128, 128>}, {pipeline_mode = #tpu.pipeline_mode<synchronous>, transform_indices = @transform_1, window_bounds = array<i64: 128, 128>}, {pipeline_mode = #tpu.pipeline_mode<synchronous>, transform_indices = @transform_2, window_bounds = array<i64: 1, 128>}, {pipeline_mode = #tpu.pipeline_mode<synchronous>, transform_indices = @transform_3, window_bounds = array<i64: 1, 128>}, {transform_indices = @transform_4, window_bounds = array<i64: 128, 128>}]} {
    %c0 = arith.constant 0 : index
    %c0_0 = arith.constant 0 : index
    %0 = vector.load %arg1[%c0, %c0_0] : memref<128x128xbf16, #tpu.memory_space<vmem>>, vector<128x128xbf16>
    %c0_1 = arith.constant 0 : index
    %c0_2 = arith.constant 0 : index
    %1 = vector.load %arg2[%c0_1, %c0_2] : memref<128x128xbf16, #tpu.memory_space<vmem>>, vector<128x128xbf16>
    %cst = arith.constant dense<0.000000e+00> : vector<128x128xf32>
    %2 = tpu.matmul %0, %1, %cst {dimension_numbers = #tpu.dot_dimension_numbers<[1], [0], [0], [1], [0, 0, 1, 1], [], []>} : vector<128x128xbf16>, vector<128x128xbf16>, vector<128x128xf32> -> vector<128x128xf32>
    %c0_3 = arith.constant 0 : index
    %c0_4 = arith.constant 0 : index
    %3 = vector.load %arg3[%c0_3, %c0_4] : memref<1x128xf32, #tpu.memory_space<vmem>>, vector<1x128xf32>
    %4 = vector.broadcast %3 : vector<1x128xf32> to vector<128x128xf32>
    %5 = arith.mulf %2, %4 : vector<128x128xf32>
    %c0_5 = arith.constant 0 : index
    %c0_6 = arith.constant 0 : index
    %6 = vector.load %arg4[%c0_5, %c0_6] : memref<1x128xf32, #tpu.memory_space<vmem>>, vector<1x128xf32>
    %7 = vector.broadcast %6 : vector<1x128xf32> to vector<128x128xf32>
    %8 = arith.addf %5, %7 : vector<128x128xf32>
    %cst_7 = arith.constant 0.000000e+00 : f32
    %9 = vector.broadcast %cst_7 : f32 to vector<128x128xf32>
    %10 = arith.maximumf %8, %9 : vector<128x128xf32>
    %11 = arith.truncf %10 : vector<128x128xf32> to vector<128x128xbf16>
    %c0_8 = arith.constant 0 : index
    %c0_9 = arith.constant 0 : index
    %12 = vector.load %arg5[%c0_8, %c0_9] : memref<128x128xbf16, #tpu.memory_space<vmem>>, vector<128x128xbf16>
    tpu.vector_store %arg5[%c0_8, %c0_9], %11 {strides = array<i32>} : memref<128x128xbf16, #tpu.memory_space<vmem>>, vector<128x128xbf16>,
    return
  }
  func.func @transform_0(%arg0: i32) -> (i32, i32) {
    %c0_i32 = arith.constant 0 : i32
    %c0_i32_0 = arith.constant 0 : i32
    return %arg0, %c0_i32 : i32, i32
  }
  func.func @transform_1(%arg0: i32) -> (i32, i32) {
    %c0_i32 = arith.constant 0 : i32
    %c0_i32_0 = arith.constant 0 : i32
    %c0_i32_1 = arith.constant 0 : i32
    return %c0_i32, %c0_i32_0 : i32, i32
  }
  func.func @transform_2(%arg0: i32) -> (i32, i32) {
    %c0_i32 = arith.constant 0 : i32
    %c0_i32_0 = arith.constant 0 : i32
    %c0_i32_1 = arith.constant 0 : i32
    return %c0_i32, %c0_i32_0 : i32, i32
  }
  func.func @transform_3(%arg0: i32) -> (i32, i32) {
    %c0_i32 = arith.constant 0 : i32
    %c0_i32_0 = arith.constant 0 : i32
    %c0_i32_1 = arith.constant 0 : i32
    return %c0_i32, %c0_i32_0 : i32, i32
  }
  func.func @transform_4(%arg0: i32) -> (i32, i32) {
    %c0_i32 = arith.constant 0 : i32
    %c0_i32_0 = arith.constant 0 : i32
    return %arg0, %c0_i32 : i32, i32
  }
}

module attributes {stable_mosaic.version = 11 : i64} {
  func.func @matmul_bn_relu_kernel(%arg0: i32, %arg1: memref<32x128xbf16, #tpu.memory_space<vmem>>, %arg2: memref<128x128xbf16, #tpu.memory_space<vmem>>, %arg3: memref<1x128xf32, #tpu.memory_space<vmem>>, %arg4: memref<1x128xf32, #tpu.memory_space<vmem>>, %arg5: memref<32x128xbf16, #tpu.memory_space<vmem>>) attributes {dimension_semantics = [#tpu.dimension_semantics<parallel>], iteration_bounds = array<i64: 1>, scalar_prefetch = 0 : i64, scratch_operands = 0 : i64, tpu.core_type = #tpu.core_type<tc>, window_params = [{transform_indices = @transform_0, window_bounds = array<i64: 32, 128>}, {pipeline_mode = #tpu.pipeline_mode<synchronous>, transform_indices = @transform_1, window_bounds = array<i64: 128, 128>}, {pipeline_mode = #tpu.pipeline_mode<synchronous>, transform_indices = @transform_2, window_bounds = array<i64: 1, 128>}, {pipeline_mode = #tpu.pipeline_mode<synchronous>, transform_indices = @transform_3, window_bounds = array<i64: 1, 128>}, {transform_indices = @transform_4, window_bounds = array<i64: 32, 128>}]} {
    %c0 = arith.constant 0 : index
    %c0_0 = arith.constant 0 : index
    %0 = vector.load %arg1[%c0, %c0_0] : memref<32x128xbf16, #tpu.memory_space<vmem>>, vector<32x128xbf16>
    %c0_1 = arith.constant 0 : index
    %c0_2 = arith.constant 0 : index
    %1 = vector.load %arg2[%c0_1, %c0_2] : memref<128x128xbf16, #tpu.memory_space<vmem>>, vector<128x128xbf16>
    %cst = arith.constant dense<0.000000e+00> : vector<32x128xf32>
    %2 = tpu.matmul %0, %1, %cst {dimension_numbers = #tpu.dot_dimension_numbers<[1], [0], [0], [1], [0, 0, 1, 1], [], []>} : vector<32x128xbf16>, vector<128x128xbf16>, vector<32x128xf32> -> vector<32x128xf32>
    %c0_3 = arith.constant 0 : index
    %c0_4 = arith.constant 0 : index
    %3 = vector.load %arg3[%c0_3, %c0_4] : memref<1x128xf32, #tpu.memory_space<vmem>>, vector<1x128xf32>
    %4 = vector.broadcast %3 : vector<1x128xf32> to vector<32x128xf32>
    %5 = arith.mulf %2, %4 : vector<32x128xf32>
    %c0_5 = arith.constant 0 : index
    %c0_6 = arith.constant 0 : index
    %6 = vector.load %arg4[%c0_5, %c0_6] : memref<1x128xf32, #tpu.memory_space<vmem>>, vector<1x128xf32>
    %7 = vector.broadcast %6 : vector<1x128xf32> to vector<32x128xf32>
    %8 = arith.addf %5, %7 : vector<32x128xf32>
    %cst_7 = arith.constant 0.000000e+00 : f32
    %9 = vector.broadcast %cst_7 : f32 to vector<32x128xf32>
    %10 = arith.maximumf %8, %9 : vector<32x128xf32>
    %11 = arith.truncf %10 : vector<32x128xf32> to vector<32x128xbf16>
    %c0_8 = arith.constant 0 : index
    %c0_9 = arith.constant 0 : index
    %12 = vector.load %arg5[%c0_8, %c0_9] : memref<32x128xbf16, #tpu.memory_space<vmem>>, vector<32x128xbf16>
    tpu.vector_store %arg5[%c0_8, %c0_9], %11 {strides = array<i32>} : memref<32x128xbf16, #tpu.memory_space<vmem>>, vector<32x128xbf16>,
    return
  }
  func.func @transform_0(%arg0: i32) -> (i32, i32) {
    %c0_i32 = arith.constant 0 : i32
    %c0_i32_0 = arith.constant 0 : i32
    return %arg0, %c0_i32 : i32, i32
  }
  func.func @transform_1(%arg0: i32) -> (i32, i32) {
    %c0_i32 = arith.constant 0 : i32
    %c0_i32_0 = arith.constant 0 : i32
    %c0_i32_1 = arith.constant 0 : i32
    return %c0_i32, %c0_i32_0 : i32, i32
  }
  func.func @transform_2(%arg0: i32) -> (i32, i32) {
    %c0_i32 = arith.constant 0 : i32
    %c0_i32_0 = arith.constant 0 : i32
    %c0_i32_1 = arith.constant 0 : i32
    return %c0_i32, %c0_i32_0 : i32, i32
  }
  func.func @transform_3(%arg0: i32) -> (i32, i32) {
    %c0_i32 = arith.constant 0 : i32
    %c0_i32_0 = arith.constant 0 : i32
    %c0_i32_1 = arith.constant 0 : i32
    return %c0_i32, %c0_i32_0 : i32, i32
  }
  func.func @transform_4(%arg0: i32) -> (i32, i32) {
    %c0_i32 = arith.constant 0 : i32
    %c0_i32_0 = arith.constant 0 : i32
    return %arg0, %c0_i32 : i32, i32
  }
}

module attributes {stable_mosaic.version = 11 : i64} {
  func.func @matmul_bn_relu_kernel(%arg0: i32, %arg1: memref<8x256xbf16, #tpu.memory_space<vmem>>, %arg2: memref<256x128xbf16, #tpu.memory_space<vmem>>, %arg3: memref<1x128xf32, #tpu.memory_space<vmem>>, %arg4: memref<1x128xf32, #tpu.memory_space<vmem>>, %arg5: memref<8x128xbf16, #tpu.memory_space<vmem>>) attributes {dimension_semantics = [#tpu.dimension_semantics<parallel>], iteration_bounds = array<i64: 1>, scalar_prefetch = 0 : i64, scratch_operands = 0 : i64, tpu.core_type = #tpu.core_type<tc>, window_params = [{transform_indices = @transform_0, window_bounds = array<i64: 8, 256>}, {pipeline_mode = #tpu.pipeline_mode<synchronous>, transform_indices = @transform_1, window_bounds = array<i64: 256, 128>}, {pipeline_mode = #tpu.pipeline_mode<synchronous>, transform_indices = @transform_2, window_bounds = array<i64: 1, 128>}, {pipeline_mode = #tpu.pipeline_mode<synchronous>, transform_indices = @transform_3, window_bounds = array<i64: 1, 128>}, {transform_indices = @transform_4, window_bounds = array<i64: 8, 128>}]} {
    %c0 = arith.constant 0 : index
    %c0_0 = arith.constant 0 : index
    %0 = vector.load %arg1[%c0, %c0_0] : memref<8x256xbf16, #tpu.memory_space<vmem>>, vector<8x256xbf16>
    %c0_1 = arith.constant 0 : index
    %c0_2 = arith.constant 0 : index
    %1 = vector.load %arg2[%c0_1, %c0_2] : memref<256x128xbf16, #tpu.memory_space<vmem>>, vector<256x128xbf16>
    %cst = arith.constant dense<0.000000e+00> : vector<8x128xf32>
    %2 = tpu.matmul %0, %1, %cst {dimension_numbers = #tpu.dot_dimension_numbers<[1], [0], [0], [1], [0, 0, 1, 1], [], []>} : vector<8x256xbf16>, vector<256x128xbf16>, vector<8x128xf32> -> vector<8x128xf32>
    %c0_3 = arith.constant 0 : index
    %c0_4 = arith.constant 0 : index
    %3 = vector.load %arg3[%c0_3, %c0_4] : memref<1x128xf32, #tpu.memory_space<vmem>>, vector<1x128xf32>
    %4 = vector.broadcast %3 : vector<1x128xf32> to vector<8x128xf32>
    %5 = arith.mulf %2, %4 : vector<8x128xf32>
    %c0_5 = arith.constant 0 : index
    %c0_6 = arith.constant 0 : index
    %6 = vector.load %arg4[%c0_5, %c0_6] : memref<1x128xf32, #tpu.memory_space<vmem>>, vector<1x128xf32>
    %7 = vector.broadcast %6 : vector<1x128xf32> to vector<8x128xf32>
    %8 = arith.addf %5, %7 : vector<8x128xf32>
    %cst_7 = arith.constant 0.000000e+00 : f32
    %9 = vector.broadcast %cst_7 : f32 to vector<8x128xf32>
    %10 = arith.maximumf %8, %9 : vector<8x128xf32>
    %11 = arith.truncf %10 : vector<8x128xf32> to vector<8x128xbf16>
    %c0_8 = arith.constant 0 : index
    %c0_9 = arith.constant 0 : index
    %12 = vector.load %arg5[%c0_8, %c0_9] : memref<8x128xbf16, #tpu.memory_space<vmem>>, vector<8x128xbf16>
    tpu.vector_store %arg5[%c0_8, %c0_9], %11 {strides = array<i32>} : memref<8x128xbf16, #tpu.memory_space<vmem>>, vector<8x128xbf16>,
    return
  }
  func.func @transform_0(%arg0: i32) -> (i32, i32) {
    %c0_i32 = arith.constant 0 : i32
    %c0_i32_0 = arith.constant 0 : i32
    return %arg0, %c0_i32 : i32, i32
  }
  func.func @transform_1(%arg0: i32) -> (i32, i32) {
    %c0_i32 = arith.constant 0 : i32
    %c0_i32_0 = arith.constant 0 : i32
    %c0_i32_1 = arith.constant 0 : i32
    return %c0_i32, %c0_i32_0 : i32, i32
  }
  func.func @transform_2(%arg0: i32) -> (i32, i32) {
    %c0_i32 = arith.constant 0 : i32
    %c0_i32_0 = arith.constant 0 : i32
    %c0_i32_1 = arith.constant 0 : i32
    return %c0_i32, %c0_i32_0 : i32, i32
  }
  func.func @transform_3(%arg0: i32) -> (i32, i32) {
    %c0_i32 = arith.constant 0 : i32
    %c0_i32_0 = arith.constant 0 : i32
    %c0_i32_1 = arith.constant 0 : i32
    return %c0_i32, %c0_i32_0 : i32, i32
  }
  func.func @transform_4(%arg0: i32) -> (i32, i32) {
    %c0_i32 = arith.constant 0 : i32
    %c0_i32_0 = arith.constant 0 : i32
    return %arg0, %c0_i32 : i32, i32
  }
}

module attributes {stable_mosaic.version = 11 : i64} {
  func.func @w_interp_add_kernel(%arg0: i32, %arg1: i32, %arg2: memref<4x2xbf16, #tpu.memory_space<vmem>>, %arg3: memref<1x4x2x128xbf16, #tpu.memory_space<vmem>>, %arg4: memref<1x4x4x128xbf16, #tpu.memory_space<vmem>>, %arg5: memref<1x4x4x128xbf16, #tpu.memory_space<vmem>>) attributes {dimension_semantics = [#tpu.dimension_semantics<parallel>, #tpu.dimension_semantics<parallel>], iteration_bounds = array<i64: 2, 1>, scalar_prefetch = 0 : i64, scratch_operands = 0 : i64, tpu.core_type = #tpu.core_type<tc>, window_params = [{pipeline_mode = #tpu.pipeline_mode<synchronous>, transform_indices = @transform_0, window_bounds = array<i64: 4, 2>}, {transform_indices = @transform_1, window_bounds = array<i64: 1, 4, 2, 128>}, {transform_indices = @transform_2, window_bounds = array<i64: 1, 4, 4, 128>}, {transform_indices = @transform_3, window_bounds = array<i64: 1, 4, 4, 128>}]} {
    %c0 = arith.constant 0 : index
    %c0_0 = arith.constant 0 : index
    %c0_1 = arith.constant 0 : index
    %c0_2 = arith.constant 0 : index
    %0 = vector.load %arg3[%c0, %c0_0, %c0_1, %c0_2] : memref<1x4x2x128xbf16, #tpu.memory_space<vmem>>, vector<1x4x2x128xbf16>
    %1 = vector.shape_cast %0 : vector<1x4x2x128xbf16> to vector<4x2x128xbf16>
    %c0_3 = arith.constant 0 : index
    %c0_4 = arith.constant 0 : index
    %2 = vector.load %arg2[%c0_3, %c0_4] : memref<4x2xbf16, #tpu.memory_space<vmem>>, vector<4x2xbf16>
    %3 = vector.shape_cast %2 : vector<4x2xbf16> to vector<1x4x2xbf16>
    %4 = vector.broadcast %3 : vector<1x4x2xbf16> to vector<4x4x2xbf16>
    %cst = arith.constant dense<0.000000e+00> : vector<4x4x128xf32>
    %5 = tpu.matmul %4, %1, %cst {dimension_numbers = #tpu.dot_dimension_numbers<[2], [1], [1], [2], [0, 0, 0, 1, 1, 2], [0], [0]>} : vector<4x4x2xbf16>, vector<4x2x128xbf16>, vector<4x4x128xf32> -> vector<4x4x128xf32>
    %c0_5 = arith.constant 0 : index
    %c0_6 = arith.constant 0 : index
    %c0_7 = arith.constant 0 : index
    %c0_8 = arith.constant 0 : index
    %6 = vector.load %arg4[%c0_5, %c0_6, %c0_7, %c0_8] : memref<1x4x4x128xbf16, #tpu.memory_space<vmem>>, vector<1x4x4x128xbf16>
    %7 = vector.shape_cast %6 : vector<1x4x4x128xbf16> to vector<4x4x128xbf16>
    %8 = arith.extf %7 : vector<4x4x128xbf16> to vector<4x4x128xf32>
    %9 = arith.addf %5, %8 : vector<4x4x128xf32>
    %10 = arith.truncf %9 : vector<4x4x128xf32> to vector<4x4x128xbf16>
    %c0_9 = arith.constant 0 : index
    %c0_10 = arith.constant 0 : index
    %c0_11 = arith.constant 0 : index
    %c0_12 = arith.constant 0 : index
    %11 = vector.load %arg5[%c0_9, %c0_10, %c0_11, %c0_12] : memref<1x4x4x128xbf16, #tpu.memory_space<vmem>>, vector<1x4x4x128xbf16>
    %12 = vector.shape_cast %11 : vector<1x4x4x128xbf16> to vector<4x4x128xbf16>
    %13 = vector.shape_cast %10 : vector<4x4x128xbf16> to vector<1x4x4x128xbf16>
    tpu.vector_store %arg5[%c0_9, %c0_10, %c0_11, %c0_12], %13 {strides = array<i32>} : memref<1x4x4x128xbf16, #tpu.memory_space<vmem>>, vector<1x4x4x128xbf16>,
    return
  }
  func.func @transform_0(%arg0: i32, %arg1: i32) -> (i32, i32) {
    %c0_i32 = arith.constant 0 : i32
    %c0_i32_0 = arith.constant 0 : i32
    %c0_i32_1 = arith.constant 0 : i32
    return %c0_i32, %c0_i32_0 : i32, i32
  }
  func.func @transform_1(%arg0: i32, %arg1: i32) -> (i32, i32, i32, i32) {
    %c0_i32 = arith.constant 0 : i32
    %c0_i32_0 = arith.constant 0 : i32
    %c0_i32_1 = arith.constant 0 : i32
    return %arg0, %arg1, %c0_i32, %c0_i32_0 : i32, i32, i32, i32
  }
  func.func @transform_2(%arg0: i32, %arg1: i32) -> (i32, i32, i32, i32) {
    %c0_i32 = arith.constant 0 : i32
    %c0_i32_0 = arith.constant 0 : i32
    %c0_i32_1 = arith.constant 0 : i32
    return %arg0, %arg1, %c0_i32, %c0_i32_0 : i32, i32, i32, i32
  }
  func.func @transform_3(%arg0: i32, %arg1: i32) -> (i32, i32, i32, i32) {
    %c0_i32 = arith.constant 0 : i32
    %c0_i32_0 = arith.constant 0 : i32
    %c0_i32_1 = arith.constant 0 : i32
    return %arg0, %arg1, %c0_i32, %c0_i32_0 : i32, i32, i32, i32
  }
}

module attributes {stable_mosaic.version = 11 : i64} {
  func.func @matmul_bn_relu_kernel(%arg0: i32, %arg1: memref<8x128xbf16, #tpu.memory_space<vmem>>, %arg2: memref<128x128xbf16, #tpu.memory_space<vmem>>, %arg3: memref<1x128xf32, #tpu.memory_space<vmem>>, %arg4: memref<1x128xf32, #tpu.memory_space<vmem>>, %arg5: memref<8x128xbf16, #tpu.memory_space<vmem>>) attributes {dimension_semantics = [#tpu.dimension_semantics<parallel>], iteration_bounds = array<i64: 1>, scalar_prefetch = 0 : i64, scratch_operands = 0 : i64, tpu.core_type = #tpu.core_type<tc>, window_params = [{transform_indices = @transform_0, window_bounds = array<i64: 8, 128>}, {pipeline_mode = #tpu.pipeline_mode<synchronous>, transform_indices = @transform_1, window_bounds = array<i64: 128, 128>}, {pipeline_mode = #tpu.pipeline_mode<synchronous>, transform_indices = @transform_2, window_bounds = array<i64: 1, 128>}, {pipeline_mode = #tpu.pipeline_mode<synchronous>, transform_indices = @transform_3, window_bounds = array<i64: 1, 128>}, {transform_indices = @transform_4, window_bounds = array<i64: 8, 128>}]} {
    %c0 = arith.constant 0 : index
    %c0_0 = arith.constant 0 : index
    %0 = vector.load %arg1[%c0, %c0_0] : memref<8x128xbf16, #tpu.memory_space<vmem>>, vector<8x128xbf16>
    %c0_1 = arith.constant 0 : index
    %c0_2 = arith.constant 0 : index
    %1 = vector.load %arg2[%c0_1, %c0_2] : memref<128x128xbf16, #tpu.memory_space<vmem>>, vector<128x128xbf16>
    %cst = arith.constant dense<0.000000e+00> : vector<8x128xf32>
    %2 = tpu.matmul %0, %1, %cst {dimension_numbers = #tpu.dot_dimension_numbers<[1], [0], [0], [1], [0, 0, 1, 1], [], []>} : vector<8x128xbf16>, vector<128x128xbf16>, vector<8x128xf32> -> vector<8x128xf32>
    %c0_3 = arith.constant 0 : index
    %c0_4 = arith.constant 0 : index
    %3 = vector.load %arg3[%c0_3, %c0_4] : memref<1x128xf32, #tpu.memory_space<vmem>>, vector<1x128xf32>
    %4 = vector.broadcast %3 : vector<1x128xf32> to vector<8x128xf32>
    %5 = arith.mulf %2, %4 : vector<8x128xf32>
    %c0_5 = arith.constant 0 : index
    %c0_6 = arith.constant 0 : index
    %6 = vector.load %arg4[%c0_5, %c0_6] : memref<1x128xf32, #tpu.memory_space<vmem>>, vector<1x128xf32>
    %7 = vector.broadcast %6 : vector<1x128xf32> to vector<8x128xf32>
    %8 = arith.addf %5, %7 : vector<8x128xf32>
    %cst_7 = arith.constant 0.000000e+00 : f32
    %9 = vector.broadcast %cst_7 : f32 to vector<8x128xf32>
    %10 = arith.maximumf %8, %9 : vector<8x128xf32>
    %11 = arith.truncf %10 : vector<8x128xf32> to vector<8x128xbf16>
    %c0_8 = arith.constant 0 : index
    %c0_9 = arith.constant 0 : index
    %12 = vector.load %arg5[%c0_8, %c0_9] : memref<8x128xbf16, #tpu.memory_space<vmem>>, vector<8x128xbf16>
    tpu.vector_store %arg5[%c0_8, %c0_9], %11 {strides = array<i32>} : memref<8x128xbf16, #tpu.memory_space<vmem>>, vector<8x128xbf16>,
    return
  }
  func.func @transform_0(%arg0: i32) -> (i32, i32) {
    %c0_i32 = arith.constant 0 : i32
    %c0_i32_0 = arith.constant 0 : i32
    return %arg0, %c0_i32 : i32, i32
  }
  func.func @transform_1(%arg0: i32) -> (i32, i32) {
    %c0_i32 = arith.constant 0 : i32
    %c0_i32_0 = arith.constant 0 : i32
    %c0_i32_1 = arith.constant 0 : i32
    return %c0_i32, %c0_i32_0 : i32, i32
  }
  func.func @transform_2(%arg0: i32) -> (i32, i32) {
    %c0_i32 = arith.constant 0 : i32
    %c0_i32_0 = arith.constant 0 : i32
    %c0_i32_1 = arith.constant 0 : i32
    return %c0_i32, %c0_i32_0 : i32, i32
  }
  func.func @transform_3(%arg0: i32) -> (i32, i32) {
    %c0_i32 = arith.constant 0 : i32
    %c0_i32_0 = arith.constant 0 : i32
    %c0_i32_1 = arith.constant 0 : i32
    return %c0_i32, %c0_i32_0 : i32, i32
  }
  func.func @transform_4(%arg0: i32) -> (i32, i32) {
    %c0_i32 = arith.constant 0 : i32
    %c0_i32_0 = arith.constant 0 : i32
    return %arg0, %c0_i32 : i32, i32
  }
}

module attributes {stable_mosaic.version = 11 : i64} {
  func.func @h_interp_kernel(%arg0: i32, %arg1: i32, %arg2: memref<4x2xbf16, #tpu.memory_space<vmem>>, %arg3: memref<1x2x256xbf16, #tpu.memory_space<vmem>>, %arg4: memref<1x4x256xbf16, #tpu.memory_space<vmem>>) attributes {dimension_semantics = [#tpu.dimension_semantics<parallel>, #tpu.dimension_semantics<parallel>], iteration_bounds = array<i64: 2, 1>, scalar_prefetch = 0 : i64, scratch_operands = 0 : i64, tpu.core_type = #tpu.core_type<tc>, window_params = [{transform_indices = @transform_0, window_bounds = array<i64: 4, 2>}, {transform_indices = @transform_1, window_bounds = array<i64: 1, 2, 256>}, {transform_indices = @transform_2, window_bounds = array<i64: 1, 4, 256>}]} {
    %c0 = arith.constant 0 : index
    %c0_0 = arith.constant 0 : index
    %0 = vector.load %arg2[%c0, %c0_0] : memref<4x2xbf16, #tpu.memory_space<vmem>>, vector<4x2xbf16>
    %c0_1 = arith.constant 0 : index
    %c0_2 = arith.constant 0 : index
    %c0_3 = arith.constant 0 : index
    %1 = vector.load %arg3[%c0_1, %c0_2, %c0_3] : memref<1x2x256xbf16, #tpu.memory_space<vmem>>, vector<1x2x256xbf16>
    %2 = vector.shape_cast %1 : vector<1x2x256xbf16> to vector<2x256xbf16>
    %cst = arith.constant dense<0.000000e+00> : vector<4x256xf32>
    %3 = tpu.matmul %0, %2, %cst {dimension_numbers = #tpu.dot_dimension_numbers<[1], [0], [0], [1], [0, 0, 1, 1], [], []>} : vector<4x2xbf16>, vector<2x256xbf16>, vector<4x256xf32> -> vector<4x256xf32>
    %4 = arith.truncf %3 : vector<4x256xf32> to vector<4x256xbf16>
    %c0_4 = arith.constant 0 : index
    %c0_5 = arith.constant 0 : index
    %c0_6 = arith.constant 0 : index
    %5 = vector.load %arg4[%c0_4, %c0_5, %c0_6] : memref<1x4x256xbf16, #tpu.memory_space<vmem>>, vector<1x4x256xbf16>
    %6 = vector.shape_cast %5 : vector<1x4x256xbf16> to vector<4x256xbf16>
    %7 = vector.shape_cast %4 : vector<4x256xbf16> to vector<1x4x256xbf16>
    tpu.vector_store %arg4[%c0_4, %c0_5, %c0_6], %7 {strides = array<i32>} : memref<1x4x256xbf16, #tpu.memory_space<vmem>>, vector<1x4x256xbf16>,
    return
  }
  func.func @transform_0(%arg0: i32, %arg1: i32) -> (i32, i32) {
    %c0_i32 = arith.constant 0 : i32
    %c0_i32_0 = arith.constant 0 : i32
    return %arg1, %c0_i32 : i32, i32
  }
  func.func @transform_1(%arg0: i32, %arg1: i32) -> (i32, i32, i32) {
    %c0_i32 = arith.constant 0 : i32
    %c0_i32_0 = arith.constant 0 : i32
    %c0_i32_1 = arith.constant 0 : i32
    return %arg0, %c0_i32, %c0_i32_0 : i32, i32, i32
  }
  func.func @transform_2(%arg0: i32, %arg1: i32) -> (i32, i32, i32) {
    %c0_i32 = arith.constant 0 : i32
    %c0_i32_0 = arith.constant 0 : i32
    return %arg0, %arg1, %c0_i32 : i32, i32, i32
  }
}

module attributes {stable_mosaic.version = 11 : i64} {
  func.func @h_interp_kernel(%arg0: i32, %arg1: i32, %arg2: memref<8x4xbf16, #tpu.memory_space<vmem>>, %arg3: memref<1x4x512xbf16, #tpu.memory_space<vmem>>, %arg4: memref<1x8x512xbf16, #tpu.memory_space<vmem>>) attributes {dimension_semantics = [#tpu.dimension_semantics<parallel>, #tpu.dimension_semantics<parallel>], iteration_bounds = array<i64: 2, 1>, scalar_prefetch = 0 : i64, scratch_operands = 0 : i64, tpu.core_type = #tpu.core_type<tc>, window_params = [{transform_indices = @transform_0, window_bounds = array<i64: 8, 4>}, {transform_indices = @transform_1, window_bounds = array<i64: 1, 4, 512>}, {transform_indices = @transform_2, window_bounds = array<i64: 1, 8, 512>}]} {
    %c0 = arith.constant 0 : index
    %c0_0 = arith.constant 0 : index
    %0 = vector.load %arg2[%c0, %c0_0] : memref<8x4xbf16, #tpu.memory_space<vmem>>, vector<8x4xbf16>
    %c0_1 = arith.constant 0 : index
    %c0_2 = arith.constant 0 : index
    %c0_3 = arith.constant 0 : index
    %1 = vector.load %arg3[%c0_1, %c0_2, %c0_3] : memref<1x4x512xbf16, #tpu.memory_space<vmem>>, vector<1x4x512xbf16>
    %2 = vector.shape_cast %1 : vector<1x4x512xbf16> to vector<4x512xbf16>
    %cst = arith.constant dense<0.000000e+00> : vector<8x512xf32>
    %3 = tpu.matmul %0, %2, %cst {dimension_numbers = #tpu.dot_dimension_numbers<[1], [0], [0], [1], [0, 0, 1, 1], [], []>} : vector<8x4xbf16>, vector<4x512xbf16>, vector<8x512xf32> -> vector<8x512xf32>
    %4 = arith.truncf %3 : vector<8x512xf32> to vector<8x512xbf16>
    %c0_4 = arith.constant 0 : index
    %c0_5 = arith.constant 0 : index
    %c0_6 = arith.constant 0 : index
    %5 = vector.load %arg4[%c0_4, %c0_5, %c0_6] : memref<1x8x512xbf16, #tpu.memory_space<vmem>>, vector<1x8x512xbf16>
    %6 = vector.shape_cast %5 : vector<1x8x512xbf16> to vector<8x512xbf16>
    %7 = vector.shape_cast %4 : vector<8x512xbf16> to vector<1x8x512xbf16>
    tpu.vector_store %arg4[%c0_4, %c0_5, %c0_6], %7 {strides = array<i32>} : memref<1x8x512xbf16, #tpu.memory_space<vmem>>, vector<1x8x512xbf16>,
    return
  }
  func.func @transform_0(%arg0: i32, %arg1: i32) -> (i32, i32) {
    %c0_i32 = arith.constant 0 : i32
    %c0_i32_0 = arith.constant 0 : i32
    return %arg1, %c0_i32 : i32, i32
  }
  func.func @transform_1(%arg0: i32, %arg1: i32) -> (i32, i32, i32) {
    %c0_i32 = arith.constant 0 : i32
    %c0_i32_0 = arith.constant 0 : i32
    %c0_i32_1 = arith.constant 0 : i32
    return %arg0, %c0_i32, %c0_i32_0 : i32, i32, i32
  }
  func.func @transform_2(%arg0: i32, %arg1: i32) -> (i32, i32, i32) {
    %c0_i32 = arith.constant 0 : i32
    %c0_i32_0 = arith.constant 0 : i32
    return %arg0, %arg1, %c0_i32 : i32, i32, i32
  }
}

module attributes {stable_mosaic.version = 11 : i64} {
  func.func @w_interp_add_kernel(%arg0: i32, %arg1: i32, %arg2: memref<8x4xbf16, #tpu.memory_space<vmem>>, %arg3: memref<1x8x4x128xbf16, #tpu.memory_space<vmem>>, %arg4: memref<1x8x8x128xbf16, #tpu.memory_space<vmem>>, %arg5: memref<1x8x8x128xbf16, #tpu.memory_space<vmem>>) attributes {dimension_semantics = [#tpu.dimension_semantics<parallel>, #tpu.dimension_semantics<parallel>], iteration_bounds = array<i64: 2, 1>, scalar_prefetch = 0 : i64, scratch_operands = 0 : i64, tpu.core_type = #tpu.core_type<tc>, window_params = [{pipeline_mode = #tpu.pipeline_mode<synchronous>, transform_indices = @transform_0, window_bounds = array<i64: 8, 4>}, {transform_indices = @transform_1, window_bounds = array<i64: 1, 8, 4, 128>}, {transform_indices = @transform_2, window_bounds = array<i64: 1, 8, 8, 128>}, {transform_indices = @transform_3, window_bounds = array<i64: 1, 8, 8, 128>}]} {
    %c0 = arith.constant 0 : index
    %c0_0 = arith.constant 0 : index
    %c0_1 = arith.constant 0 : index
    %c0_2 = arith.constant 0 : index
    %0 = vector.load %arg3[%c0, %c0_0, %c0_1, %c0_2] : memref<1x8x4x128xbf16, #tpu.memory_space<vmem>>, vector<1x8x4x128xbf16>
    %1 = vector.shape_cast %0 : vector<1x8x4x128xbf16> to vector<8x4x128xbf16>
    %c0_3 = arith.constant 0 : index
    %c0_4 = arith.constant 0 : index
    %2 = vector.load %arg2[%c0_3, %c0_4] : memref<8x4xbf16, #tpu.memory_space<vmem>>, vector<8x4xbf16>
    %3 = vector.shape_cast %2 : vector<8x4xbf16> to vector<1x8x4xbf16>
    %4 = vector.broadcast %3 : vector<1x8x4xbf16> to vector<8x8x4xbf16>
    %cst = arith.constant dense<0.000000e+00> : vector<8x8x128xf32>
    %5 = tpu.matmul %4, %1, %cst {dimension_numbers = #tpu.dot_dimension_numbers<[2], [1], [1], [2], [0, 0, 0, 1, 1, 2], [0], [0]>} : vector<8x8x4xbf16>, vector<8x4x128xbf16>, vector<8x8x128xf32> -> vector<8x8x128xf32>
    %c0_5 = arith.constant 0 : index
    %c0_6 = arith.constant 0 : index
    %c0_7 = arith.constant 0 : index
    %c0_8 = arith.constant 0 : index
    %6 = vector.load %arg4[%c0_5, %c0_6, %c0_7, %c0_8] : memref<1x8x8x128xbf16, #tpu.memory_space<vmem>>, vector<1x8x8x128xbf16>
    %7 = vector.shape_cast %6 : vector<1x8x8x128xbf16> to vector<8x8x128xbf16>
    %8 = arith.extf %7 : vector<8x8x128xbf16> to vector<8x8x128xf32>
    %9 = arith.addf %5, %8 : vector<8x8x128xf32>
    %10 = arith.truncf %9 : vector<8x8x128xf32> to vector<8x8x128xbf16>
    %c0_9 = arith.constant 0 : index
    %c0_10 = arith.constant 0 : index
    %c0_11 = arith.constant 0 : index
    %c0_12 = arith.constant 0 : index
    %11 = vector.load %arg5[%c0_9, %c0_10, %c0_11, %c0_12] : memref<1x8x8x128xbf16, #tpu.memory_space<vmem>>, vector<1x8x8x128xbf16>
    %12 = vector.shape_cast %11 : vector<1x8x8x128xbf16> to vector<8x8x128xbf16>
    %13 = vector.shape_cast %10 : vector<8x8x128xbf16> to vector<1x8x8x128xbf16>
    tpu.vector_store %arg5[%c0_9, %c0_10, %c0_11, %c0_12], %13 {strides = array<i32>} : memref<1x8x8x128xbf16, #tpu.memory_space<vmem>>, vector<1x8x8x128xbf16>,
    return
  }
  func.func @transform_0(%arg0: i32, %arg1: i32) -> (i32, i32) {
    %c0_i32 = arith.constant 0 : i32
    %c0_i32_0 = arith.constant 0 : i32
    %c0_i32_1 = arith.constant 0 : i32
    return %c0_i32, %c0_i32_0 : i32, i32
  }
  func.func @transform_1(%arg0: i32, %arg1: i32) -> (i32, i32, i32, i32) {
    %c0_i32 = arith.constant 0 : i32
    %c0_i32_0 = arith.constant 0 : i32
    %c0_i32_1 = arith.constant 0 : i32
    return %arg0, %arg1, %c0_i32, %c0_i32_0 : i32, i32, i32, i32
  }
  func.func @transform_2(%arg0: i32, %arg1: i32) -> (i32, i32, i32, i32) {
    %c0_i32 = arith.constant 0 : i32
    %c0_i32_0 = arith.constant 0 : i32
    %c0_i32_1 = arith.constant 0 : i32
    return %arg0, %arg1, %c0_i32, %c0_i32_0 : i32, i32, i32, i32
  }
  func.func @transform_3(%arg0: i32, %arg1: i32) -> (i32, i32, i32, i32) {
    %c0_i32 = arith.constant 0 : i32
    %c0_i32_0 = arith.constant 0 : i32
    %c0_i32_1 = arith.constant 0 : i32
    return %arg0, %arg1, %c0_i32, %c0_i32_0 : i32, i32, i32, i32
  }
}

module attributes {stable_mosaic.version = 11 : i64} {
  func.func @h_interp_kernel(%arg0: i32, %arg1: i32, %arg2: memref<16x8xbf16, #tpu.memory_space<vmem>>, %arg3: memref<1x8x1024xbf16, #tpu.memory_space<vmem>>, %arg4: memref<1x16x1024xbf16, #tpu.memory_space<vmem>>) attributes {dimension_semantics = [#tpu.dimension_semantics<parallel>, #tpu.dimension_semantics<parallel>], iteration_bounds = array<i64: 2, 1>, scalar_prefetch = 0 : i64, scratch_operands = 0 : i64, tpu.core_type = #tpu.core_type<tc>, window_params = [{transform_indices = @transform_0, window_bounds = array<i64: 16, 8>}, {transform_indices = @transform_1, window_bounds = array<i64: 1, 8, 1024>}, {transform_indices = @transform_2, window_bounds = array<i64: 1, 16, 1024>}]} {
    %c0 = arith.constant 0 : index
    %c0_0 = arith.constant 0 : index
    %0 = vector.load %arg2[%c0, %c0_0] : memref<16x8xbf16, #tpu.memory_space<vmem>>, vector<16x8xbf16>
    %c0_1 = arith.constant 0 : index
    %c0_2 = arith.constant 0 : index
    %c0_3 = arith.constant 0 : index
    %1 = vector.load %arg3[%c0_1, %c0_2, %c0_3] : memref<1x8x1024xbf16, #tpu.memory_space<vmem>>, vector<1x8x1024xbf16>
    %2 = vector.shape_cast %1 : vector<1x8x1024xbf16> to vector<8x1024xbf16>
    %cst = arith.constant dense<0.000000e+00> : vector<16x1024xf32>
    %3 = tpu.matmul %0, %2, %cst {dimension_numbers = #tpu.dot_dimension_numbers<[1], [0], [0], [1], [0, 0, 1, 1], [], []>} : vector<16x8xbf16>, vector<8x1024xbf16>, vector<16x1024xf32> -> vector<16x1024xf32>
    %4 = arith.truncf %3 : vector<16x1024xf32> to vector<16x1024xbf16>
    %c0_4 = arith.constant 0 : index
    %c0_5 = arith.constant 0 : index
    %c0_6 = arith.constant 0 : index
    %5 = vector.load %arg4[%c0_4, %c0_5, %c0_6] : memref<1x16x1024xbf16, #tpu.memory_space<vmem>>, vector<1x16x1024xbf16>
    %6 = vector.shape_cast %5 : vector<1x16x1024xbf16> to vector<16x1024xbf16>
    %7 = vector.shape_cast %4 : vector<16x1024xbf16> to vector<1x16x1024xbf16>
    tpu.vector_store %arg4[%c0_4, %c0_5, %c0_6], %7 {strides = array<i32>} : memref<1x16x1024xbf16, #tpu.memory_space<vmem>>, vector<1x16x1024xbf16>,
    return
  }
  func.func @transform_0(%arg0: i32, %arg1: i32) -> (i32, i32) {
    %c0_i32 = arith.constant 0 : i32
    %c0_i32_0 = arith.constant 0 : i32
    return %arg1, %c0_i32 : i32, i32
  }
  func.func @transform_1(%arg0: i32, %arg1: i32) -> (i32, i32, i32) {
    %c0_i32 = arith.constant 0 : i32
    %c0_i32_0 = arith.constant 0 : i32
    %c0_i32_1 = arith.constant 0 : i32
    return %arg0, %c0_i32, %c0_i32_0 : i32, i32, i32
  }
  func.func @transform_2(%arg0: i32, %arg1: i32) -> (i32, i32, i32) {
    %c0_i32 = arith.constant 0 : i32
    %c0_i32_0 = arith.constant 0 : i32
    return %arg0, %arg1, %c0_i32 : i32, i32, i32
  }
}

module attributes {stable_mosaic.version = 11 : i64} {
  func.func @level4_and_pool5_kernel(%arg0: i32, %arg1: i32, %arg2: memref<1x256x128xbf16, #tpu.memory_space<vmem>>, %arg3: memref<128x128xbf16, #tpu.memory_space<vmem>>, %arg4: memref<1x128xf32, #tpu.memory_space<vmem>>, %arg5: memref<1x128xf32, #tpu.memory_space<vmem>>, %arg6: memref<128x128xbf16, #tpu.memory_space<vmem>>, %arg7: memref<1x128xf32, #tpu.memory_space<vmem>>, %arg8: memref<1x128xf32, #tpu.memory_space<vmem>>, %arg9: memref<1x256x128xbf16, #tpu.memory_space<vmem>>, %arg10: memref<1x1x128xf32, #tpu.memory_space<vmem>>, %arg11: memref<1x128xf32, #tpu.memory_space<vmem>>) attributes {dimension_semantics = [#tpu.dimension_semantics<parallel>, #tpu.dimension_semantics<arbitrary>], iteration_bounds = array<i64: 2, 1>, scalar_prefetch = 0 : i64, scratch_operands = 1 : i64, tpu.core_type = #tpu.core_type<tc>, window_params = [{transform_indices = @transform_0, window_bounds = array<i64: 1, 256, 128>}, {pipeline_mode = #tpu.pipeline_mode<synchronous>, transform_indices = @transform_1, window_bounds = array<i64: 128, 128>}, {pipeline_mode = #tpu.pipeline_mode<synchronous>, transform_indices = @transform_2, window_bounds = array<i64: 1, 128>}, {pipeline_mode = #tpu.pipeline_mode<synchronous>, transform_indices = @transform_3, window_bounds = array<i64: 1, 128>}, {pipeline_mode = #tpu.pipeline_mode<synchronous>, transform_indices = @transform_4, window_bounds = array<i64: 128, 128>}, {pipeline_mode = #tpu.pipeline_mode<synchronous>, transform_indices = @transform_5, window_bounds = array<i64: 1, 128>}, {pipeline_mode = #tpu.pipeline_mode<synchronous>, transform_indices = @transform_6, window_bounds = array<i64: 1, 128>}, {transform_indices = @transform_7, window_bounds = array<i64: 1, 256, 128>}, {transform_indices = @transform_8, window_bounds = array<i64: 1, 1, 128>}]} {
    %c0_i32 = arith.constant 0 : i32
    %0 = arith.cmpi eq, %arg1, %c0_i32 : i32
    %1 = arith.extui %0 : i1 to i32
    %c0_i32_0 = arith.constant 0 : i32
    %2 = arith.cmpi ne, %1, %c0_i32_0 : i32
    scf.if %2 {
      %cst_20 = arith.constant 0.000000e+00 : f32
      %28 = vector.broadcast %cst_20 : f32 to vector<1x128xf32>
      %c0_21 = arith.constant 0 : index
      %c0_22 = arith.constant 0 : index
      %29 = vector.load %arg11[%c0_21, %c0_22] : memref<1x128xf32, #tpu.memory_space<vmem>>, vector<1x128xf32>
      tpu.vector_store %arg11[%c0_21, %c0_22], %28 {strides = array<i32>} : memref<1x128xf32, #tpu.memory_space<vmem>>, vector<1x128xf32>,
    } else {
    }
    %c0 = arith.constant 0 : index
    %c0_1 = arith.constant 0 : index
    %c0_2 = arith.constant 0 : index
    %3 = vector.load %arg2[%c0, %c0_1, %c0_2] : memref<1x256x128xbf16, #tpu.memory_space<vmem>>, vector<1x256x128xbf16>
    %4 = vector.shape_cast %3 : vector<1x256x128xbf16> to vector<256x128xbf16>
    %c0_3 = arith.constant 0 : index
    %c0_4 = arith.constant 0 : index
    %5 = vector.load %arg3[%c0_3, %c0_4] : memref<128x128xbf16, #tpu.memory_space<vmem>>, vector<128x128xbf16>
    %cst = arith.constant dense<0.000000e+00> : vector<256x128xf32>
    %6 = tpu.matmul %4, %5, %cst {dimension_numbers = #tpu.dot_dimension_numbers<[1], [0], [0], [1], [0, 0, 1, 1], [], []>} : vector<256x128xbf16>, vector<128x128xbf16>, vector<256x128xf32> -> vector<256x128xf32>
    %c0_5 = arith.constant 0 : index
    %c0_6 = arith.constant 0 : index
    %7 = vector.load %arg4[%c0_5, %c0_6] : memref<1x128xf32, #tpu.memory_space<vmem>>, vector<1x128xf32>
    %8 = vector.broadcast %7 : vector<1x128xf32> to vector<256x128xf32>
    %9 = arith.mulf %6, %8 : vector<256x128xf32>
    %c0_7 = arith.constant 0 : index
    %c0_8 = arith.constant 0 : index
    %10 = vector.load %arg5[%c0_7, %c0_8] : memref<1x128xf32, #tpu.memory_space<vmem>>, vector<1x128xf32>
    %11 = vector.broadcast %10 : vector<1x128xf32> to vector<256x128xf32>
    %12 = arith.addf %9, %11 : vector<256x128xf32>
    %cst_9 = arith.constant 0.000000e+00 : f32
    %13 = vector.broadcast %cst_9 : f32 to vector<256x128xf32>
    %14 = arith.maximumf %12, %13 : vector<256x128xf32>
    %15 = arith.truncf %14 : vector<256x128xf32> to vector<256x128xbf16>
    %c0_10 = arith.constant 0 : index
    %c0_11 = arith.constant 0 : index
    %c0_12 = arith.constant 0 : index
    %16 = vector.load %arg9[%c0_10, %c0_11, %c0_12] : memref<1x256x128xbf16, #tpu.memory_space<vmem>>, vector<1x256x128xbf16>
    %17 = vector.shape_cast %16 : vector<1x256x128xbf16> to vector<256x128xbf16>
    %18 = vector.shape_cast %15 : vector<256x128xbf16> to vector<1x256x128xbf16>
    tpu.vector_store %arg9[%c0_10, %c0_11, %c0_12], %18 {strides = array<i32>} : memref<1x256x128xbf16, #tpu.memory_space<vmem>>, vector<1x256x128xbf16>,
    %c0_13 = arith.constant 0 : index
    %c0_14 = arith.constant 0 : index
    %19 = vector.load %arg11[%c0_13, %c0_14] : memref<1x128xf32, #tpu.memory_space<vmem>>, vector<1x128xf32>
    %20 = arith.extf %4 : vector<256x128xbf16> to vector<256x128xf32>
    %cst_15 = arith.constant dense<0.000000e+00> : vector<128xf32>
    %21 = vector.multi_reduction <add>, %20, %cst_15 [0] : vector<256x128xf32> to vector<128xf32>
    %22 = vector.shape_cast %21 : vector<128xf32> to vector<1x128xf32>
    %23 = arith.addf %19, %22 : vector<1x128xf32>
    %c0_16 = arith.constant 0 : index
    %c0_17 = arith.constant 0 : index
    %24 = vector.load %arg11[%c0_16, %c0_17] : memref<1x128xf32, #tpu.memory_space<vmem>>, vector<1x128xf32>
    tpu.vector_store %arg11[%c0_16, %c0_17], %23 {strides = array<i32>} : memref<1x128xf32, #tpu.memory_space<vmem>>, vector<1x128xf32>,
    %c0_i32_18 = arith.constant 0 : i32
    %25 = arith.cmpi eq, %arg1, %c0_i32_18 : i32
    %26 = arith.extui %25 : i1 to i32
    %c0_i32_19 = arith.constant 0 : i32
    %27 = arith.cmpi ne, %26, %c0_i32_19 : i32
    scf.if %27 {
      %c0_20 = arith.constant 0 : index
      %c0_21 = arith.constant 0 : index
      %28 = vector.load %arg11[%c0_20, %c0_21] : memref<1x128xf32, #tpu.memory_space<vmem>>, vector<1x128xf32>
      %cst_22 = arith.constant 3.906250e-03 : f32
      %29 = vector.broadcast %cst_22 : f32 to vector<1x128xf32>
      %30 = arith.mulf %28, %29 : vector<1x128xf32>
      %c0_23 = arith.constant 0 : index
      %c0_24 = arith.constant 0 : index
      %31 = vector.load %arg6[%c0_23, %c0_24] : memref<128x128xbf16, #tpu.memory_space<vmem>>, vector<128x128xbf16>
      %32 = arith.extf %31 : vector<128x128xbf16> to vector<128x128xf32>
      %cst_25 = arith.constant dense<0.000000e+00> : vector<1x128xf32>
      %33 = tpu.matmul %30, %32, %cst_25 {dimension_numbers = #tpu.dot_dimension_numbers<[1], [0], [0], [1], [0, 0, 1, 1], [], []>} : vector<1x128xf32>, vector<128x128xf32>, vector<1x128xf32> -> vector<1x128xf32>
      %c0_26 = arith.constant 0 : index
      %c0_27 = arith.constant 0 : index
      %34 = vector.load %arg7[%c0_26, %c0_27] : memref<1x128xf32, #tpu.memory_space<vmem>>, vector<1x128xf32>
      %35 = arith.mulf %33, %34 : vector<1x128xf32>
      %c0_28 = arith.constant 0 : index
      %c0_29 = arith.constant 0 : index
      %36 = vector.load %arg8[%c0_28, %c0_29] : memref<1x128xf32, #tpu.memory_space<vmem>>, vector<1x128xf32>
      %37 = arith.addf %35, %36 : vector<1x128xf32>
      %cst_30 = arith.constant 0.000000e+00 : f32
      %38 = vector.broadcast %cst_30 : f32 to vector<1x128xf32>
      %39 = arith.maximumf %37, %38 : vector<1x128xf32>
      %c0_31 = arith.constant 0 : index
      %c0_32 = arith.constant 0 : index
      %c0_33 = arith.constant 0 : index
      %40 = vector.load %arg10[%c0_31, %c0_32, %c0_33] : memref<1x1x128xf32, #tpu.memory_space<vmem>>, vector<1x1x128xf32>
      %41 = vector.shape_cast %40 : vector<1x1x128xf32> to vector<1x128xf32>
      %42 = vector.shape_cast %39 : vector<1x128xf32> to vector<1x1x128xf32>
      tpu.vector_store %arg10[%c0_31, %c0_32, %c0_33], %42 {strides = array<i32>} : memref<1x1x128xf32, #tpu.memory_space<vmem>>, vector<1x1x128xf32>,
    } else {
    }
    return
  }
  func.func @transform_0(%arg0: i32, %arg1: i32) -> (i32, i32, i32) {
    %c0_i32 = arith.constant 0 : i32
    %c0_i32_0 = arith.constant 0 : i32
    return %arg0, %arg1, %c0_i32 : i32, i32, i32
  }
  func.func @transform_1(%arg0: i32, %arg1: i32) -> (i32, i32) {
    %c0_i32 = arith.constant 0 : i32
    %c0_i32_0 = arith.constant 0 : i32
    %c0_i32_1 = arith.constant 0 : i32
    return %c0_i32, %c0_i32_0 : i32, i32
  }
  func.func @transform_2(%arg0: i32, %arg1: i32) -> (i32, i32) {
    %c0_i32 = arith.constant 0 : i32
    %c0_i32_0 = arith.constant 0 : i32
    %c0_i32_1 = arith.constant 0 : i32
    return %c0_i32, %c0_i32_0 : i32, i32
  }
  func.func @transform_3(%arg0: i32, %arg1: i32) -> (i32, i32) {
    %c0_i32 = arith.constant 0 : i32
    %c0_i32_0 = arith.constant 0 : i32
    %c0_i32_1 = arith.constant 0 : i32
    return %c0_i32, %c0_i32_0 : i32, i32
  }
  func.func @transform_4(%arg0: i32, %arg1: i32) -> (i32, i32) {
    %c0_i32 = arith.constant 0 : i32
    %c0_i32_0 = arith.constant 0 : i32
    %c0_i32_1 = arith.constant 0 : i32
    return %c0_i32, %c0_i32_0 : i32, i32
  }
  func.func @transform_5(%arg0: i32, %arg1: i32) -> (i32, i32) {
    %c0_i32 = arith.constant 0 : i32
    %c0_i32_0 = arith.constant 0 : i32
    %c0_i32_1 = arith.constant 0 : i32
    return %c0_i32, %c0_i32_0 : i32, i32
  }
  func.func @transform_6(%arg0: i32, %arg1: i32) -> (i32, i32) {
    %c0_i32 = arith.constant 0 : i32
    %c0_i32_0 = arith.constant 0 : i32
    %c0_i32_1 = arith.constant 0 : i32
    return %c0_i32, %c0_i32_0 : i32, i32
  }
  func.func @transform_7(%arg0: i32, %arg1: i32) -> (i32, i32, i32) {
    %c0_i32 = arith.constant 0 : i32
    %c0_i32_0 = arith.constant 0 : i32
    return %arg0, %arg1, %c0_i32 : i32, i32, i32
  }
  func.func @transform_8(%arg0: i32, %arg1: i32) -> (i32, i32, i32) {
    %c0_i32 = arith.constant 0 : i32
    %c0_i32_0 = arith.constant 0 : i32
    %c0_i32_1 = arith.constant 0 : i32
    return %arg0, %c0_i32, %c0_i32_0 : i32, i32, i32
  }
}

module attributes {stable_mosaic.version = 11 : i64} {
  func.func @w_interp_merge_kernel(%arg0: i32, %arg1: i32, %arg2: memref<16x8xbf16, #tpu.memory_space<vmem>>, %arg3: memref<1x16x8x128xbf16, #tpu.memory_space<vmem>>, %arg4: memref<1x16x16x128xbf16, #tpu.memory_space<vmem>>, %arg5: memref<1x1x128xf32, #tpu.memory_space<vmem>>, %arg6: memref<1x16x16x128xf32, #tpu.memory_space<vmem>>) attributes {dimension_semantics = [#tpu.dimension_semantics<parallel>, #tpu.dimension_semantics<parallel>], iteration_bounds = array<i64: 2, 1>, scalar_prefetch = 0 : i64, scratch_operands = 0 : i64, tpu.core_type = #tpu.core_type<tc>, window_params = [{pipeline_mode = #tpu.pipeline_mode<synchronous>, transform_indices = @transform_0, window_bounds = array<i64: 16, 8>}, {transform_indices = @transform_1, window_bounds = array<i64: 1, 16, 8, 128>}, {transform_indices = @transform_2, window_bounds = array<i64: 1, 16, 16, 128>}, {transform_indices = @transform_3, window_bounds = array<i64: 1, 1, 128>}, {transform_indices = @transform_4, window_bounds = array<i64: 1, 16, 16, 128>}]} {
    %c0 = arith.constant 0 : index
    %c0_0 = arith.constant 0 : index
    %c0_1 = arith.constant 0 : index
    %c0_2 = arith.constant 0 : index
    %0 = vector.load %arg3[%c0, %c0_0, %c0_1, %c0_2] : memref<1x16x8x128xbf16, #tpu.memory_space<vmem>>, vector<1x16x8x128xbf16>
    %1 = vector.shape_cast %0 : vector<1x16x8x128xbf16> to vector<16x8x128xbf16>
    %c0_3 = arith.constant 0 : index
    %c0_4 = arith.constant 0 : index
    %2 = vector.load %arg2[%c0_3, %c0_4] : memref<16x8xbf16, #tpu.memory_space<vmem>>, vector<16x8xbf16>
    %3 = vector.shape_cast %2 : vector<16x8xbf16> to vector<1x16x8xbf16>
    %4 = vector.broadcast %3 : vector<1x16x8xbf16> to vector<16x16x8xbf16>
    %cst = arith.constant dense<0.000000e+00> : vector<16x16x128xf32>
    %5 = tpu.matmul %4, %1, %cst {dimension_numbers = #tpu.dot_dimension_numbers<[2], [1], [1], [2], [0, 0, 0, 1, 1, 2], [0], [0]>} : vector<16x16x8xbf16>, vector<16x8x128xbf16>, vector<16x16x128xf32> -> vector<16x16x128xf32>
    %c0_5 = arith.constant 0 : index
    %c0_6 = arith.constant 0 : index
    %c0_7 = arith.constant 0 : index
    %c0_8 = arith.constant 0 : index
    %6 = vector.load %arg4[%c0_5, %c0_6, %c0_7, %c0_8] : memref<1x16x16x128xbf16, #tpu.memory_space<vmem>>, vector<1x16x16x128xbf16>
    %7 = vector.shape_cast %6 : vector<1x16x16x128xbf16> to vector<16x16x128xbf16>
    %8 = arith.extf %7 : vector<16x16x128xbf16> to vector<16x16x128xf32>
    %9 = arith.mulf %5, %8 : vector<16x16x128xf32>
    %c0_9 = arith.constant 0 : index
    %c0_10 = arith.constant 0 : index
    %c0_11 = arith.constant 0 : index
    %10 = vector.load %arg5[%c0_9, %c0_10, %c0_11] : memref<1x1x128xf32, #tpu.memory_space<vmem>>, vector<1x1x128xf32>
    %11 = vector.broadcast %10 : vector<1x1x128xf32> to vector<16x16x128xf32>
    %12 = arith.addf %9, %11 : vector<16x16x128xf32>
    %c0_12 = arith.constant 0 : index
    %c0_13 = arith.constant 0 : index
    %c0_14 = arith.constant 0 : index
    %c0_15 = arith.constant 0 : index
    %13 = vector.load %arg6[%c0_12, %c0_13, %c0_14, %c0_15] : memref<1x16x16x128xf32, #tpu.memory_space<vmem>>, vector<1x16x16x128xf32>
    %14 = vector.shape_cast %13 : vector<1x16x16x128xf32> to vector<16x16x128xf32>
    %15 = vector.shape_cast %12 : vector<16x16x128xf32> to vector<1x16x16x128xf32>
    tpu.vector_store %arg6[%c0_12, %c0_13, %c0_14, %c0_15], %15 {strides = array<i32>} : memref<1x16x16x128xf32, #tpu.memory_space<vmem>>, vector<1x16x16x128xf32>,
    return
  }
  func.func @transform_0(%arg0: i32, %arg1: i32) -> (i32, i32) {
    %c0_i32 = arith.constant 0 : i32
    %c0_i32_0 = arith.constant 0 : i32
    %c0_i32_1 = arith.constant 0 : i32
    return %c0_i32, %c0_i32_0 : i32, i32
  }
  func.func @transform_1(%arg0: i32, %arg1: i32) -> (i32, i32, i32, i32) {
    %c0_i32 = arith.constant 0 : i32
    %c0_i32_0 = arith.constant 0 : i32
    %c0_i32_1 = arith.constant 0 : i32
    return %arg0, %arg1, %c0_i32, %c0_i32_0 : i32, i32, i32, i32
  }
  func.func @transform_2(%arg0: i32, %arg1: i32) -> (i32, i32, i32, i32) {
    %c0_i32 = arith.constant 0 : i32
    %c0_i32_0 = arith.constant 0 : i32
    %c0_i32_1 = arith.constant 0 : i32
    return %arg0, %arg1, %c0_i32, %c0_i32_0 : i32, i32, i32, i32
  }
  func.func @transform_3(%arg0: i32, %arg1: i32) -> (i32, i32, i32) {
    %c0_i32 = arith.constant 0 : i32
    %c0_i32_0 = arith.constant 0 : i32
    %c0_i32_1 = arith.constant 0 : i32
    return %arg0, %c0_i32, %c0_i32_0 : i32, i32, i32
  }
  func.func @transform_4(%arg0: i32, %arg1: i32) -> (i32, i32, i32, i32) {
    %c0_i32 = arith.constant 0 : i32
    %c0_i32_0 = arith.constant 0 : i32
    %c0_i32_1 = arith.constant 0 : i32
    return %arg0, %arg1, %c0_i32, %c0_i32_0 : i32, i32, i32, i32
  }
}

</mosaic_0001>

<bundles_post_ra>
// kernel: apn_forward.13
= control target key start
LH: loop header
LB: loop body
LE: loop exit
PB: predicated region body
PF: predicated region fallthrough
CT: control target
= control target key end

     0   :  { %s578_s1 = inlined_call_operand.vmem [shape: bf16[128,128], index: 1, kind: input, shape index: {}]   ;;  %s579_s2 = inlined_call_operand.vmem [shape: f32[1,128], index: 2, kind: input, shape index: {}]   ;;  %s580_s3 = inlined_call_operand.vmem [shape: f32[1,128], index: 3, kind: input, shape index: {}]   ;;  %s581_s0 = inlined_call_operand.vmem [shape: bf16[128,128], index: 0, kind: input, shape index: {}]   ;;  %s582_s4 = inlined_call_operand.vmem [shape: bf16[128,128], index: 4, kind: output, shape index: {}]  }
   0x1   :  { %v365_v0 = vld [vmem:[%s578_s1 + $0x38] sm:$0xff]  ;;  %v364_v1 = vld [vmem:[%s578_s1 + $0x30] sm:$0xff]  ;;  %v363_v2 = vld [vmem:[%s578_s1 + $0x28] sm:$0xff] }
   0x2   :  { %145 = vmatpush.bf16.msra.mxu0 %v365_v0  ;;  %413 = vmatpush.bf16.msra.mxu1 %v365_v0  ;;  %v362_v3 = vld [vmem:[%s578_s1 + $0x20] sm:$0xff]  ;;  %v361_v4 = vld [vmem:[%s578_s1 + $0x18] sm:$0xff]  ;;  %v360_v5 = vld [vmem:[%s578_s1 + $0x10] sm:$0xff] }
   0x3   :  { %414 = vmatpush.bf16.msra.mxu2 %v365_v0  ;;  %415 = vmatpush.bf16.msra.mxu3 %v365_v0  ;;  %v359_v6 = vld [vmem:[%s578_s1 + $0x8] sm:$0xff]  ;;  %v358_v7 = vld [vmem:[%s578_s1] sm:$0xff]  ;;  %v352_v9 = vld [vmem:[%s581_s0 + $0x10] sm:$0xff] }
   0x4   :  { %v350_v8 = vld [vmem:[%s581_s0] sm:$0xff]  ;;  %v356_v11 = vld [vmem:[%s581_s0 + $0x30] sm:$0xff]  ;;  %v351_v12 = vld [vmem:[%s581_s0 + $0x8] sm:$0xff] }
   0x5   :  { %v354_v10 = vld [vmem:[%s581_s0 + $0x20] sm:$0xff]  ;;  %v353_v13 = vld [vmem:[%s581_s0 + $0x18] sm:$0xff]  ;;  %v355_v14 = vld [vmem:[%s581_s0 + $0x28] sm:$0xff] }
   0x6   :  { %146 = vmatpush.bf16.msra.mxu0 %v364_v1  ;;  %416 = vmatpush.bf16.msra.mxu1 %v364_v1  ;;  %v357_v15 = vld [vmem:[%s581_s0 + $0x38] sm:$0xff]  ;;  %v515_v18 = vld [vmem:[%s579_s2] ss:$0 sm:$0xff] }
   0x7   :  { %417 = vmatpush.bf16.msra.mxu2 %v364_v1  ;;  %418 = vmatpush.bf16.msra.mxu3 %v364_v1  ;;  %v521_v20 = vld [vmem:[%s580_s3] ss:$0 sm:$0xff] }
   0xa   :  { %147 = vmatpush.bf16.msra.mxu0 %v363_v2  ;;  %419 = vmatpush.bf16.msra.mxu1 %v363_v2 }
   0xb   :  { %420 = vmatpush.bf16.msra.mxu2 %v363_v2  ;;  %421 = vmatpush.bf16.msra.mxu3 %v363_v2 }
   0xe   :  { %148 = vmatpush.bf16.msra.mxu0 %v362_v3  ;;  %422 = vmatpush.bf16.msra.mxu1 %v362_v3 }
   0xf   :  { %423 = vmatpush.bf16.msra.mxu2 %v362_v3  ;;  %424 = vmatpush.bf16.msra.mxu3 %v362_v3 }
  0x12   :  { %149 = vmatpush.bf16.msra.mxu0 %v361_v4  ;;  %425 = vmatpush.bf16.msra.mxu1 %v361_v4 }
  0x13   :  { %426 = vmatpush.bf16.msra.mxu2 %v361_v4  ;;  %427 = vmatpush.bf16.msra.mxu3 %v361_v4 }
  0x16   :  { %150 = vmatpush.bf16.msra.mxu0 %v360_v5  ;;  %428 = vmatpush.bf16.msra.mxu1 %v360_v5 }
  0x17   :  { %429 = vmatpush.bf16.msra.mxu2 %v360_v5  ;;  %430 = vmatpush.bf16.msra.mxu3 %v360_v5 }
  0x1a   :  { %151 = vmatpush.bf16.msra.mxu0 %v359_v6  ;;  %431 = vmatpush.bf16.msra.mxu1 %v359_v6 }
  0x1b   :  { %432 = vmatpush.bf16.msra.mxu2 %v359_v6  ;;  %433 = vmatpush.bf16.msra.mxu3 %v359_v6 }
  0x1e   :  { %152 = vmatpush.bf16.msra.mxu0 %v358_v7  ;;  %434 = vmatpush.bf16.msra.mxu1 %v358_v7 }
  0x1f   :  { %435 = vmatpush.bf16.msra.mxu2 %v358_v7  ;;  %436 = vmatpush.bf16.msra.mxu3 %v358_v7 }
  0x21   :  { %153 = vmatmul.bf16.vlgmr.msra.gmra.mxu0 %v350_v8  ;;  %163 = vmatmul.bf16.vlgmr.msra.gmra.mxu1 %v352_v9 }
  0x22   :  { %173 = vmatmul.bf16.vlgmr.msra.gmra.mxu2 %v354_v10  ;;  %183 = vmatmul.bf16.vlgmr.msra.gmra.mxu3 %v356_v11 }
  0x31   :  { %158 = vmatmul.bf16.gmra.mxu0 %v351_v12  ;;  %168 = vmatmul.bf16.gmra.mxu1 %v353_v13 }
  0x32   :  { %178 = vmatmul.bf16.gmra.mxu2 %v355_v14  ;;  %188 = vmatmul.bf16.gmra.mxu3 %v357_v15 }
  0x9e   :  { %v154_v16 = vpop.f32.mrf.mxu0  ;;  %v164_v17 = vpop.f32.mrf.mxu1 }
  0x9f   :  { %v198_v19 = vmul.f32 %v515_v18, %v154_v16  ;;  %v202_v21 = vmul.f32 %v515_v18, %v164_v17 }
  0xa1   :  { %v218_v26 = vadd.f32 %v521_v20, %v198_v19  ;;  %v222_v27 = vadd.f32 %v521_v20, %v202_v21 }
  0xa3   :  { %v234_v34 = vmax.f32 %v218_v26, 0.0  ;;  %v238_v35 = vmax.f32 %v222_v27, 0.0 }
  0xa5   :  { %v174_v22 = vpop.f32.mrf.mxu2  ;;  %v184_v23 = vpop.f32.mrf.mxu3 }
  0xa6   :  { %v156_v24 = vpop.f32.mrf.mxu0  ;;  %v166_v25 = vpop.f32.mrf.mxu1  ;;  %v206_v32 = vmul.f32 %v515_v18, %v174_v22  ;;  %v210_v33 = vmul.f32 %v515_v18, %v184_v23 }
  0xa7   :  { %v199_v28 = vmul.f32 %v515_v18, %v156_v24  ;;  %v203_v29 = vmul.f32 %v515_v18, %v166_v25 }
  0xa8   :  { %v226_v42 = vadd.f32 %v521_v20, %v206_v32  ;;  %v230_v43 = vadd.f32 %v521_v20, %v210_v33 }
  0xa9   :  { %v219_v30 = vadd.f32 %v521_v20, %v199_v28  ;;  %v223_v31 = vadd.f32 %v521_v20, %v203_v29 }
  0xaa   :  { %v242_v50 = vmax.f32 %v226_v42, 0.0  ;;  %v246_v51 = vmax.f32 %v230_v43, 0.0 }
  0xab   :  { %v235_v36 = vmax.f32 %v219_v30, 0.0  ;;  %v239_v37 = vmax.f32 %v223_v31, 0.0 }
  0xad   :  { %v369_v38 = vpack.c.bf16 %v235_v36, %v234_v34  ;;  %v379_v39 = vpack.c.bf16 %v239_v37, %v238_v35  ;;  %v176_v40 = vpop.f32.mrf.mxu2  ;;  %v186_v41 = vpop.f32.mrf.mxu3 }
  0xae   :  { %v207_v44 = vmul.f32 %v515_v18, %v176_v40  ;;  %v211_v45 = vmul.f32 %v515_v18, %v186_v41  ;;  %v159_v46 = vpop.f32.mrf.mxu0  ;;  %v169_v47 = vpop.f32.mrf.mxu1 }
  0xaf   :  { %370 = vst [vmem:[%s582_s4] sm:$0xff] %v369_v38   ;;  %v200_v54 = vmul.f32 %v515_v18, %v159_v46  ;;  %v204_v55 = vmul.f32 %v515_v18, %v169_v47 }
  0xb0   :  { %407 = vst [vmem:[%s582_s4 + $0x10] sm:$0xff] %v379_v39   ;;  %v227_v48 = vadd.f32 %v521_v20, %v207_v44  ;;  %v231_v49 = vadd.f32 %v521_v20, %v211_v45 }
  0xb1   :  { %v220_v62 = vadd.f32 %v521_v20, %v200_v54  ;;  %v224_v63 = vadd.f32 %v521_v20, %v204_v55 }
  0xb2   :  { %v243_v52 = vmax.f32 %v227_v48, 0.0  ;;  %v247_v53 = vmax.f32 %v231_v49, 0.0 }
  0xb3   :  { %v236_v6 = vmax.f32 %v220_v62, 0.0  ;;  %v240_v7 = vmax.f32 %v224_v63, 0.0 }
  0xb4   :  { %v389_v56 = vpack.c.bf16 %v243_v52, %v242_v50  ;;  %v399_v57 = vpack.c.bf16 %v247_v53, %v246_v51 }
  0xb5   :  { %v179_v58 = vpop.f32.mrf.mxu2  ;;  %v189_v59 = vpop.f32.mrf.mxu3 }
  0xb6   :  { %409 = vst [vmem:[%s582_s4 + $0x20] sm:$0xff] %v389_v56   ;;  %v161_v60 = vpop.f32.mrf.mxu0  ;;  %v171_v61 = vpop.f32.mrf.mxu1  ;;  %v208_v4 = vmul.f32 %v515_v18, %v179_v58  ;;  %v212_v5 = vmul.f32 %v515_v18, %v189_v59 }
  0xb7   :  { %411 = vst [vmem:[%s582_s4 + $0x30] sm:$0xff] %v399_v57   ;;  %v201_v0 = vmul.f32 %v515_v18, %v161_v60  ;;  %v205_v1 = vmul.f32 %v515_v18, %v171_v61 }
  0xb8   :  { %v228_v14 = vadd.f32 %v521_v20, %v208_v4  ;;  %v232_v15 = vadd.f32 %v521_v20, %v212_v5 }
  0xb9   :  { %v221_v2 = vadd.f32 %v521_v20, %v201_v0  ;;  %v225_v3 = vadd.f32 %v521_v20, %v205_v1 }
  0xba   :  { %v244_v22 = vmax.f32 %v228_v14, 0.0  ;;  %v248_v23 = vmax.f32 %v232_v15, 0.0 }
  0xbb   :  { %v237_v8 = vmax.f32 %v221_v2, 0.0  ;;  %v241_v9 = vmax.f32 %v225_v3, 0.0 }
  0xbd   :  { %v374_v10 = vpack.c.bf16 %v237_v8, %v236_v6  ;;  %v384_v11 = vpack.c.bf16 %v241_v9, %v240_v7  ;;  %v181_v12 = vpop.f32.mrf.mxu2  ;;  %v191_v13 = vpop.f32.mrf.mxu3 }
  0xbe   :  { %v209_v16 = vmul.f32 %v515_v18, %v181_v12  ;;  %v213_v17 = vmul.f32 %v515_v18, %v191_v13 }
  0xbf   :  { %406 = vst [vmem:[%s582_s4 + $0x8] sm:$0xff] %v374_v10  }
  0xc0   :  { %408 = vst [vmem:[%s582_s4 + $0x18] sm:$0xff] %v384_v11   ;;  %v229_v19 = vadd.f32 %v521_v20, %v209_v16  ;;  %v233_v21 = vadd.f32 %v521_v20, %v213_v17 }
  0xc2   :  { %v245_v24 = vmax.f32 %v229_v19, 0.0  ;;  %v249_v25 = vmax.f32 %v233_v21, 0.0 }
  0xc4   :  { %v394_v26 = vpack.c.bf16 %v245_v24, %v244_v22  ;;  %v404_v27 = vpack.c.bf16 %v249_v25, %v248_v23 }
  0xc6   :  { %410 = vst [vmem:[%s582_s4 + $0x28] sm:$0xff] %v394_v26  }
  0xc7   :  { %412 = vst [vmem:[%s582_s4 + $0x38] sm:$0xff] %v404_v27  }

// kernel: apn_forward.14
= control target key start
LH: loop header
LB: loop body
LE: loop exit
PB: predicated region body
PF: predicated region fallthrough
CT: control target
= control target key end

     0   :  { %s286_s1 = inlined_call_operand.vmem [shape: bf16[128,128], index: 1, kind: input, shape index: {}]   ;;  %s287_s2 = inlined_call_operand.vmem [shape: f32[1,128], index: 2, kind: input, shape index: {}]   ;;  %s288_s3 = inlined_call_operand.vmem [shape: f32[1,128], index: 3, kind: input, shape index: {}]   ;;  %s289_s0 = inlined_call_operand.vmem [shape: bf16[32,128], index: 0, kind: input, shape index: {}]   ;;  %s290_s4 = inlined_call_operand.vmem [shape: bf16[32,128], index: 4, kind: output, shape index: {}]  }
   0x1   :  { %v197_v0 = vld [vmem:[%s286_s1 + $0x38] sm:$0xff]  ;;  %v196_v1 = vld [vmem:[%s286_s1 + $0x30] sm:$0xff]  ;;  %v195_v2 = vld [vmem:[%s286_s1 + $0x28] sm:$0xff] }
   0x2   :  { %97 = vmatpush.bf16.msra.mxu0 %v197_v0  ;;  %209 = vmatpush.bf16.msra.mxu1 %v197_v0  ;;  %v194_v3 = vld [vmem:[%s286_s1 + $0x20] sm:$0xff]  ;;  %v193_v4 = vld [vmem:[%s286_s1 + $0x18] sm:$0xff]  ;;  %v192_v5 = vld [vmem:[%s286_s1 + $0x10] sm:$0xff] }
   0x3   :  { %v191_v6 = vld [vmem:[%s286_s1 + $0x8] sm:$0xff]  ;;  %v190_v7 = vld [vmem:[%s286_s1] sm:$0xff] }
   0x4   :  { %v188_v8 = vld [vmem:[%s289_s0] sm:$0xff]  ;;  %v189_v9 = vld [vmem:[%s289_s0 + $0x8] sm:$0xff] }
   0x5   :  { %v217_v12 = vld [vmem:[%s287_s2] ss:$0 sm:$0xff] }
   0x6   :  { %98 = vmatpush.bf16.msra.mxu0 %v196_v1  ;;  %210 = vmatpush.bf16.msra.mxu1 %v196_v1  ;;  %v218_v14 = vld [vmem:[%s288_s3] ss:$0 sm:$0xff] }
   0xa   :  { %99 = vmatpush.bf16.msra.mxu0 %v195_v2  ;;  %211 = vmatpush.bf16.msra.mxu1 %v195_v2 }
   0xe   :  { %100 = vmatpush.bf16.msra.mxu0 %v194_v3  ;;  %212 = vmatpush.bf16.msra.mxu1 %v194_v3 }
  0x12   :  { %101 = vmatpush.bf16.msra.mxu0 %v193_v4  ;;  %213 = vmatpush.bf16.msra.mxu1 %v193_v4 }
  0x16   :  { %102 = vmatpush.bf16.msra.mxu0 %v192_v5  ;;  %214 = vmatpush.bf16.msra.mxu1 %v192_v5 }
  0x1a   :  { %103 = vmatpush.bf16.msra.mxu0 %v191_v6  ;;  %215 = vmatpush.bf16.msra.mxu1 %v191_v6 }
  0x1e   :  { %104 = vmatpush.bf16.msra.mxu0 %v190_v7  ;;  %216 = vmatpush.bf16.msra.mxu1 %v190_v7 }
  0x21   :  { %105 = vmatmul.bf16.vlgmr.msra.gmra.mxu0 %v188_v8  ;;  %110 = vmatmul.bf16.vlgmr.msra.gmra.mxu1 %v189_v9 }
  0x9e   :  { %v106_v10 = vpop.f32.mrf.mxu0  ;;  %v111_v11 = vpop.f32.mrf.mxu1 }
  0x9f   :  { %v120_v13 = vmul.f32 %v217_v12, %v106_v10  ;;  %v122_v15 = vmul.f32 %v217_v12, %v111_v11 }
  0xa1   :  { %v128_v18 = vadd.f32 %v218_v14, %v120_v13  ;;  %v130_v19 = vadd.f32 %v218_v14, %v122_v15 }
  0xa3   :  { %v132_v24 = vmax.f32 %v128_v18, 0.0  ;;  %v134_v25 = vmax.f32 %v130_v19, 0.0 }
  0xa6   :  { %v108_v16 = vpop.f32.mrf.mxu0  ;;  %v113_v17 = vpop.f32.mrf.mxu1 }
  0xa7   :  { %v121_v20 = vmul.f32 %v217_v12, %v108_v16  ;;  %v123_v21 = vmul.f32 %v217_v12, %v113_v17 }
  0xa9   :  { %v129_v22 = vadd.f32 %v218_v14, %v121_v20  ;;  %v131_v23 = vadd.f32 %v218_v14, %v123_v21 }
  0xab   :  { %v133_v26 = vmax.f32 %v129_v22, 0.0  ;;  %v135_v27 = vmax.f32 %v131_v23, 0.0 }
  0xad   :  { %v201_v28 = vpack.c.bf16 %v133_v26, %v132_v24  ;;  %v206_v29 = vpack.c.bf16 %v135_v27, %v134_v25 }
  0xaf   :  { %202 = vst [vmem:[%s290_s4] sm:$0xff] %v201_v28  }
  0xb0   :  { %208 = vst [vmem:[%s290_s4 + $0x8] sm:$0xff] %v206_v29  }

// kernel: apn_forward.15
= control target key start
LH: loop header
LB: loop body
LE: loop exit
PB: predicated region body
PF: predicated region fallthrough
CT: control target
= control target key end

     0   :  { %s363_s1 = inlined_call_operand.vmem [shape: bf16[256,128], index: 1, kind: input, shape index: {}]   ;;  %s364_s0 = inlined_call_operand.vmem [shape: bf16[8,256], index: 0, kind: input, shape index: {}]   ;;  %s365_s2 = inlined_call_operand.vmem [shape: f32[1,128], index: 2, kind: input, shape index: {}]   ;;  %s366_s3 = inlined_call_operand.vmem [shape: f32[1,128], index: 3, kind: input, shape index: {}]   ;;  %s367_s4 = inlined_call_operand.vmem [shape: bf16[8,128], index: 4, kind: output, shape index: {}]  }
   0x1   :  { %v267_v0 = vld [vmem:[%s363_s1 + $0x38] sm:$0xff]  ;;  %v266_v2 = vld [vmem:[%s363_s1 + $0x30] sm:$0xff]  ;;  %v265_v4 = vld [vmem:[%s363_s1 + $0x28] sm:$0xff] }
   0x2   :  { %v275_v1 = vld [vmem:[%s363_s1 + $0x78] sm:$0xff]  ;;  %153 = vmatpush.bf16.msra.mxu0 %v267_v0  ;;  %v274_v3 = vld [vmem:[%s363_s1 + $0x70] sm:$0xff]  ;;  %v273_v5 = vld [vmem:[%s363_s1 + $0x68] sm:$0xff] }
   0x3   :  { %166 = vmatpush.bf16.msra.mxu1 %v275_v1  ;;  %v264_v6 = vld [vmem:[%s363_s1 + $0x20] sm:$0xff]  ;;  %v263_v8 = vld [vmem:[%s363_s1 + $0x18] sm:$0xff]  ;;  %v262_v10 = vld [vmem:[%s363_s1 + $0x10] sm:$0xff] }
   0x4   :  { %v272_v7 = vld [vmem:[%s363_s1 + $0x60] sm:$0xff]  ;;  %v271_v9 = vld [vmem:[%s363_s1 + $0x58] sm:$0xff]  ;;  %v270_v11 = vld [vmem:[%s363_s1 + $0x50] sm:$0xff] }
   0x5   :  { %v261_v12 = vld [vmem:[%s363_s1 + $0x8] sm:$0xff]  ;;  %v17_v14 = vld [vmem:[%s364_s0] sm:$0xff] }
   0x6   :  { %154 = vmatpush.bf16.msra.mxu0 %v266_v2  ;;  %v269_v13 = vld [vmem:[%s363_s1 + $0x48] sm:$0xff]  ;;  %v51_v15 = vunpack.c.l.b16 %v17_v14  ;;  %v52_v16 = vunpack.c.h.b16 %v17_v14  ;;  %v260_v17 = vld [vmem:[%s363_s1] sm:$0xff] }
   0x7   :  { %167 = vmatpush.bf16.msra.mxu1 %v274_v3  ;;  %v268_v18 = vld [vmem:[%s363_s1 + $0x40] sm:$0xff] }
   0x8   :  { %v53_v19 = vpack.c.b16 %v51_v15, %v51_v15  ;;  %v54_v20 = vpack.c.b16 %v52_v16, %v52_v16  ;;  %v276_v21 = vld [vmem:[%s365_s2] ss:$0 sm:$0xff] }
   0x9   :  { %v277_v25 = vld [vmem:[%s366_s3] ss:$0 sm:$0xff] }
   0xa   :  { %155 = vmatpush.bf16.msra.mxu0 %v265_v4 }
   0xb   :  { %168 = vmatpush.bf16.msra.mxu1 %v273_v5 }
   0xe   :  { %156 = vmatpush.bf16.msra.mxu0 %v264_v6 }
   0xf   :  { %169 = vmatpush.bf16.msra.mxu1 %v272_v7 }
  0x12   :  { %157 = vmatpush.bf16.msra.mxu0 %v263_v8 }
  0x13   :  { %170 = vmatpush.bf16.msra.mxu1 %v271_v9 }
  0x16   :  { %158 = vmatpush.bf16.msra.mxu0 %v262_v10 }
  0x17   :  { %171 = vmatpush.bf16.msra.mxu1 %v270_v11 }
  0x1a   :  { %159 = vmatpush.bf16.msra.mxu0 %v261_v12 }
  0x1b   :  { %172 = vmatpush.bf16.msra.mxu1 %v269_v13 }
  0x1e   :  { %160 = vmatpush.bf16.msra.mxu0 %v260_v17 }
  0x1f   :  { %173 = vmatpush.bf16.msra.mxu1 %v268_v18 }
  0x21   :  { %161 = vmatmul.bf16.vlgmr.msra.gmra.mxu0 %v53_v19 }
  0x22   :  { %174 = vmatmul.bf16.vlgmr.msra.gmra.mxu1 %v54_v20 }
  0x9e   :  { %v162_v22 = vpop.f32.mrf.mxu0 }
  0x9f   :  { %v175_v23 = vpop.f32.mrf.mxu1 }
  0xa0   :  { %v176_v24 = vadd.f32 %v175_v23, %v162_v22 }
  0xa2   :  { %v183_v26 = vmul.f32 %v276_v21, %v176_v24 }
  0xa4   :  { %v188_v27 = vadd.f32 %v277_v25, %v183_v26 }
  0xa6   :  { %v189_v28 = vmax.f32 %v188_v27, 0.0  ;;  %v164_v29 = vpop.f32.mrf.mxu0 }
  0xa7   :  { %v177_v30 = vpop.f32.mrf.mxu1 }
  0xa8   :  { %v190_v31 = vpack.c.bf16 %v189_v28, %v189_v28 }
  0xaa   :  { %191 = vst [vmem:[%s367_s4] sm:$0xf] %v190_v31 }

// kernel: apn_forward.21
= control target key start
LH: loop header
LB: loop body
LE: loop exit
PB: predicated region body
PF: predicated region fallthrough
CT: control target
= control target key end

     0   :  { %s522_s12 = smov 0   ;;  %s524_s13 = smov 0   ;;  %s565_s0 = inlined_call_operand.vmem [shape: bf16[4,2], index: 0, kind: input, shape index: {}]   ;;  %s566_s1 = inlined_call_operand.vmem [shape: bf16[2,4,2,128], index: 1, kind: input, shape index: {}]   ;;  %s567_s2 = inlined_call_operand.vmem [shape: bf16[2,4,4,128], index: 2, kind: input, shape index: {}, may-alias: {2,3}]   ;;  %s568_s3 = inlined_call_operand.vmem [shape: bf16[2,4,4,128], index: 3, kind: output, shape index: {}, may-alias: {2,3}]  }
   0x1   :  { %s526_s14 = smov 0  }
   0x2 LB: > { %s25_s15 = sadd.s32 1, %s496_s13  ;;  %p440_p0 = scmp.ge.s32.totalorder %s500_s14, 1  ;;  %s500_s14 = sphi %s526_s14, %s13_s14   ;;  %s496_s13 = sphi %s524_s13, %s570_s13   ;;  %s492_s12 = sphi %s522_s12, %s569_s12  }
   0x3   : > { %p27_p1 = scmp.ge.s32.totalorder %s25_s15, 2  ;;  %p174_p2 = scmp.lt.s32.totalorder %s500_s14, 3 }
   0x5   : > { %s572_s15 = smov (%p27_p1, %s25_s15), 0  ;;  %p175_p3 = pnand %p440_p0, %p174_p2 }
   0x6   : > { %p215_p4 = scmp.lt.s32.totalorder (!%p175_p3), %s492_s12, 1 }
   0x7   : > { %178 = sbr.rel (%p175_p3) target bundleno = 161 (0xa1), region = 32 }
   0xc   : > { %s574_s12 = smov (!%p215_p4, %s492_s12), 1  ;;  %vm261_vm0 = vcmask 1040384   ;;  %v248_v8 = vld [vmem:[%s565_s0] sm:$0x3]  ;;  %vm257_vm1 = vcmask 15360  }
   0xd   : > { %s441_s16 = sshll.u32 %s574_s12, 2  ;;  %s452_s22 = sshll.u32 %s574_s12, 3 }
   0xe   : > { %s221_s19 = scalar_lea.vmem %s566_s1, %s441_s16  ;;  %s231_s25 = scalar_lea.vmem %s567_s2, %s452_s22 }
   0xf   : > { %v244_v0 = vld [vmem:[%s221_s19] sm:$0x1]  ;;  %v245_v1 = vld [vmem:[%s221_s19 + $0x1] sm:$0x1]  ;;  %v246_v2 = vld [vmem:[%s221_s19 + $0x2] sm:$0x1]  ;;  %s241_s28 = scalar_lea.vmem %s568_s3, %s452_s22 }
  0x10   : > { %v263_v3 = vsel %vm261_vm0, %v244_v0, 0  ;;  %v279_v4 = vsel %vm261_vm0, %v245_v1, 0  ;;  %v295_v5 = vsel %vm261_vm0, %v246_v2, 0  ;;  %v247_v6 = vld [vmem:[%s221_s19 + $0x3] sm:$0x1] }
  0x11   : > { %272 = vmatpush.bf16.msra.mxu0 %v263_v3  ;;  %288 = vmatpush.bf16.msra.mxu1 %v279_v4  ;;  %v311_v7 = vsel %vm261_vm0, %v247_v6, 0  ;;  %v249_v9 = vld [vmem:[%s231_s25] sm:$0x3]  ;;  %v250_v10 = vld [vmem:[%s231_s25 + $0x2] sm:$0x3] }
  0x12   : > { %304 = vmatpush.bf16.msra.mxu2 %v295_v5  ;;  %320 = vmatpush.bf16.msra.mxu3 %v311_v7  ;;  %v253_v11 = vunpack.c.l.bf16 %v249_v9  ;;  %v254_v12 = vunpack.c.l.bf16 %v250_v10  ;;  %v251_v17 = vld [vmem:[%s231_s25 + $0x4] sm:$0x3]  ;;  %v252_v18 = vld [vmem:[%s231_s25 + $0x6] sm:$0x3] }
  0x13   : > { %v255_v21 = vunpack.c.l.bf16 %v251_v17  ;;  %v256_v22 = vunpack.c.l.bf16 %v252_v18 }
  0x14   : > { %446 = vmatmul.msk.bf16.vlgmr.msra.gmra.mxu0 %vm257_vm1, %v248_v8  ;;  %447 = vmatmul.msk.bf16.vlgmr.msra.gmra.mxu1 %vm257_vm1, %v248_v8 }
  0x15   : > { %448 = vmatmul.msk.bf16.vlgmr.msra.gmra.mxu2 %vm257_vm1, %v248_v8  ;;  %449 = vmatmul.msk.bf16.vlgmr.msra.gmra.mxu3 %vm257_vm1, %v248_v8 }
  0x91   : > { %v274_v13 = vpop.f32.mrf.mxu0  ;;  %v290_v14 = vpop.f32.mrf.mxu1 }
  0x92   : > { %v275_v15 = vadd.f32 %v274_v13, %v253_v11  ;;  %v291_v16 = vadd.f32 %v290_v14, %v254_v12 }
  0x94   : > { %v326_v19 = vpack.c.bf16 %v275_v15, %v275_v15  ;;  %v327_v20 = vpack.c.bf16 %v291_v16, %v291_v16 }
  0x96   : > { %330 = vst [vmem:[%s241_s28] sm:$0x3] %v326_v19 }
  0x97   : > { %331 = vst [vmem:[%s241_s28 + $0x2] sm:$0x3] %v327_v20 }
  0x98   : > { %v306_v23 = vpop.f32.mrf.mxu2  ;;  %v322_v24 = vpop.f32.mrf.mxu3 }
  0x99   : > { %v307_v25 = vadd.f32 %v306_v23, %v255_v21  ;;  %v323_v26 = vadd.f32 %v322_v24, %v256_v22  ;;  %v276_v27 = vpop.f32.mrf.mxu0  ;;  %v292_v28 = vpop.f32.mrf.mxu1 }
  0x9b   : > { %v328_v29 = vpack.c.bf16 %v307_v25, %v307_v25  ;;  %v329_v30 = vpack.c.bf16 %v323_v26, %v323_v26 }
  0x9d   : > { %332 = vst [vmem:[%s241_s28 + $0x4] sm:$0x3] %v328_v29 }
  0x9e   : > { %333 = vst [vmem:[%s241_s28 + $0x6] sm:$0x3] %v329_v30 }
  0xa0   : > { %v308_v31 = vpop.f32.mrf.mxu2  ;;  %v324_v32 = vpop.f32.mrf.mxu3 }
  0xa1 PF: > { %s13_s14 = sadd.s32 1, %s500_s14   ;;  %s569_s12 = smov %s496_s13 }
  0xa2   : > { %p10_p5 = scmp.ge.s32.totalorder %s13_s14, 4   ;;  %s570_s13 = smov %s572_s15 }
  0xa4   :  { %12 = sbr.rel (!%p10_p5) target bundleno = 2 (0x2), region = 65 }

// kernel: apn_forward.16
= control target key start
LH: loop header
LB: loop body
LE: loop exit
PB: predicated region body
PF: predicated region fallthrough
CT: control target
= control target key end

     0   :  { %s215_s1 = inlined_call_operand.vmem [shape: bf16[128,128], index: 1, kind: input, shape index: {}]   ;;  %s216_s2 = inlined_call_operand.vmem [shape: f32[1,128], index: 2, kind: input, shape index: {}]   ;;  %s217_s3 = inlined_call_operand.vmem [shape: f32[1,128], index: 3, kind: input, shape index: {}]   ;;  %s218_s0 = inlined_call_operand.vmem [shape: bf16[8,128], index: 0, kind: input, shape index: {}]   ;;  %s219_s4 = inlined_call_operand.vmem [shape: bf16[8,128], index: 4, kind: output, shape index: {}]  }
   0x1   :  { %v151_v0 = vld [vmem:[%s215_s1 + $0x38] sm:$0xff]  ;;  %v150_v1 = vld [vmem:[%s215_s1 + $0x30] sm:$0xff]  ;;  %v149_v2 = vld [vmem:[%s215_s1 + $0x28] sm:$0xff] }
   0x2   :  { %82 = vmatpush.bf16.msra.mxu0 %v151_v0  ;;  %v148_v3 = vld [vmem:[%s215_s1 + $0x20] sm:$0xff]  ;;  %v147_v4 = vld [vmem:[%s215_s1 + $0x18] sm:$0xff]  ;;  %v146_v5 = vld [vmem:[%s215_s1 + $0x10] sm:$0xff] }
   0x3   :  { %v145_v6 = vld [vmem:[%s215_s1 + $0x8] sm:$0xff]  ;;  %v144_v7 = vld [vmem:[%s215_s1] sm:$0xff] }
   0x4   :  { %v17_v8 = vld [vmem:[%s218_s0] sm:$0xf] }
   0x5   :  { %v152_v9 = vld [vmem:[%s216_s2] ss:$0 sm:$0xff] }
   0x6   :  { %83 = vmatpush.bf16.msra.mxu0 %v150_v1  ;;  %v153_v10 = vld [vmem:[%s217_s3] ss:$0 sm:$0xff] }
   0xa   :  { %84 = vmatpush.bf16.msra.mxu0 %v149_v2 }
   0xe   :  { %85 = vmatpush.bf16.msra.mxu0 %v148_v3 }
  0x12   :  { %86 = vmatpush.bf16.msra.mxu0 %v147_v4 }
  0x16   :  { %87 = vmatpush.bf16.msra.mxu0 %v146_v5 }
  0x1a   :  { %88 = vmatpush.bf16.msra.mxu0 %v145_v6 }
  0x1e   :  { %89 = vmatpush.bf16.msra.mxu0 %v144_v7 }
  0x21   :  { %90 = vmatmul.bf16.vlgmr.msra.gmra.mxu0 %v17_v8 }
  0x9e   :  { %v91_v11 = vpop.f32.mrf.mxu0 }
  0x9f   :  { %v99_v12 = vmul.f32 %v152_v9, %v91_v11 }
  0xa1   :  { %v104_v13 = vadd.f32 %v153_v10, %v99_v12 }
  0xa3   :  { %v105_v14 = vmax.f32 %v104_v13, 0.0 }
  0xa5   :  { %v106_v15 = vpack.c.bf16 %v105_v14, %v105_v14 }
  0xa6   :  { %v93_v16 = vpop.f32.mrf.mxu0 }
  0xa7   :  { %107 = vst [vmem:[%s219_s4] sm:$0xf] %v106_v15 }

// kernel: apn_forward.22
= control target key start
LH: loop header
LB: loop body
LE: loop exit
PB: predicated region body
PF: predicated region fallthrough
CT: control target
= control target key end

     0   :  { %s441_s9 = smov 0   ;;  %s443_s10 = smov 0   ;;  %s477_s0 = inlined_call_operand.vmem [shape: bf16[8,4], index: 0, kind: input, shape index: {}]   ;;  %s478_s1 = inlined_call_operand.vmem [shape: bf16[2,4,512], index: 1, kind: input, shape index: {}]   ;;  %s479_s2 = inlined_call_operand.vmem [shape: bf16[2,8,512], index: 2, kind: output, shape index: {}]  }
   0x1   :  { %s445_s11 = smov 0  }
   0x2 LB: > { %s24_s12 = sadd.s32 1, %s420_s10  ;;  %p365_p0 = scmp.ge.s32.totalorder %s424_s11, 1  ;;  %s424_s11 = sphi %s445_s11, %s12_s11   ;;  %s420_s10 = sphi %s443_s10, %s481_s10   ;;  %s416_s9 = sphi %s441_s9, %s480_s9  }
   0x3   : > { %p26_p1 = scmp.ge.s32.totalorder %s24_s12, 2  ;;  %p135_p2 = scmp.lt.s32.totalorder %s424_s11, 3 }
   0x5   : > { %s483_s12 = smov (%p26_p1, %s24_s12), 0  ;;  %p136_p3 = pnand %p365_p0, %p135_p2 }
   0x6   : > { %p169_p4 = scmp.lt.s32.totalorder (!%p136_p3), %s416_s9, 1 }
   0x7   : > { %139 = sbr.rel (%p136_p3) target bundleno = 170 (0xaa), region = 28 }
   0xc   : > { %s485_s9 = smov (!%p169_p4, %s416_s9), 1  ;;  %vm196_vm0 = vcmask 1041408   ;;  %v184_v3 = vld [vmem:[%s477_s0] sm:$0xf]  ;;  %vm192_vm1 = vcmask 31744  }
   0xd   : > { %s376_s13 = sshll.u32 %s485_s9, 3  ;;  %s377_s19 = sshll.u32 %s485_s9, 4 }
   0xe   : > { %s173_s16 = scalar_lea.vmem %s478_s1, %s376_s13  ;;  %s182_s22 = scalar_lea.vmem %s479_s2, %s377_s19 }
   0xf   : > { %v185_v0 = vld [vmem:[%s173_s16] sm:$0xff] }
  0x10   : > { %187 = vst [vmem:[#allocation1] ss:$4 sm:$0xff] %v185_v0 }
  0x17   : > { %v188_v1 = vld.sshfl [vmem:[#allocation1] sm:$0xff pattern:$0x73625140]  ;;  %v189_v2 = vld.sshfl [vmem:[#allocation1 + $0x8] sm:$0xff pattern:$0x73625140] }
  0x18   : > { %v197_v4 = vsel %vm196_vm0, %v188_v1, 0  ;;  %v199_v5 = vsel %vm196_vm0, %v189_v2, 0  ;;  %v190_v6 = vld.sshfl [vmem:[#allocation1 + $0x10] sm:$0xff pattern:$0x73625140] }
  0x19   : > { %212 = vmatpush.bf16.msra.mxu0 %v197_v4  ;;  %225 = vmatpush.bf16.msra.mxu1 %v199_v5  ;;  %v201_v7 = vsel %vm196_vm0, %v190_v6, 0  ;;  %v191_v8 = vld.sshfl [vmem:[#allocation1 + $0x18] sm:$0xff pattern:$0x73625140] }
  0x1a   : > { %238 = vmatpush.bf16.msra.mxu2 %v201_v7  ;;  %v203_v9 = vsel %vm196_vm0, %v191_v8, 0 }
  0x1b   : > { %251 = vmatpush.bf16.msra.mxu3 %v203_v9 }
  0x1c   : > { %370 = vmatmul.msk.bf16.vlgmr.msra.gmra.mxu0 %vm192_vm1, %v184_v3  ;;  %371 = vmatmul.msk.bf16.vlgmr.msra.gmra.mxu1 %vm192_vm1, %v184_v3 }
  0x1d   : > { %372 = vmatmul.msk.bf16.vlgmr.msra.gmra.mxu2 %vm192_vm1, %v184_v3 }
  0x1e   : > { %373 = vmatmul.msk.bf16.vlgmr.msra.gmra.mxu3 %vm192_vm1, %v184_v3 }
  0x99   : > { %v214_v10 = vpop.f32.mrf.mxu0  ;;  %v227_v11 = vpop.f32.mrf.mxu1 }
  0x9a   : > { %v257_v12 = vpack.c.bf16 %v227_v11, %v214_v10 }
  0x9c   : > { %259 = vst [vmem:[%s182_s22] sm:$0xff] %v257_v12 }
  0xa0   : > { %v240_v13 = vpop.f32.mrf.mxu2 }
  0xa1   : > { %v253_v14 = vpop.f32.mrf.mxu3  ;;  %v216_v15 = vpop.f32.mrf.mxu0 }
  0xa2   : > { %v258_v16 = vpack.c.bf16 %v253_v14, %v240_v13  ;;  %v229_v17 = vpop.f32.mrf.mxu1 }
  0xa4   : > { %260 = vst [vmem:[%s182_s22 + $0x8] sm:$0xff] %v258_v16 }
  0xa8   : > { %v242_v18 = vpop.f32.mrf.mxu2 }
  0xa9   : > { %v255_v19 = vpop.f32.mrf.mxu3 }
  0xaa PF: > { %s12_s11 = sadd.s32 1, %s424_s11   ;;  %s480_s9 = smov %s420_s10 }
  0xab   : > { %p9_p5 = scmp.ge.s32.totalorder %s12_s11, 4   ;;  %s481_s10 = smov %s483_s12 }
  0xad   :  { %11 = sbr.rel (!%p9_p5) target bundleno = 2 (0x2), region = 61 }

// kernel: apn_forward.20
= control target key start
LH: loop header
LB: loop body
LE: loop exit
PB: predicated region body
PF: predicated region fallthrough
CT: control target
= control target key end

     0   :  { %s407_s9 = smov 0   ;;  %s409_s10 = smov 0   ;;  %s443_s0 = inlined_call_operand.vmem [shape: bf16[4,2], index: 0, kind: input, shape index: {}]   ;;  %s444_s1 = inlined_call_operand.vmem [shape: bf16[2,2,256], index: 1, kind: input, shape index: {}]   ;;  %s445_s2 = inlined_call_operand.vmem [shape: bf16[2,4,256], index: 2, kind: output, shape index: {}]  }
   0x1   :  { %s411_s11 = smov 0  }
   0x2 LB: > { %s24_s12 = sadd.s32 1, %s386_s10  ;;  %p335_p0 = scmp.ge.s32.totalorder %s390_s11, 1  ;;  %s390_s11 = sphi %s411_s11, %s12_s11   ;;  %s386_s10 = sphi %s409_s10, %s447_s10   ;;  %s382_s9 = sphi %s407_s9, %s446_s9  }
   0x3   : > { %p26_p1 = scmp.ge.s32.totalorder %s24_s12, 2  ;;  %p134_p2 = scmp.lt.s32.totalorder %s390_s11, 3 }
   0x5   : > { %s449_s12 = smov (%p26_p1, %s24_s12), 0  ;;  %p135_p3 = pnand %p335_p0, %p134_p2 }
   0x6   : > { %p167_p4 = scmp.lt.s32.totalorder (!%p135_p3), %s382_s9, 1 }
   0x7   : > { %138 = sbr.rel (%p135_p3) target bundleno = 162 (0xa2), region = 28 }
   0xc   : > { %s451_s9 = smov (!%p167_p4, %s382_s9), 1  ;;  %vm191_vm0 = vcmask 1040384   ;;  %v181_v5 = vld [vmem:[%s443_s0] sm:$0x3]  ;;  %vm187_vm1 = vcmask 15360   ;;  %vm225_vm2 = vcmask 1041408  }
   0xd   : > { %s336_s13 = sshll.u32 %s451_s9, 1  ;;  %s343_s19 = sshll.u32 %s451_s9, 2 }
   0xe   : > { %s170_s16 = scalar_lea.vmem %s444_s1, %s336_s13  ;;  %s179_s22 = scalar_lea.vmem %s445_s2, %s343_s19 }
   0xf   : > { %v182_v0 = vld [vmem:[%s170_s16] sm:$0x3] }
  0x10   : > { %184 = vst [vmem:[#allocation1] ss:$9 sm:$0xff] %v182_v0 }
  0x17   : > { %v185_v1 = vld [vmem:[#allocation1] sm:$0xff]  ;;  %v186_v2 = vld [vmem:[#allocation1 + $0x9] sm:$0xff] }
  0x18   : > { %v192_v3 = vsel %vm191_vm0, %v185_v1, 0  ;;  %v194_v4 = vsel %vm191_vm0, %v186_v2, 0 }
  0x19   : > { %203 = vmatpush.bf16.msra.mxu0 %v192_v3  ;;  %216 = vmatpush.bf16.msra.mxu1 %v194_v4 }
  0x1c   : > { %339 = vmatmul.msk.bf16.vlgmr.msra.gmra.mxu0 %vm187_vm1, %v181_v5  ;;  %340 = vmatmul.msk.bf16.vlgmr.msra.gmra.mxu1 %vm187_vm1, %v181_v5 }
  0x99   : > { %v205_v6 = vpop.f32.mrf.mxu0  ;;  %v218_v7 = vpop.f32.mrf.mxu1 }
  0x9a   : > { %v222_v8 = vpack.c.bf16 %v218_v7, %v205_v6 }
  0x9c   : > { %v224_v9 = vrot.slane %v222_v8, 2 }
  0x9e   : > { %v228_v10 = vsel %vm225_vm2, %v222_v8, %v224_v9 }
  0x9f   : > { %230 = vst [vmem:[%s179_s22] sm:$0xf] %v228_v10 }
  0xa1   : > { %v207_v11 = vpop.f32.mrf.mxu0  ;;  %v220_v12 = vpop.f32.mrf.mxu1 }
  0xa2 PF: > { %s12_s11 = sadd.s32 1, %s390_s11   ;;  %s446_s9 = smov %s386_s10 }
  0xa3   : > { %p9_p5 = scmp.ge.s32.totalorder %s12_s11, 4   ;;  %s447_s10 = smov %s449_s12 }
  0xa5   :  { %11 = sbr.rel (!%p9_p5) target bundleno = 2 (0x2), region = 61 }

// kernel: apn_forward.23
= control target key start
LH: loop header
LB: loop body
LE: loop exit
PB: predicated region body
PF: predicated region fallthrough
CT: control target
= control target key end

     0   :  { %s660_s12 = smov 0   ;;  %s662_s13 = smov 0   ;;  %s725_s0 = inlined_call_operand.vmem [shape: bf16[8,4], index: 0, kind: input, shape index: {}]   ;;  %s726_s1 = inlined_call_operand.vmem [shape: bf16[2,8,4,128], index: 1, kind: input, shape index: {}]   ;;  %s727_s2 = inlined_call_operand.vmem [shape: bf16[2,8,8,128], index: 2, kind: input, shape index: {}, may-alias: {2,3}]   ;;  %s728_s3 = inlined_call_operand.vmem [shape: bf16[2,8,8,128], index: 3, kind: output, shape index: {}, may-alias: {2,3}]  }
   0x1   :  { %s664_s14 = smov 0  }
   0x2 LB: > { %s25_s15 = sadd.s32 1, %s634_s13  ;;  %p530_p0 = scmp.ge.s32.totalorder %s638_s14, 1  ;;  %s638_s14 = sphi %s664_s14, %s13_s14   ;;  %s634_s13 = sphi %s662_s13, %s730_s13   ;;  %s630_s12 = sphi %s660_s12, %s729_s12  }
   0x3   : > { %p27_p1 = scmp.ge.s32.totalorder %s25_s15, 2  ;;  %p175_p2 = scmp.lt.s32.totalorder %s638_s14, 3 }
   0x5   : > { %s732_s15 = smov (%p27_p1, %s25_s15), 0  ;;  %p176_p3 = pnand %p530_p0, %p175_p2 }
   0x6   : > { %p217_p4 = scmp.lt.s32.totalorder (!%p176_p3), %s630_s12, 1 }
   0x7   : > { %179 = sbr.rel (%p176_p3) target bundleno = 177 (0xb1), region = 32 }
   0xc   : > { %s734_s12 = smov (!%p217_p4, %s630_s12), 1  ;;  %vm276_vm0 = vcmask 1041408   ;;  %v255_v3 = vld [vmem:[%s725_s0] sm:$0xf]  ;;  %vm272_vm1 = vcmask 31744  }
   0xd   : > { %s547_s16 = sshll.u32 %s734_s12, 4  ;;  %s548_s22 = sshll.u32 %s734_s12, 5 }
   0xe   : > { %s224_s19 = scalar_lea.vmem %s726_s1, %s547_s16  ;;  %s234_s25 = scalar_lea.vmem %s727_s2, %s548_s22 }
   0xf   : > { %v247_v0 = vld [vmem:[%s224_s19] sm:$0x3]  ;;  %v248_v1 = vld [vmem:[%s224_s19 + $0x2] sm:$0x3]  ;;  %v249_v2 = vld [vmem:[%s224_s19 + $0x4] sm:$0x3]  ;;  %s710_s28 = scalar_lea.vmem %s728_s3, %s548_s22 }
  0x10   : > { %v278_v4 = vsel %vm276_vm0, %v247_v0, 0  ;;  %v294_v5 = vsel %vm276_vm0, %v248_v1, 0  ;;  %v310_v6 = vsel %vm276_vm0, %v249_v2, 0  ;;  %v250_v7 = vld [vmem:[%s224_s19 + $0x6] sm:$0x3]  ;;  %v586_v24 = vld [vmem:[%s234_s25 + $0x8] sm:$0xff]  }
  0x11   : > { %287 = vmatpush.bf16.msra.mxu0 %v278_v4  ;;  %303 = vmatpush.bf16.msra.mxu1 %v294_v5  ;;  %v326_v8 = vsel %vm276_vm0, %v250_v7, 0  ;;  %v253_v9 = vld [vmem:[%s224_s19 + $0xc] sm:$0x3]  ;;  %v254_v10 = vld [vmem:[%s224_s19 + $0xe] sm:$0x3]  ;;  %v551_v17 = vld [vmem:[%s234_s25] sm:$0xff]   ;;  %v556_v28 = vunpack.c.l.bf16 %v586_v24  ;;  %v557_v29 = vunpack.c.h.bf16 %v586_v24 }
  0x12   : > { %319 = vmatpush.bf16.msra.mxu2 %v310_v6  ;;  %335 = vmatpush.bf16.msra.mxu3 %v326_v8  ;;  %v374_v11 = vsel %vm276_vm0, %v253_v9, 0  ;;  %v390_v12 = vsel %vm276_vm0, %v254_v10, 0  ;;  %v251_v13 = vld [vmem:[%s224_s19 + $0x8] sm:$0x3]  ;;  %v252_v14 = vld [vmem:[%s224_s19 + $0xa] sm:$0x3]  ;;  %v552_v18 = vunpack.c.l.bf16 %v551_v17  ;;  %v553_v19 = vunpack.c.h.bf16 %v551_v17 }
  0x13   : > { %v342_v15 = vsel %vm276_vm0, %v251_v13, 0  ;;  %v358_v16 = vsel %vm276_vm0, %v252_v14, 0  ;;  %v587_v25 = vld [vmem:[%s234_s25 + $0x10] sm:$0xff]   ;;  %v588_v26 = vld [vmem:[%s234_s25 + $0x18] sm:$0xff]  }
  0x14   : > { %537 = vmatmul.msk.bf16.vlgmr.msra.gmra.mxu0 %vm272_vm1, %v255_v3  ;;  %538 = vmatmul.msk.bf16.vlgmr.msra.gmra.mxu1 %vm272_vm1, %v255_v3  ;;  %v560_v37 = vunpack.c.l.bf16 %v587_v25  ;;  %v561_v38 = vunpack.c.h.bf16 %v587_v25  ;;  %v564_v46 = vunpack.c.l.bf16 %v588_v26  ;;  %v565_v47 = vunpack.c.h.bf16 %v588_v26 }
  0x15   : > { %539 = vmatmul.msk.bf16.vlgmr.msra.gmra.mxu2 %vm272_vm1, %v255_v3  ;;  %540 = vmatmul.msk.bf16.vlgmr.msra.gmra.mxu3 %vm272_vm1, %v255_v3 }
  0x16   : > { %383 = vmatpush.bf16.msrb.mxu2 %v374_v11  ;;  %399 = vmatpush.bf16.msrb.mxu3 %v390_v12 }
  0x17   : > { %351 = vmatpush.bf16.msrb.mxu0 %v342_v15  ;;  %367 = vmatpush.bf16.msrb.mxu1 %v358_v16 }
  0x24   : > { %541 = vmatmul.msk.bf16.vlgmr.msrb.gmra.mxu0 %vm272_vm1, %v255_v3  ;;  %542 = vmatmul.msk.bf16.vlgmr.msrb.gmra.mxu1 %vm272_vm1, %v255_v3 }
  0x25   : > { %543 = vmatmul.msk.bf16.vlgmr.msrb.gmra.mxu2 %vm272_vm1, %v255_v3  ;;  %544 = vmatmul.msk.bf16.vlgmr.msrb.gmra.mxu3 %vm272_vm1, %v255_v3 }
  0x91   : > { %v289_v20 = vpop.f32.mrf.mxu0  ;;  %v305_v21 = vpop.f32.mrf.mxu1 }
  0x92   : > { %v290_v22 = vadd.f32 %v552_v18, %v289_v20  ;;  %v306_v23 = vadd.f32 %v553_v19, %v305_v21 }
  0x94   : > { %v569_v27 = vpack.c.bf16 %v306_v23, %v290_v22 }
  0x96   : > { %570 = vst [vmem:[%s710_s28] sm:$0xff] %v569_v27  }
  0x98   : > { %v321_v30 = vpop.f32.mrf.mxu2  ;;  %v337_v31 = vpop.f32.mrf.mxu3 }
  0x99   : > { %v322_v32 = vadd.f32 %v556_v28, %v321_v30  ;;  %v338_v33 = vadd.f32 %v557_v29, %v337_v31  ;;  %v291_v34 = vpop.f32.mrf.mxu0  ;;  %v307_v35 = vpop.f32.mrf.mxu1 }
  0x9b   : > { %v574_v36 = vpack.c.bf16 %v338_v33, %v322_v32 }
  0x9d   : > { %589 = vst [vmem:[%s710_s28 + $0x8] sm:$0xff] %v574_v36  }
  0xa0   : > { %v323_v39 = vpop.f32.mrf.mxu2  ;;  %v339_v40 = vpop.f32.mrf.mxu3 }
  0xa1   : > { %v353_v41 = vpop.f32.mrf.mxu0  ;;  %v369_v42 = vpop.f32.mrf.mxu1 }
  0xa2   : > { %v354_v43 = vadd.f32 %v560_v37, %v353_v41  ;;  %v370_v44 = vadd.f32 %v561_v38, %v369_v42 }
  0xa4   : > { %v579_v45 = vpack.c.bf16 %v370_v44, %v354_v43 }
  0xa6   : > { %590 = vst [vmem:[%s710_s28 + $0x10] sm:$0xff] %v579_v45  }
  0xa8   : > { %v385_v48 = vpop.f32.mrf.mxu2  ;;  %v401_v49 = vpop.f32.mrf.mxu3 }
  0xa9   : > { %v386_v50 = vadd.f32 %v564_v46, %v385_v48  ;;  %v402_v51 = vadd.f32 %v565_v47, %v401_v49  ;;  %v355_v52 = vpop.f32.mrf.mxu0  ;;  %v371_v53 = vpop.f32.mrf.mxu1 }
  0xab   : > { %v584_v54 = vpack.c.bf16 %v402_v51, %v386_v50 }
  0xad   : > { %591 = vst [vmem:[%s710_s28 + $0x18] sm:$0xff] %v584_v54  }
  0xb0   : > { %v387_v55 = vpop.f32.mrf.mxu2  ;;  %v403_v56 = vpop.f32.mrf.mxu3 }
  0xb1 PF: > { %s13_s14 = sadd.s32 1, %s638_s14   ;;  %s729_s12 = smov %s634_s13 }
  0xb2   : > { %p10_p5 = scmp.ge.s32.totalorder %s13_s14, 4   ;;  %s730_s13 = smov %s732_s15 }
  0xb4   :  { %12 = sbr.rel (!%p10_p5) target bundleno = 2 (0x2), region = 65 }

// kernel: apn_forward.24
= control target key start
LH: loop header
LB: loop body
LE: loop exit
PB: predicated region body
PF: predicated region fallthrough
CT: control target
= control target key end

     0   :  { %s572_s9 = smov 0   ;;  %s574_s10 = smov 0   ;;  %s638_s0 = inlined_call_operand.vmem [shape: bf16[16,8], index: 0, kind: input, shape index: {}]   ;;  %s639_s1 = inlined_call_operand.vmem [shape: bf16[2,8,1024], index: 1, kind: input, shape index: {}]   ;;  %s640_s2 = inlined_call_operand.vmem [shape: bf16[2,16,1024], index: 2, kind: output, shape index: {}]  }
   0x1   :  { %s576_s11 = smov 0  }
   0x2 LB: > { %s24_s12 = sadd.s32 1, %s551_s10  ;;  %p487_p0 = scmp.ge.s32.totalorder %s555_s11, 1  ;;  %s555_s11 = sphi %s576_s11, %s12_s11   ;;  %s551_s10 = sphi %s574_s10, %s642_s10   ;;  %s547_s9 = sphi %s572_s9, %s641_s9  }
   0x3   : > { %p26_p1 = scmp.ge.s32.totalorder %s24_s12, 2  ;;  %p137_p2 = scmp.lt.s32.totalorder %s555_s11, 3 }
   0x5   : > { %s644_s12 = smov (%p26_p1, %s24_s12), 0  ;;  %p138_p3 = pnand %p487_p0, %p137_p2 }
   0x6   : > { %p175_p4 = scmp.lt.s32.totalorder (!%p138_p3), %s547_s9, 1 }
   0x7   : > { %141 = sbr.rel (%p138_p3) target bundleno = 184 (0xb8), region = 28 }
   0xc   : > { %s646_s9 = smov (!%p175_p4, %s547_s9), 1  ;;  %vm227_vm0 = vcmask 1043456   ;;  %v508_v24 = vld [vmem:[%s638_s0] sm:$0xff]  ;;  %vm223_vm1 = vcmask 64512  }
   0xd   : > { %s506_s13 = sshll.u32 %s646_s9, 5  ;;  %s507_s19 = sshll.u32 %s646_s9, 6 }
   0xe   : > { %s179_s16 = scalar_lea.vmem %s639_s1, %s506_s13  ;;  %s619_s22 = scalar_lea.vmem %s640_s2, %s507_s19 }
   0xf   : > { %v194_v0 = vld [vmem:[%s179_s16] sm:$0xff]  ;;  %v195_v1 = vld [vmem:[%s179_s16 + $0x8] sm:$0xff]  ;;  %v197_v2 = vld [vmem:[%s179_s16 + $0x18] sm:$0xff] }
  0x10   : > { %v207_v3 = vunpack.c.l.b16 %v194_v0  ;;  %v208_v4 = vunpack.c.h.b16 %v194_v0  ;;  %v209_v5 = vunpack.c.l.b16 %v195_v1  ;;  %v210_v6 = vunpack.c.h.b16 %v195_v1  ;;  %v196_v7 = vld [vmem:[%s179_s16 + $0x10] sm:$0xff] }
  0x11   : > { %v213_v8 = vunpack.c.l.b16 %v197_v2  ;;  %v214_v9 = vunpack.c.h.b16 %v197_v2  ;;  %v211_v10 = vunpack.c.l.b16 %v196_v7  ;;  %v212_v11 = vunpack.c.h.b16 %v196_v7 }
  0x12   : > { %v215_v12 = vpack.c.b16 %v207_v3, %v207_v3  ;;  %v216_v13 = vpack.c.b16 %v208_v4, %v208_v4  ;;  %v217_v14 = vpack.c.b16 %v209_v5, %v209_v5  ;;  %v218_v15 = vpack.c.b16 %v210_v6, %v210_v6 }
  0x13   : > { %v221_v16 = vpack.c.b16 %v213_v8, %v213_v8  ;;  %v222_v17 = vpack.c.b16 %v214_v9, %v214_v9  ;;  %v219_v18 = vpack.c.b16 %v211_v10, %v211_v10  ;;  %v220_v19 = vpack.c.b16 %v212_v11, %v212_v11 }
  0x14   : > { %v229_v20 = vsel %vm227_vm0, %v215_v12, 0  ;;  %v232_v21 = vsel %vm227_vm0, %v216_v13, 0  ;;  %v235_v22 = vsel %vm227_vm0, %v217_v14, 0  ;;  %v238_v23 = vsel %vm227_vm0, %v218_v15, 0 }
  0x15   : > { %259 = vmatpush.bf16.msra.mxu0 %v229_v20  ;;  %273 = vmatpush.bf16.msra.mxu1 %v232_v21  ;;  %v247_v25 = vsel %vm227_vm0, %v221_v16, 0  ;;  %v250_v26 = vsel %vm227_vm0, %v222_v17, 0  ;;  %v241_v27 = vsel %vm227_vm0, %v219_v18, 0  ;;  %v244_v28 = vsel %vm227_vm0, %v220_v19, 0 }
  0x16   : > { %287 = vmatpush.bf16.msra.mxu2 %v235_v22  ;;  %301 = vmatpush.bf16.msra.mxu3 %v238_v23 }
  0x18   : > { %496 = vmatmul.msk.bf16.vlgmr.msra.gmra.mxu0 %vm223_vm1, %v508_v24  ;;  %497 = vmatmul.msk.bf16.vlgmr.msra.gmra.mxu1 %vm223_vm1, %v508_v24 }
  0x19   : > { %498 = vmatmul.msk.bf16.vlgmr.msra.gmra.mxu2 %vm223_vm1, %v508_v24  ;;  %499 = vmatmul.msk.bf16.vlgmr.msra.gmra.mxu3 %vm223_vm1, %v508_v24 }
  0x1a   : > { %343 = vmatpush.bf16.msrb.mxu2 %v247_v25  ;;  %357 = vmatpush.bf16.msrb.mxu3 %v250_v26 }
  0x1b   : > { %315 = vmatpush.bf16.msrb.mxu0 %v241_v27  ;;  %329 = vmatpush.bf16.msrb.mxu1 %v244_v28 }
  0x28   : > { %500 = vmatmul.msk.bf16.vlgmr.msrb.gmra.mxu0 %vm223_vm1, %v508_v24  ;;  %501 = vmatmul.msk.bf16.vlgmr.msrb.gmra.mxu1 %vm223_vm1, %v508_v24 }
  0x29   : > { %502 = vmatmul.msk.bf16.vlgmr.msrb.gmra.mxu2 %vm223_vm1, %v508_v24  ;;  %503 = vmatmul.msk.bf16.vlgmr.msrb.gmra.mxu3 %vm223_vm1, %v508_v24 }
  0x95   : > { %v261_v29 = vpop.f32.mrf.mxu0  ;;  %v275_v30 = vpop.f32.mrf.mxu1 }
  0x96   : > { %v364_v31 = vpack.c.bf16 %v275_v30, %v261_v29 }
  0x98   : > { %372 = vst [vmem:[%s619_s22] sm:$0xff] %v364_v31 }
  0x9c   : > { %v289_v32 = vpop.f32.mrf.mxu2  ;;  %v303_v33 = vpop.f32.mrf.mxu3 }
  0x9d   : > { %v365_v34 = vpack.c.bf16 %v303_v33, %v289_v32  ;;  %v263_v35 = vpop.f32.mrf.mxu0  ;;  %v277_v36 = vpop.f32.mrf.mxu1 }
  0x9e   : > { %v368_v37 = vpack.c.bf16 %v277_v36, %v263_v35 }
  0x9f   : > { %373 = vst [vmem:[%s619_s22 + $0x8] sm:$0xff] %v365_v34 }
  0xa0   : > { %376 = vst [vmem:[%s619_s22 + $0x20] sm:$0xff] %v368_v37 }
  0xa4   : > { %v291_v38 = vpop.f32.mrf.mxu2  ;;  %v305_v39 = vpop.f32.mrf.mxu3 }
  0xa5   : > { %v369_v40 = vpack.c.bf16 %v305_v39, %v291_v38  ;;  %v317_v41 = vpop.f32.mrf.mxu0  ;;  %v331_v42 = vpop.f32.mrf.mxu1 }
  0xa6   : > { %v366_v43 = vpack.c.bf16 %v331_v42, %v317_v41 }
  0xa7   : > { %377 = vst [vmem:[%s619_s22 + $0x28] sm:$0xff] %v369_v40 }
  0xa8   : > { %374 = vst [vmem:[%s619_s22 + $0x10] sm:$0xff] %v366_v43 }
  0xac   : > { %v345_v44 = vpop.f32.mrf.mxu2  ;;  %v359_v45 = vpop.f32.mrf.mxu3 }
  0xad   : > { %v367_v46 = vpack.c.bf16 %v359_v45, %v345_v44  ;;  %v319_v47 = vpop.f32.mrf.mxu0  ;;  %v333_v48 = vpop.f32.mrf.mxu1 }
  0xae   : > { %v370_v49 = vpack.c.bf16 %v333_v48, %v319_v47 }
  0xaf   : > { %375 = vst [vmem:[%s619_s22 + $0x18] sm:$0xff] %v367_v46 }
  0xb0   : > { %378 = vst [vmem:[%s619_s22 + $0x30] sm:$0xff] %v370_v49 }
  0xb4   : > { %v347_v50 = vpop.f32.mrf.mxu2  ;;  %v361_v51 = vpop.f32.mrf.mxu3 }
  0xb5   : > { %v371_v52 = vpack.c.bf16 %v361_v51, %v347_v50 }
  0xb7   : > { %379 = vst [vmem:[%s619_s22 + $0x38] sm:$0xff] %v371_v52 }
  0xb8 PF: > { %s12_s11 = sadd.s32 1, %s555_s11   ;;  %s641_s9 = smov %s551_s10 }
  0xb9   : > { %p9_p5 = scmp.ge.s32.totalorder %s12_s11, 4   ;;  %s642_s10 = smov %s644_s12 }
  0xbb   :  { %11 = sbr.rel (!%p9_p5) target bundleno = 2 (0x2), region = 61 }

// kernel: apn_forward.19
= control target key start
LH: loop header
LB: loop body
LE: loop exit
PB: predicated region body
PF: predicated region fallthrough
CT: control target
= control target key end

     0   :  { %s1443_s27 = smov 0   ;;  %s1445_s28 = smov 0   ;;  %s1667_s0 = inlined_call_operand.vmem [shape: bf16[2,256,128], index: 0, kind: input, shape index: {}]   ;;  %s1668_s1 = inlined_call_operand.vmem [shape: bf16[128,128], index: 1, kind: input, shape index: {}]   ;;  %s1669_s2 = inlined_call_operand.vmem [shape: f32[1,128], index: 2, kind: input, shape index: {}]   ;;  %s1670_s3 = inlined_call_operand.vmem [shape: f32[1,128], index: 3, kind: input, shape index: {}]   ;;  %s1671_s4 = inlined_call_operand.vmem [shape: bf16[128,128], index: 4, kind: input, shape index: {}]   ;;  %s1672_s5 = inlined_call_operand.vmem [shape: f32[1,128], index: 5, kind: input, shape index: {}]   ;;  %s1673_s6 = inlined_call_operand.vmem [shape: f32[1,128], index: 6, kind: input, shape index: {}]   ;;  %s1674_s7 = inlined_call_operand.vmem [shape: bf16[2,256,128], index: 7, kind: output, shape index: {0}]   ;;  %s1675_s8 = inlined_call_operand.vmem [shape: f32[2,1,128], index: 8, kind: output, shape index: {1}]  }
   0x1   :  { %s1447_s29 = smov 0  }
   0x2 LB: > { %s31_s30 = sadd.s32 1, %s1391_s28  ;;  %p1059_p0 = scmp.ge.s32.totalorder %s1395_s29, 1  ;;  %s1395_s29 = sphi %s1447_s29, %s19_s29   ;;  %s1391_s28 = sphi %s1445_s28, %s1677_s28   ;;  %s1387_s27 = sphi %s1443_s27, %s1676_s27  }
   0x3   : > { %p33_p1 = scmp.ge.s32.totalorder %s31_s30, 2  ;;  %p286_p2 = scmp.lt.s32.totalorder %s1395_s29, 3 }
   0x5   : > { %s1679_s30 = smov (%p33_p1, %s31_s30), 0  ;;  %p287_p3 = pnand %p1059_p0, %p286_p2 }
   0x6   : > { %p332_p4 = scmp.lt.s32.totalorder (!%p287_p3), %s1387_s27, 1 }
   0x7   : > { %290 = sbr.rel (%p287_p3) target bundleno = 258 (0x102), region = 48 }
   0xc   : > { %v1187_v0 = vld [vmem:[%s1668_s1 + $0x38] sm:$0xff]  ;;  %v1186_v1 = vld [vmem:[%s1668_s1 + $0x30] sm:$0xff]  ;;  %s1681_s27 = smov (!%p332_p4, %s1387_s27), 1  ;;  %v1185_v2 = vld [vmem:[%s1668_s1 + $0x28] sm:$0xff] }
   0xd   : > { %1323 = vmatpush.bf16.msra.mxu2 %v1187_v0  ;;  %1324 = vmatpush.bf16.msra.mxu3 %v1187_v0  ;;  %s1162_s13 = sshll.u32 %s1681_s27, 7  ;;  %v1184_v9 = vld [vmem:[%s1668_s1 + $0x20] sm:$0xff]  ;;  %v1183_v15 = vld [vmem:[%s1668_s1 + $0x18] sm:$0xff]  ;;  %v1182_v21 = vld [vmem:[%s1668_s1 + $0x10] sm:$0xff]  ;;  %s353_s24 = scalar_lea.vmem %s1675_s8, %s1681_s27 }
   0xe   : > { %551 = vmatpush.bf16.msra.mxu0 %v1187_v0  ;;  %1322 = vmatpush.bf16.msra.mxu1 %v1187_v0  ;;  %s1475_s16 = scalar_lea.vmem %s1667_s0, %s1162_s13  ;;  %v1181_v27 = vld [vmem:[%s1668_s1 + $0x8] sm:$0xff]  ;;  %v1180_v33 = vld [vmem:[%s1668_s1] sm:$0xff]  ;;  %s1578_s18 = scalar_lea.vmem %s1674_s7, %s1162_s13 }
   0xf   : > { %v359_v3 = vld [vmem:[%s1475_s16] sm:$0xff]   ;;  %v361_v4 = vld [vmem:[%s1475_s16 + $0x8] sm:$0xff]   ;;  %v363_v8 = vld [vmem:[%s1475_s16 + $0x10] sm:$0xff]  }
  0x10   : > { %v809_v5 = vunpack.c.l.bf16 %v359_v3  ;;  %v810_v6 = vunpack.c.h.bf16 %v359_v3  ;;  %v811_v7 = vunpack.c.l.bf16 %v361_v4  ;;  %v812_v10 = vunpack.c.h.bf16 %v361_v4  ;;  %v365_v14 = vld [vmem:[%s1475_s16 + $0x18] sm:$0xff]   ;;  %v367_v20 = vld [vmem:[%s1475_s16 + $0x20] sm:$0xff]   ;;  %v369_v26 = vld [vmem:[%s1475_s16 + $0x28] sm:$0xff]  }
  0x11   : > { %1326 = vmatpush.bf16.msra.mxu2 %v1186_v1  ;;  %1327 = vmatpush.bf16.msra.mxu3 %v1186_v1  ;;  %v813_v12 = vunpack.c.l.bf16 %v363_v8  ;;  %v814_v16 = vunpack.c.h.bf16 %v363_v8  ;;  %v815_v18 = vunpack.c.l.bf16 %v365_v14  ;;  %v816_v22 = vunpack.c.h.bf16 %v365_v14  ;;  %v371_v32 = vld [vmem:[%s1475_s16 + $0x30] sm:$0xff]   ;;  %v1175_v39 = vld [vmem:[%s1475_s16 + $0x58] sm:$0xff]  ;;  %v1164_v41 = vld [vmem:[%s1475_s16] sm:$0xff] }
  0x12   : > { %552 = vmatpush.bf16.msra.mxu0 %v1186_v1  ;;  %1325 = vmatpush.bf16.msra.mxu1 %v1186_v1  ;;  %v841_v11 = vadd.f32 %v810_v6, %v809_v5  ;;  %v817_v24 = vunpack.c.l.bf16 %v367_v20  ;;  %v818_v28 = vunpack.c.h.bf16 %v367_v20  ;;  %v819_v30 = vunpack.c.l.bf16 %v369_v26  ;;  %v1170_v38 = vld [vmem:[%s1475_s16 + $0x30] sm:$0xff]  ;;  %v373_v40 = vld [vmem:[%s1475_s16 + $0x38] sm:$0xff]   ;;  %v1168_v46 = vld [vmem:[%s1475_s16 + $0x20] sm:$0xff] }
  0x13   : > { %v820_v34 = vunpack.c.h.bf16 %v369_v26  ;;  %v821_v36 = vunpack.c.l.bf16 %v371_v32  ;;  %v822_v42 = vunpack.c.h.bf16 %v371_v32  ;;  %v823_v44 = vunpack.c.l.bf16 %v373_v40  ;;  %v375_v47 = vld [vmem:[%s1475_s16 + $0x40] sm:$0xff]   ;;  %v377_v52 = vld [vmem:[%s1475_s16 + $0x48] sm:$0xff]   ;;  %v379_v57 = vld [vmem:[%s1475_s16 + $0x50] sm:$0xff]  }
  0x14   : > { %v842_v13 = vadd.f32 %v841_v11, %v811_v7  ;;  %v824_v48 = vunpack.c.h.bf16 %v373_v40  ;;  %v825_v50 = vunpack.c.l.bf16 %v375_v47  ;;  %v826_v53 = vunpack.c.h.bf16 %v375_v47  ;;  %v1171_v62 = vld [vmem:[%s1475_s16 + $0x38] sm:$0xff]  ;;  %v1176_v63 = vld [vmem:[%s1475_s16 + $0x60] sm:$0xff]  ;;  %v1165_v0 = vld [vmem:[%s1475_s16 + $0x8] sm:$0xff] }
  0x15   : > { %1329 = vmatpush.bf16.msra.mxu2 %v1185_v2  ;;  %1330 = vmatpush.bf16.msra.mxu3 %v1185_v2  ;;  %v827_v55 = vunpack.c.l.bf16 %v377_v52  ;;  %v828_v58 = vunpack.c.h.bf16 %v377_v52  ;;  %v829_v60 = vunpack.c.l.bf16 %v379_v57  ;;  %v381_v1 = vld [vmem:[%s1475_s16 + $0x58] sm:$0xff]   ;;  %v830_v4 = vunpack.c.h.bf16 %v379_v57  ;;  %v1320_v8 = vld [vmem:[%s1671_s4 + $0x30] sm:$0xff]   ;;  %v385_v20 = vld [vmem:[%s1475_s16 + $0x68] sm:$0xff]  }
  0x16   : > { %553 = vmatpush.bf16.msra.mxu0 %v1185_v2  ;;  %1328 = vmatpush.bf16.msra.mxu1 %v1185_v2  ;;  %v843_v17 = vadd.f32 %v842_v13, %v812_v10  ;;  %v1321_v3 = vld [vmem:[%s1671_s4 + $0x38] sm:$0xff]   ;;  %v831_v10 = vunpack.c.l.bf16 %v381_v1  ;;  %v1295_v11 = vunpack.c.h.bf16 %v1320_v8  ;;  %v1319_v13 = vld [vmem:[%s1671_s4 + $0x28] sm:$0xff]   ;;  %v832_v14 = vunpack.c.h.bf16 %v381_v1  ;;  %v1172_v32 = vld [vmem:[%s1475_s16 + $0x40] sm:$0xff] }
  0x17   : > { %v1299_v5 = vunpack.c.h.bf16 %v1321_v3  ;;  %v1298_v7 = vunpack.c.l.bf16 %v1321_v3 }
  0x18   : > { %v844_v19 = vadd.f32 %v843_v17, %v813_v12  ;;  %v383_v12 = vld [vmem:[%s1475_s16 + $0x60] sm:$0xff]  }
  0x19   : > { %1332 = vmatpush.bf16.msra.mxu2 %v1184_v9  ;;  %1333 = vmatpush.bf16.msra.mxu3 %v1184_v9  ;;  %v833_v17 = vunpack.c.l.bf16 %v383_v12 }
  0x1a   : > { %554 = vmatpush.bf16.msra.mxu0 %v1184_v9  ;;  %1331 = vmatpush.bf16.msra.mxu1 %v1184_v9  ;;  %v845_v23 = vadd.f32 %v844_v19, %v814_v16  ;;  %v1169_v9 = vld [vmem:[%s1475_s16 + $0x28] sm:$0xff]  ;;  %v1294_v16 = vunpack.c.l.bf16 %v1320_v8  ;;  %v1291_v19 = vunpack.c.h.bf16 %v1319_v13 }
  0x1c   : > { %v846_v25 = vadd.f32 %v845_v23, %v815_v18 }
  0x1d   : > { %1335 = vmatpush.bf16.msra.mxu2 %v1183_v15  ;;  %1336 = vmatpush.bf16.msra.mxu3 %v1183_v15 }
  0x1e   : > { %555 = vmatpush.bf16.msra.mxu0 %v1183_v15  ;;  %1334 = vmatpush.bf16.msra.mxu1 %v1183_v15  ;;  %v847_v29 = vadd.f32 %v846_v25, %v816_v22  ;;  %v834_v22 = vunpack.c.h.bf16 %v383_v12  ;;  %v835_v25 = vunpack.c.l.bf16 %v385_v20 }
  0x20   : > { %v848_v31 = vadd.f32 %v847_v29, %v817_v24  ;;  %v1290_v24 = vunpack.c.l.bf16 %v1319_v13  ;;  %v836_v29 = vunpack.c.h.bf16 %v385_v20 }
  0x21   : > { %1338 = vmatpush.bf16.msra.mxu2 %v1182_v21  ;;  %1339 = vmatpush.bf16.msra.mxu3 %v1182_v21 }
  0x22   : > { %556 = vmatpush.bf16.msra.mxu0 %v1182_v21  ;;  %1337 = vmatpush.bf16.msra.mxu1 %v1182_v21  ;;  %v849_v35 = vadd.f32 %v848_v31, %v818_v28  ;;  %v1318_v21 = vld [vmem:[%s1671_s4 + $0x20] sm:$0xff]   ;;  %v387_v28 = vld [vmem:[%s1475_s16 + $0x70] sm:$0xff]  }
  0x23   : > { %v1286_v31 = vunpack.c.l.bf16 %v1318_v21  ;;  %v838_v40 = vunpack.c.h.bf16 %v387_v28 }
  0x24   : > { %v850_v37 = vadd.f32 %v849_v35, %v819_v30  ;;  %v837_v35 = vunpack.c.l.bf16 %v387_v28 }
  0x25   : > { %1341 = vmatpush.bf16.msra.mxu2 %v1181_v27  ;;  %1342 = vmatpush.bf16.msra.mxu3 %v1181_v27 }
  0x26   : > { %557 = vmatpush.bf16.msra.mxu0 %v1181_v27  ;;  %1340 = vmatpush.bf16.msra.mxu1 %v1181_v27  ;;  %v851_v43 = vadd.f32 %v850_v37, %v820_v34  ;;  %v1287_v27 = vunpack.c.h.bf16 %v1318_v21  ;;  %v1397_v34 = vmov 0.0   ;;  %v1166_v37 = vld [vmem:[%s1475_s16 + $0x10] sm:$0xff] }
  0x27   : > { %358 = vst [vmem:[#allocation2] sm:$0x1] %v1397_v34 }
  0x28   : > { %v852_v45 = vadd.f32 %v851_v43, %v821_v36 }
  0x29   : > { %1344 = vmatpush.bf16.msra.mxu2 %v1180_v33  ;;  %1345 = vmatpush.bf16.msra.mxu3 %v1180_v33 }
  0x2a   : > { %558 = vmatpush.bf16.msra.mxu0 %v1180_v33  ;;  %1343 = vmatpush.bf16.msra.mxu1 %v1180_v33  ;;  %v853_v49 = vadd.f32 %v852_v45, %v822_v42  ;;  %v1177_v33 = vld [vmem:[%s1475_s16 + $0x68] sm:$0xff] }
  0x2c   : > { %589 = vmatmul.bf16.vlgmr.msra.gmra.mxu2 %v1170_v38  ;;  %614 = vmatmul.bf16.vlgmr.msra.gmra.mxu3 %v1175_v39  ;;  %v854_v51 = vadd.f32 %v853_v49, %v823_v44  ;;  %v389_v38 = vld [vmem:[%s1475_s16 + $0x78] sm:$0xff]   ;;  %v1316_v44 = vld [vmem:[%s1671_s4 + $0x10] sm:$0xff]  }
  0x2d   : > { %559 = vmatmul.bf16.vlgmr.msra.gmra.mxu0 %v1164_v41  ;;  %579 = vmatmul.bf16.vlgmr.msra.gmra.mxu1 %v1168_v46  ;;  %v1317_v39 = vld [vmem:[%s1671_s4 + $0x18] sm:$0xff]   ;;  %v839_v45 = vunpack.c.l.bf16 %v389_v38  ;;  %v1279_v47 = vunpack.c.h.bf16 %v1316_v44  ;;  %v840_v49 = vunpack.c.h.bf16 %v389_v38 }
  0x2e   : > { %v855_v54 = vadd.f32 %v854_v51, %v824_v48  ;;  %917 = vmatpush.msrb.mxu1 %v1299_v5  ;;  %v1283_v42 = vunpack.c.h.bf16 %v1317_v39  ;;  %v1282_v43 = vunpack.c.l.bf16 %v1317_v39  ;;  %v1315_v48 = vld [vmem:[%s1671_s4 + $0x8] sm:$0xff]   ;;  %v1278_v51 = vunpack.c.l.bf16 %v1316_v44  ;;  %v808_v3 = vld [vmem:[#allocation2] sm:$0x1] }
  0x30   : > { %v856_v56 = vadd.f32 %v855_v54, %v825_v50  ;;  %918 = vmatpush.msrb.mxu1 %v1298_v7  ;;  %v1269_v54 = vld [vmem:[%s1671_s4] sm:$0xff]   ;;  %v1179_v7 = vld [vmem:[%s1475_s16 + $0x78] sm:$0xff] }
  0x32   : > { %v857_v59 = vadd.f32 %v856_v56, %v826_v53  ;;  %919 = vmatpush.msrb.mxu1 %v1295_v11  ;;  %v1275_v53 = vunpack.c.h.bf16 %v1315_v48  ;;  %v1274_v56 = vunpack.c.l.bf16 %v1315_v48  ;;  %v1554_v11 = vld [vmem:[%s1669_s2] ss:$0 sm:$0xff] }
  0x34   : > { %v858_v61 = vadd.f32 %v857_v59, %v827_v55  ;;  %920 = vmatpush.msrb.mxu1 %v1294_v16 }
  0x36   : > { %v859_v2 = vadd.f32 %v858_v61, %v828_v58  ;;  %921 = vmatpush.msrb.mxu1 %v1291_v19  ;;  %v1271_v58 = vunpack.c.h.bf16 %v1269_v54  ;;  %v1173_v61 = vld [vmem:[%s1475_s16 + $0x48] sm:$0xff] }
  0x38   : > { %v860_v6 = vadd.f32 %v859_v2, %v829_v60  ;;  %922 = vmatpush.msrb.mxu1 %v1290_v24  ;;  %v1270_v60 = vunpack.c.l.bf16 %v1269_v54 }
  0x3a   : > { %v861_v15 = vadd.f32 %v860_v6, %v830_v4  ;;  %923 = vmatpush.msrb.mxu1 %v1287_v27  ;;  %v1174_v6 = vld [vmem:[%s1475_s16 + $0x50] sm:$0xff] }
  0x3c   : > { %594 = vmatmul.bf16.gmra.mxu2 %v1171_v62  ;;  %619 = vmatmul.bf16.gmra.mxu3 %v1176_v63  ;;  %v862_v18 = vadd.f32 %v861_v15, %v831_v10  ;;  %v1178_v62 = vld [vmem:[%s1475_s16 + $0x70] sm:$0xff] }
  0x3d   : > { %564 = vmatmul.bf16.gmra.mxu0 %v1165_v0  ;;  %584 = vmatmul.bf16.gmra.mxu1 %v1169_v9  ;;  %v1167_v0 = vld [vmem:[%s1475_s16 + $0x18] sm:$0xff] }
  0x3e   : > { %v863_v23 = vadd.f32 %v862_v18, %v832_v14  ;;  %924 = vmatpush.msrb.mxu1 %v1286_v31  ;;  %v1560_v14 = vld [vmem:[%s1670_s3] ss:$0 sm:$0xff] }
  0x40   : > { %v864_v26 = vadd.f32 %v863_v23, %v833_v17  ;;  %925 = vmatpush.msrb.mxu1 %v1283_v42 }
  0x42   : > { %v865_v30 = vadd.f32 %v864_v26, %v834_v22  ;;  %926 = vmatpush.msrb.mxu1 %v1282_v43 }
  0x44   : > { %v866_v36 = vadd.f32 %v865_v30, %v835_v25  ;;  %927 = vmatpush.msrb.mxu1 %v1279_v47 }
  0x46   : > { %v867_v41 = vadd.f32 %v866_v36, %v836_v29  ;;  %928 = vmatpush.msrb.mxu1 %v1278_v51 }
  0x48   : > { %v868_v46 = vadd.f32 %v867_v41, %v837_v35  ;;  %929 = vmatpush.msrb.mxu1 %v1275_v53 }
  0x4a   : > { %v869_v50 = vadd.f32 %v868_v46, %v838_v40  ;;  %930 = vmatpush.msrb.mxu1 %v1274_v56 }
  0x4c   : > { %599 = vmatmul.bf16.gmra.mxu2 %v1172_v32  ;;  %624 = vmatmul.bf16.gmra.mxu3 %v1177_v33  ;;  %v870_v52 = vadd.f32 %v869_v50, %v839_v45 }
  0x4d   : > { %569 = vmatmul.bf16.gmra.mxu0 %v1166_v37  ;;  %931 = vmatpush.msrb.mxu1 %v1271_v58 }
  0x4e   : > { %v871_v55 = vadd.f32 %v870_v52, %v840_v49 }
  0x4f   : > { %932 = vmatpush.msrb.mxu1 %v1270_v60 }
  0x50   : > { %v872_v57 = vrot.slane %v871_v55, 4 }
  0x52   : > { %v873_v59 = vadd.f32 %v872_v57, %v871_v55 }
  0x54   : > { %v874_v63 = vrot.slane %v873_v59, 2 }
  0x56   : > { %v875_v1 = vadd.f32 %v874_v63, %v873_v59 }
  0x58   : > { %v876_v2 = vrot.slane %v875_v1, 1 }
  0x5a   : > { %v877_v4 = vadd.f32 %v876_v2, %v875_v1 }
  0x5c   : > { %604 = vmatmul.bf16.gmra.mxu2 %v1173_v61  ;;  %629 = vmatmul.bf16.gmra.mxu3 %v1178_v62  ;;  %v878_v5 = vadd.f32 %v877_v4, %v808_v3 }
  0x5d   : > { %574 = vmatmul.bf16.gmra.mxu0 %v1167_v0 }
  0x5e   : > { %879 = vst [vmem:[#allocation2] sm:$0x1] %v878_v5 }
  0x65   : > { %v883_v8 = vld [vmem:[#allocation2] sm:$0x1] }
  0x66   : > { %v884_v9 = vmul.f32 0.00390625, %v883_v8 }
  0x68   : > { %933 = vmatmul.f32.vlgmr.msrb.gmra.mxu1 %v884_v9 }
  0x6c   : > { %609 = vmatmul.bf16.gmra.mxu2 %v1174_v6  ;;  %634 = vmatmul.bf16.gmra.mxu3 %v1179_v7 }
  0xaa   : > { %v560_v10 = vpop.f32.mrf.mxu0  ;;  %v580_v18 = vpop.f32.mrf.mxu1 }
  0xab   : > { %v644_v12 = vmul.f32 %v1554_v11, %v560_v10  ;;  %v652_v24 = vmul.f32 %v1554_v11, %v580_v18 }
  0xad   : > { %v680_v16 = vadd.f32 %v1560_v14, %v644_v12  ;;  %v688_v33 = vadd.f32 %v1560_v14, %v652_v24 }
  0xaf   : > { %v590_v13 = vpop.f32.mrf.mxu2  ;;  %v615_v15 = vpop.f32.mrf.mxu3  ;;  %v712_v22 = vmax.f32 %v680_v16, 0.0  ;;  %v720_v44 = vmax.f32 %v688_v33, 0.0 }
  0xb0   : > { %v656_v20 = vmul.f32 %v1554_v11, %v590_v13  ;;  %v666_v21 = vmul.f32 %v1554_v11, %v615_v15 }
  0xb2   : > { %v562_v17 = vpop.f32.mrf.mxu0  ;;  %v692_v28 = vadd.f32 %v1560_v14, %v656_v20  ;;  %v702_v29 = vadd.f32 %v1560_v14, %v666_v21  ;;  %v582_v37 = vpop.f32.mrf.mxu1 }
  0xb3   : > { %v645_v19 = vmul.f32 %v1554_v11, %v562_v17  ;;  %v653_v38 = vmul.f32 %v1554_v11, %v582_v37 }
  0xb4   : > { %v724_v39 = vmax.f32 %v692_v28, 0.0  ;;  %v734_v40 = vmax.f32 %v702_v29, 0.0 }
  0xb5   : > { %v681_v23 = vadd.f32 %v1560_v14, %v645_v19  ;;  %v689_v45 = vadd.f32 %v1560_v14, %v653_v38 }
  0xb7   : > { %v592_v25 = vpop.f32.mrf.mxu2  ;;  %v617_v26 = vpop.f32.mrf.mxu3  ;;  %v713_v27 = vmax.f32 %v681_v23, 0.0  ;;  %v721_v50 = vmax.f32 %v689_v45, 0.0 }
  0xb8   : > { %v657_v30 = vmul.f32 %v1554_v11, %v592_v25  ;;  %v667_v31 = vmul.f32 %v1554_v11, %v617_v26 }
  0xb9   : > { %v1191_v32 = vpack.c.bf16 %v713_v27, %v712_v22  ;;  %v1211_v52 = vpack.c.bf16 %v721_v50, %v720_v44 }
  0xba   : > { %v693_v34 = vadd.f32 %v1560_v14, %v657_v30  ;;  %v703_v35 = vadd.f32 %v1560_v14, %v667_v31  ;;  %v565_v36 = vpop.f32.mrf.mxu0  ;;  %v585_v54 = vpop.f32.mrf.mxu1 }
  0xbb   : > { %1192 = vst [vmem:[%s1578_s18] sm:$0xff] %v1191_v32   ;;  %v646_v43 = vmul.f32 %v1554_v11, %v565_v36  ;;  %v654_v60 = vmul.f32 %v1554_v11, %v585_v54 }
  0xbc   : > { %v725_v41 = vmax.f32 %v693_v34, 0.0  ;;  %v735_v42 = vmax.f32 %v703_v35, 0.0  ;;  %1303 = vst [vmem:[%s1578_s18 + $0x20] sm:$0xff] %v1211_v52  }
  0xbd   : > { %v682_v51 = vadd.f32 %v1560_v14, %v646_v43  ;;  %v690_v5 = vadd.f32 %v1560_v14, %v654_v60 }
  0xbe   : > { %v1221_v46 = vpack.c.bf16 %v725_v41, %v724_v39  ;;  %v1246_v47 = vpack.c.bf16 %v735_v42, %v734_v40 }
  0xbf   : > { %v595_v48 = vpop.f32.mrf.mxu2  ;;  %v620_v49 = vpop.f32.mrf.mxu3  ;;  %v714_v58 = vmax.f32 %v682_v51, 0.0  ;;  %v722_v18 = vmax.f32 %v690_v5, 0.0 }
  0xc0   : > { %1305 = vst [vmem:[%s1578_s18 + $0x30] sm:$0xff] %v1221_v46   ;;  %v658_v56 = vmul.f32 %v1554_v11, %v595_v48  ;;  %v668_v57 = vmul.f32 %v1554_v11, %v620_v49 }
  0xc1   : > { %1310 = vst [vmem:[%s1578_s18 + $0x58] sm:$0xff] %v1246_v47  }
  0xc2   : > { %v567_v53 = vpop.f32.mrf.mxu0  ;;  %v694_v0 = vadd.f32 %v1560_v14, %v658_v56  ;;  %v704_v1 = vadd.f32 %v1560_v14, %v668_v57  ;;  %v587_v9 = vpop.f32.mrf.mxu1 }
  0xc3   : > { %v647_v55 = vmul.f32 %v1554_v11, %v567_v53  ;;  %v655_v10 = vmul.f32 %v1554_v11, %v587_v9 }
  0xc4   : > { %v726_v12 = vmax.f32 %v694_v0, 0.0  ;;  %v736_v13 = vmax.f32 %v704_v1, 0.0 }
  0xc5   : > { %v683_v59 = vadd.f32 %v1560_v14, %v647_v55  ;;  %v691_v19 = vadd.f32 %v1560_v14, %v655_v10 }
  0xc7   : > { %v597_v61 = vpop.f32.mrf.mxu2  ;;  %v622_v62 = vpop.f32.mrf.mxu3  ;;  %v715_v63 = vmax.f32 %v683_v59, 0.0  ;;  %v723_v24 = vmax.f32 %v691_v19, 0.0 }
  0xc8   : > { %v659_v2 = vmul.f32 %v1554_v11, %v597_v61  ;;  %v669_v3 = vmul.f32 %v1554_v11, %v622_v62 }
  0xc9   : > { %v1196_v4 = vpack.c.bf16 %v715_v63, %v714_v58  ;;  %v1216_v26 = vpack.c.bf16 %v723_v24, %v722_v18 }
  0xca   : > { %v695_v6 = vadd.f32 %v1560_v14, %v659_v2  ;;  %v705_v7 = vadd.f32 %v1560_v14, %v669_v3  ;;  %v570_v8 = vpop.f32.mrf.mxu0  ;;  %v937_v3 = vld [vmem:[%s1672_s5] sm:$0x1] }
  0xcb   : > { %1300 = vst [vmem:[%s1578_s18 + $0x8] sm:$0xff] %v1196_v4   ;;  %v648_v17 = vmul.f32 %v1554_v11, %v570_v8  ;;  %v939_v8 = vld [vmem:[%s1673_s6] sm:$0x1] }
  0xcc   : > { %v727_v15 = vmax.f32 %v695_v6, 0.0  ;;  %v737_v16 = vmax.f32 %v705_v7, 0.0  ;;  %1304 = vst [vmem:[%s1578_s18 + $0x28] sm:$0xff] %v1216_v26  }
  0xcd   : > { %v684_v25 = vadd.f32 %v1560_v14, %v648_v17 }
  0xce   : > { %v1226_v20 = vpack.c.bf16 %v727_v15, %v726_v12  ;;  %v1251_v21 = vpack.c.bf16 %v737_v16, %v736_v13 }
  0xcf   : > { %v600_v22 = vpop.f32.mrf.mxu2  ;;  %v625_v23 = vpop.f32.mrf.mxu3  ;;  %v716_v31 = vmax.f32 %v684_v25, 0.0 }
  0xd0   : > { %1306 = vst [vmem:[%s1578_s18 + $0x38] sm:$0xff] %v1226_v20   ;;  %v660_v29 = vmul.f32 %v1554_v11, %v600_v22  ;;  %v670_v30 = vmul.f32 %v1554_v11, %v625_v23 }
  0xd1   : > { %1311 = vst [vmem:[%s1578_s18 + $0x60] sm:$0xff] %v1251_v21  }
  0xd2   : > { %v572_v27 = vpop.f32.mrf.mxu0  ;;  %v696_v36 = vadd.f32 %v1560_v14, %v660_v29  ;;  %v706_v37 = vadd.f32 %v1560_v14, %v670_v30 }
  0xd3   : > { %v649_v28 = vmul.f32 %v1554_v11, %v572_v27 }
  0xd4   : > { %v728_v44 = vmax.f32 %v696_v36, 0.0  ;;  %v738_v45 = vmax.f32 %v706_v37, 0.0 }
  0xd5   : > { %v685_v32 = vadd.f32 %v1560_v14, %v649_v28 }
  0xd7   : > { %v602_v33 = vpop.f32.mrf.mxu2  ;;  %v627_v34 = vpop.f32.mrf.mxu3  ;;  %v717_v35 = vmax.f32 %v685_v32, 0.0 }
  0xd8   : > { %v661_v38 = vmul.f32 %v1554_v11, %v602_v33  ;;  %v671_v39 = vmul.f32 %v1554_v11, %v627_v34 }
  0xd9   : > { %v1201_v40 = vpack.c.bf16 %v717_v35, %v716_v31 }
  0xda   : > { %v697_v41 = vadd.f32 %v1560_v14, %v661_v38  ;;  %v707_v42 = vadd.f32 %v1560_v14, %v671_v39  ;;  %v575_v43 = vpop.f32.mrf.mxu0 }
  0xdb   : > { %1301 = vst [vmem:[%s1578_s18 + $0x10] sm:$0xff] %v1201_v40   ;;  %v650_v48 = vmul.f32 %v1554_v11, %v575_v43 }
  0xdc   : > { %v729_v46 = vmax.f32 %v697_v41, 0.0  ;;  %v739_v47 = vmax.f32 %v707_v42, 0.0 }
  0xdd   : > { %v686_v53 = vadd.f32 %v1560_v14, %v650_v48 }
  0xde   : > { %v1231_v49 = vpack.c.bf16 %v729_v46, %v728_v44  ;;  %v1256_v50 = vpack.c.bf16 %v739_v47, %v738_v45 }
  0xdf   : > { %v605_v51 = vpop.f32.mrf.mxu2  ;;  %v630_v52 = vpop.f32.mrf.mxu3  ;;  %v718_v58 = vmax.f32 %v686_v53, 0.0 }
  0xe0   : > { %1307 = vst [vmem:[%s1578_s18 + $0x40] sm:$0xff] %v1231_v49   ;;  %v662_v56 = vmul.f32 %v1554_v11, %v605_v51  ;;  %v672_v57 = vmul.f32 %v1554_v11, %v630_v52 }
  0xe1   : > { %1312 = vst [vmem:[%s1578_s18 + $0x68] sm:$0xff] %v1256_v50  }
  0xe2   : > { %v577_v54 = vpop.f32.mrf.mxu0  ;;  %v698_v63 = vadd.f32 %v1560_v14, %v662_v56  ;;  %v708_v0 = vadd.f32 %v1560_v14, %v672_v57 }
  0xe3   : > { %v651_v55 = vmul.f32 %v1554_v11, %v577_v54 }
  0xe4   : > { %v730_v10 = vmax.f32 %v698_v63, 0.0  ;;  %v740_v12 = vmax.f32 %v708_v0, 0.0 }
  0xe5   : > { %v687_v59 = vadd.f32 %v1560_v14, %v651_v55  ;;  %v934_v7 = vpop.f32.mrf.mxu1 }
  0xe6   : > { %v938_v9 = vmul.f32 %v937_v3, %v934_v7 }
  0xe7   : > { %v607_v60 = vpop.f32.mrf.mxu2  ;;  %v632_v61 = vpop.f32.mrf.mxu3  ;;  %v719_v62 = vmax.f32 %v687_v59, 0.0 }
  0xe8   : > { %v663_v1 = vmul.f32 %v1554_v11, %v607_v60  ;;  %v673_v2 = vmul.f32 %v1554_v11, %v632_v61  ;;  %v940_v16 = vadd.f32 %v939_v8, %v938_v9 }
  0xe9   : > { %v1206_v4 = vpack.c.bf16 %v719_v62, %v718_v58 }
  0xea   : > { %v699_v5 = vadd.f32 %v1560_v14, %v663_v1  ;;  %v709_v6 = vadd.f32 %v1560_v14, %v673_v2  ;;  %v941_v21 = vmax.f32 %v940_v16, 0.0 }
  0xeb   : > { %1302 = vst [vmem:[%s1578_s18 + $0x18] sm:$0xff] %v1206_v4  }
  0xec   : > { %v731_v13 = vmax.f32 %v699_v5, 0.0  ;;  %v741_v15 = vmax.f32 %v709_v6, 0.0  ;;  %942 = vst [vmem:[%s353_s24] sm:$0x1] %v941_v21 }
  0xee   : > { %v1236_v17 = vpack.c.bf16 %v731_v13, %v730_v10  ;;  %v1261_v18 = vpack.c.bf16 %v741_v15, %v740_v12 }
  0xef   : > { %v610_v19 = vpop.f32.mrf.mxu2  ;;  %v635_v20 = vpop.f32.mrf.mxu3 }
  0xf0   : > { %1308 = vst [vmem:[%s1578_s18 + $0x48] sm:$0xff] %v1236_v17   ;;  %v664_v22 = vmul.f32 %v1554_v11, %v610_v19  ;;  %v674_v23 = vmul.f32 %v1554_v11, %v635_v20 }
  0xf1   : > { %1313 = vst [vmem:[%s1578_s18 + $0x70] sm:$0xff] %v1261_v18  }
  0xf2   : > { %v700_v26 = vadd.f32 %v1560_v14, %v664_v22  ;;  %v710_v27 = vadd.f32 %v1560_v14, %v674_v23 }
  0xf4   : > { %v732_v32 = vmax.f32 %v700_v26, 0.0  ;;  %v742_v33 = vmax.f32 %v710_v27, 0.0 }
  0xf7   : > { %v612_v24 = vpop.f32.mrf.mxu2  ;;  %v637_v25 = vpop.f32.mrf.mxu3 }
  0xf8   : > { %v665_v28 = vmul.f32 %v1554_v11, %v612_v24  ;;  %v675_v29 = vmul.f32 %v1554_v11, %v637_v25 }
  0xfa   : > { %v701_v30 = vadd.f32 %v1560_v14, %v665_v28  ;;  %v711_v31 = vadd.f32 %v1560_v14, %v675_v29 }
  0xfc   : > { %v733_v34 = vmax.f32 %v701_v30, 0.0  ;;  %v743_v35 = vmax.f32 %v711_v31, 0.0 }
  0xfe   : > { %v1241_v36 = vpack.c.bf16 %v733_v34, %v732_v32  ;;  %v1266_v37 = vpack.c.bf16 %v743_v35, %v742_v33 }
 0x100   : > { %1309 = vst [vmem:[%s1578_s18 + $0x50] sm:$0xff] %v1241_v36  }
 0x101   : > { %1314 = vst [vmem:[%s1578_s18 + $0x78] sm:$0xff] %v1266_v37  }
 0x102 PF: > { %s19_s29 = sadd.s32 1, %s1395_s29   ;;  %s1676_s27 = smov %s1391_s28 }
 0x103   : > { %p16_p5 = scmp.ge.s32.totalorder %s19_s29, 4   ;;  %s1677_s28 = smov %s1679_s30 }
 0x105   :  { %18 = sbr.rel (!%p16_p5) target bundleno = 2 (0x2), region = 98 }

// kernel: apn_forward.25
= control target key start
LH: loop header
LB: loop body
LE: loop exit
PB: predicated region body
PF: predicated region fallthrough
CT: control target
= control target key end

     0   :  { %s1070_s15 = smov 0   ;;  %s1072_s16 = smov 0   ;;  %s1259_s0 = inlined_call_operand.vmem [shape: bf16[16,8], index: 0, kind: input, shape index: {}]   ;;  %s1260_s1 = inlined_call_operand.vmem [shape: bf16[2,16,8,128], index: 1, kind: input, shape index: {}]   ;;  %s1261_s2 = inlined_call_operand.vmem [shape: bf16[2,16,16,128], index: 2, kind: input, shape index: {}]   ;;  %s1262_s3 = inlined_call_operand.vmem [shape: f32[2,1,128], index: 3, kind: input, shape index: {}]   ;;  %s1263_s4 = inlined_call_operand.vmem [shape: f32[2,16,16,128], index: 4, kind: output, shape index: {}]  }
   0x1   :  { %s1074_s17 = smov 0  }
   0x2 LB: > { %s26_s18 = sadd.s32 1, %s1039_s16  ;;  %p884_p0 = scmp.ge.s32.totalorder %s1043_s17, 1  ;;  %s1043_s17 = sphi %s1074_s17, %s14_s17   ;;  %s1039_s16 = sphi %s1072_s16, %s1265_s16   ;;  %s1035_s15 = sphi %s1070_s15, %s1264_s15  }
   0x3   : > { %p28_p1 = scmp.ge.s32.totalorder %s26_s18, 2  ;;  %p209_p2 = scmp.lt.s32.totalorder %s1043_s17, 3 }
   0x5   : > { %s1267_s18 = smov (%p28_p1, %s26_s18), 0  ;;  %p210_p3 = pnand %p884_p0, %p209_p2 }
   0x6   : > { %p258_p4 = scmp.lt.s32.totalorder (!%p210_p3), %s1035_s15, 1 }
   0x7   : > { %213 = sbr.rel (%p210_p3) target bundleno = 215 (0xd7), region = 36 }
   0xc   : > { %s1269_s15 = smov (!%p258_p4, %s1035_s15), 1  ;;  %vm320_vm0 = vcmask 1043456   ;;  %v916_v7 = vld [vmem:[%s1259_s0] sm:$0xff]  ;;  %vm316_vm1 = vcmask 64512  }
   0xd   : > { %s913_s19 = sshll.u32 %s1269_s15, 6  ;;  %s280_s27 = scalar_lea.vmem %s1262_s3, %s1269_s15 }
   0xe   : > { %s1094_s22 = scalar_lea.vmem %s1260_s1, %s913_s19  ;;  %s914_s28 = sshll.u32 %s1269_s15, 7  ;;  %v1165_v37 = vld [vmem:[%s280_s27] ss:$0 sm:$0xff] }
   0xf   : > { %v293_v0 = vld [vmem:[%s1094_s22] sm:$0xf]  ;;  %v294_v1 = vld [vmem:[%s1094_s22 + $0x4] sm:$0xf]  ;;  %v295_v2 = vld [vmem:[%s1094_s22 + $0x8] sm:$0xf]  ;;  %s1155_s5 = scalar_lea.vmem %s1261_s2, %s914_s28 }
  0x10   : > { %v322_v3 = vsel %vm320_vm0, %v293_v0, 0  ;;  %v339_v4 = vsel %vm320_vm0, %v294_v1, 0  ;;  %v356_v5 = vsel %vm320_vm0, %v295_v2, 0  ;;  %v296_v6 = vld [vmem:[%s1094_s22 + $0xc] sm:$0xf]  ;;  %v918_v33 = vld [vmem:[%s1155_s5] sm:$0xff]  }
  0x11   : > { %331 = vmatpush.bf16.msra.mxu0 %v322_v3  ;;  %348 = vmatpush.bf16.msra.mxu1 %v339_v4  ;;  %v373_v8 = vsel %vm320_vm0, %v296_v6, 0  ;;  %v299_v9 = vld [vmem:[%s1094_s22 + $0x18] sm:$0xf]  ;;  %v300_v10 = vld [vmem:[%s1094_s22 + $0x1c] sm:$0xf]  ;;  %v981_v34 = vld [vmem:[%s1155_s5 + $0x8] sm:$0xff]   ;;  %v919_v35 = vunpack.c.l.bf16 %v918_v33  ;;  %v920_v48 = vunpack.c.h.bf16 %v918_v33 }
  0x12   : > { %365 = vmatpush.bf16.msra.mxu2 %v356_v5  ;;  %382 = vmatpush.bf16.msra.mxu3 %v373_v8  ;;  %v424_v11 = vsel %vm320_vm0, %v299_v9, 0  ;;  %v441_v12 = vsel %vm320_vm0, %v300_v10, 0  ;;  %v297_v13 = vld [vmem:[%s1094_s22 + $0x10] sm:$0xf]  ;;  %v298_v14 = vld [vmem:[%s1094_s22 + $0x14] sm:$0xf]  ;;  %v923_v36 = vunpack.c.l.bf16 %v981_v34  ;;  %v924_v49 = vunpack.c.h.bf16 %v981_v34 }
  0x13   : > { %v390_v15 = vsel %vm320_vm0, %v297_v13, 0  ;;  %v407_v16 = vsel %vm320_vm0, %v298_v14, 0  ;;  %v303_v17 = vld [vmem:[%s1094_s22 + $0x28] sm:$0xf]  ;;  %v304_v18 = vld [vmem:[%s1094_s22 + $0x2c] sm:$0xf] }
  0x14   : > { %895 = vmatmul.msk.bf16.vlgmr.msra.gmra.mxu0 %vm316_vm1, %v916_v7  ;;  %896 = vmatmul.msk.bf16.vlgmr.msra.gmra.mxu1 %vm316_vm1, %v916_v7  ;;  %v492_v19 = vsel %vm320_vm0, %v303_v17, 0  ;;  %v509_v20 = vsel %vm320_vm0, %v304_v18, 0  ;;  %v301_v21 = vld [vmem:[%s1094_s22 + $0x20] sm:$0xf]  ;;  %v302_v22 = vld [vmem:[%s1094_s22 + $0x24] sm:$0xf] }
  0x15   : > { %897 = vmatmul.msk.bf16.vlgmr.msra.gmra.mxu2 %vm316_vm1, %v916_v7  ;;  %898 = vmatmul.msk.bf16.vlgmr.msra.gmra.mxu3 %vm316_vm1, %v916_v7  ;;  %v458_v23 = vsel %vm320_vm0, %v301_v21, 0  ;;  %v475_v24 = vsel %vm320_vm0, %v302_v22, 0  ;;  %v307_v25 = vld [vmem:[%s1094_s22 + $0x38] sm:$0xf]  ;;  %v308_v26 = vld [vmem:[%s1094_s22 + $0x3c] sm:$0xf] }
  0x16   : > { %433 = vmatpush.bf16.msrb.mxu2 %v424_v11  ;;  %450 = vmatpush.bf16.msrb.mxu3 %v441_v12  ;;  %v305_v27 = vld [vmem:[%s1094_s22 + $0x30] sm:$0xf]  ;;  %v306_v28 = vld [vmem:[%s1094_s22 + $0x34] sm:$0xf]  ;;  %v560_v29 = vsel %vm320_vm0, %v307_v25, 0  ;;  %v577_v30 = vsel %vm320_vm0, %v308_v26, 0 }
  0x17   : > { %399 = vmatpush.bf16.msrb.mxu0 %v390_v15  ;;  %416 = vmatpush.bf16.msrb.mxu1 %v407_v16  ;;  %v526_v31 = vsel %vm320_vm0, %v305_v27, 0  ;;  %v543_v32 = vsel %vm320_vm0, %v306_v28, 0  ;;  %s915_s6 = sshll.u32 %s1269_s15, 8  ;;  %v982_v42 = vld [vmem:[%s1155_s5 + $0x10] sm:$0xff]   ;;  %v983_v43 = vld [vmem:[%s1155_s5 + $0x18] sm:$0xff]   ;;  %v984_v60 = vld [vmem:[%s1155_s5 + $0x20] sm:$0xff]  }
  0x18   : > { %s1172_s11 = scalar_lea.vmem %s1263_s4, %s915_s6  ;;  %v927_v46 = vunpack.c.l.bf16 %v982_v42  ;;  %v931_v47 = vunpack.c.l.bf16 %v983_v43  ;;  %v985_v61 = vld [vmem:[%s1155_s5 + $0x28] sm:$0xff]   ;;  %v928_v0 = vunpack.c.h.bf16 %v982_v42  ;;  %v932_v1 = vunpack.c.h.bf16 %v983_v43  ;;  %v986_v12 = vld [vmem:[%s1155_s5 + $0x30] sm:$0xff]   ;;  %v987_v13 = vld [vmem:[%s1155_s5 + $0x38] sm:$0xff]  }
  0x19   : > { %v935_v2 = vunpack.c.l.bf16 %v984_v60  ;;  %v939_v3 = vunpack.c.l.bf16 %v985_v61  ;;  %v943_v18 = vunpack.c.l.bf16 %v986_v12  ;;  %v940_v21 = vunpack.c.h.bf16 %v985_v61  ;;  %v989_v33 = vld [vmem:[%s1155_s5 + $0x48] sm:$0xff]  }
  0x1a   : > { %501 = vmatpush.bf16.msra.mxu2 %v492_v19  ;;  %518 = vmatpush.bf16.msra.mxu3 %v509_v20  ;;  %v947_v19 = vunpack.c.l.bf16 %v987_v13  ;;  %v936_v20 = vunpack.c.h.bf16 %v984_v60 }
  0x1b   : > { %467 = vmatpush.bf16.msra.mxu0 %v458_v23  ;;  %484 = vmatpush.bf16.msra.mxu1 %v475_v24 }
  0x24   : > { %899 = vmatmul.msk.bf16.vlgmr.msrb.gmra.mxu0 %vm316_vm1, %v916_v7  ;;  %900 = vmatmul.msk.bf16.vlgmr.msrb.gmra.mxu1 %vm316_vm1, %v916_v7 }
  0x25   : > { %901 = vmatmul.msk.bf16.vlgmr.msrb.gmra.mxu2 %vm316_vm1, %v916_v7  ;;  %902 = vmatmul.msk.bf16.vlgmr.msrb.gmra.mxu3 %vm316_vm1, %v916_v7 }
  0x26   : > { %569 = vmatpush.bf16.msrb.mxu2 %v560_v29  ;;  %586 = vmatpush.bf16.msrb.mxu3 %v577_v30 }
  0x27   : > { %535 = vmatpush.bf16.msrb.mxu0 %v526_v31  ;;  %552 = vmatpush.bf16.msrb.mxu1 %v543_v32  ;;  %v988_v32 = vld [vmem:[%s1155_s5 + $0x40] sm:$0xff]  }
  0x34   : > { %903 = vmatmul.msk.bf16.vlgmr.msra.gmra.mxu0 %vm316_vm1, %v916_v7  ;;  %904 = vmatmul.msk.bf16.vlgmr.msra.gmra.mxu1 %vm316_vm1, %v916_v7 }
  0x35   : > { %905 = vmatmul.msk.bf16.vlgmr.msra.gmra.mxu2 %vm316_vm1, %v916_v7  ;;  %906 = vmatmul.msk.bf16.vlgmr.msra.gmra.mxu3 %vm316_vm1, %v916_v7 }
  0x44   : > { %907 = vmatmul.msk.bf16.vlgmr.msrb.gmra.mxu0 %vm316_vm1, %v916_v7  ;;  %908 = vmatmul.msk.bf16.vlgmr.msrb.gmra.mxu1 %vm316_vm1, %v916_v7 }
  0x45   : > { %909 = vmatmul.msk.bf16.vlgmr.msrb.gmra.mxu2 %vm316_vm1, %v916_v7  ;;  %910 = vmatmul.msk.bf16.vlgmr.msrb.gmra.mxu3 %vm316_vm1, %v916_v7 }
  0x91   : > { %v333_v38 = vpop.f32.mrf.mxu0  ;;  %v350_v39 = vpop.f32.mrf.mxu1 }
  0x92   : > { %v657_v40 = vmul.f32 %v919_v35, %v333_v38  ;;  %v659_v41 = vmul.f32 %v923_v36, %v350_v39  ;;  %v944_v36 = vunpack.c.h.bf16 %v986_v12  ;;  %v948_v38 = vunpack.c.h.bf16 %v987_v13 }
  0x93   : > { %v951_v39 = vunpack.c.l.bf16 %v988_v32 }
  0x94   : > { %v693_v44 = vadd.f32 %v1165_v37, %v657_v40  ;;  %v695_v45 = vadd.f32 %v1165_v37, %v659_v41  ;;  %v955_v40 = vunpack.c.l.bf16 %v989_v33 }
  0x96   : > { %725 = vst [vmem:[%s1172_s11] sm:$0xff] %v693_v44 }
  0x97   : > { %727 = vst [vmem:[%s1172_s11 + $0x10] sm:$0xff] %v695_v45 }
  0x98   : > { %v367_v50 = vpop.f32.mrf.mxu2  ;;  %v384_v51 = vpop.f32.mrf.mxu3 }
  0x99   : > { %v661_v52 = vmul.f32 %v927_v46, %v367_v50  ;;  %v663_v53 = vmul.f32 %v931_v47, %v384_v51  ;;  %v335_v54 = vpop.f32.mrf.mxu0  ;;  %v352_v55 = vpop.f32.mrf.mxu1  ;;  %v991_v50 = vld [vmem:[%s1155_s5 + $0x58] sm:$0xff]  }
  0x9a   : > { %v658_v56 = vmul.f32 %v920_v48, %v335_v54  ;;  %v660_v57 = vmul.f32 %v924_v49, %v352_v55  ;;  %v990_v49 = vld [vmem:[%s1155_s5 + $0x50] sm:$0xff]  }
  0x9b   : > { %v697_v58 = vadd.f32 %v1165_v37, %v661_v52  ;;  %v699_v59 = vadd.f32 %v1165_v37, %v663_v53  ;;  %v959_v55 = vunpack.c.l.bf16 %v990_v49 }
  0x9c   : > { %v694_v62 = vadd.f32 %v1165_v37, %v658_v56  ;;  %v696_v63 = vadd.f32 %v1165_v37, %v660_v57  ;;  %v963_v56 = vunpack.c.l.bf16 %v991_v50  ;;  %v952_v57 = vunpack.c.h.bf16 %v988_v32 }
  0x9d   : > { %729 = vst [vmem:[%s1172_s11 + $0x20] sm:$0xff] %v697_v58  ;;  %v956_v58 = vunpack.c.h.bf16 %v989_v33 }
  0x9e   : > { %731 = vst [vmem:[%s1172_s11 + $0x30] sm:$0xff] %v699_v59 }
  0x9f   : > { %726 = vst [vmem:[%s1172_s11 + $0x8] sm:$0xff] %v694_v62 }
  0xa0   : > { %728 = vst [vmem:[%s1172_s11 + $0x18] sm:$0xff] %v696_v63  ;;  %v369_v4 = vpop.f32.mrf.mxu2  ;;  %v386_v5 = vpop.f32.mrf.mxu3 }
  0xa1   : > { %v662_v6 = vmul.f32 %v928_v0, %v369_v4  ;;  %v664_v7 = vmul.f32 %v932_v1, %v386_v5  ;;  %v401_v8 = vpop.f32.mrf.mxu0  ;;  %v418_v9 = vpop.f32.mrf.mxu1  ;;  %v992_v5 = vld [vmem:[%s1155_s5 + $0x60] sm:$0xff]  }
  0xa2   : > { %v665_v10 = vmul.f32 %v935_v2, %v401_v8  ;;  %v667_v11 = vmul.f32 %v939_v3, %v418_v9  ;;  %v960_v9 = vunpack.c.h.bf16 %v990_v49 }
  0xa3   : > { %v698_v14 = vadd.f32 %v1165_v37, %v662_v6  ;;  %v700_v15 = vadd.f32 %v1165_v37, %v664_v7  ;;  %v993_v6 = vld [vmem:[%s1155_s5 + $0x68] sm:$0xff]  }
  0xa4   : > { %v701_v16 = vadd.f32 %v1165_v37, %v665_v10  ;;  %v703_v17 = vadd.f32 %v1165_v37, %v667_v11  ;;  %v964_v10 = vunpack.c.h.bf16 %v991_v50  ;;  %v967_v11 = vunpack.c.l.bf16 %v992_v5 }
  0xa5   : > { %730 = vst [vmem:[%s1172_s11 + $0x28] sm:$0xff] %v698_v14  ;;  %v971_v12 = vunpack.c.l.bf16 %v993_v6 }
  0xa6   : > { %732 = vst [vmem:[%s1172_s11 + $0x38] sm:$0xff] %v700_v15 }
  0xa7   : > { %733 = vst [vmem:[%s1172_s11 + $0x40] sm:$0xff] %v701_v16 }
  0xa8   : > { %735 = vst [vmem:[%s1172_s11 + $0x50] sm:$0xff] %v703_v17  ;;  %v435_v22 = vpop.f32.mrf.mxu2  ;;  %v452_v23 = vpop.f32.mrf.mxu3 }
  0xa9   : > { %v669_v24 = vmul.f32 %v943_v18, %v435_v22  ;;  %v671_v25 = vmul.f32 %v947_v19, %v452_v23  ;;  %v403_v26 = vpop.f32.mrf.mxu0  ;;  %v420_v27 = vpop.f32.mrf.mxu1  ;;  %v995_v22 = vld [vmem:[%s1155_s5 + $0x78] sm:$0xff]  }
  0xaa   : > { %v666_v28 = vmul.f32 %v936_v20, %v403_v26  ;;  %v668_v29 = vmul.f32 %v940_v21, %v420_v27  ;;  %v994_v21 = vld [vmem:[%s1155_s5 + $0x70] sm:$0xff]  }
  0xab   : > { %v705_v30 = vadd.f32 %v1165_v37, %v669_v24  ;;  %v707_v31 = vadd.f32 %v1165_v37, %v671_v25  ;;  %v975_v27 = vunpack.c.l.bf16 %v994_v21 }
  0xac   : > { %v702_v34 = vadd.f32 %v1165_v37, %v666_v28  ;;  %v704_v35 = vadd.f32 %v1165_v37, %v668_v29  ;;  %v979_v28 = vunpack.c.l.bf16 %v995_v22  ;;  %v968_v29 = vunpack.c.h.bf16 %v992_v5 }
  0xad   : > { %737 = vst [vmem:[%s1172_s11 + $0x60] sm:$0xff] %v705_v30  ;;  %v972_v30 = vunpack.c.h.bf16 %v993_v6 }
  0xae   : > { %739 = vst [vmem:[%s1172_s11 + $0x70] sm:$0xff] %v707_v31 }
  0xaf   : > { %734 = vst [vmem:[%s1172_s11 + $0x48] sm:$0xff] %v702_v34 }
  0xb0   : > { %736 = vst [vmem:[%s1172_s11 + $0x58] sm:$0xff] %v704_v35  ;;  %v437_v41 = vpop.f32.mrf.mxu2  ;;  %v454_v42 = vpop.f32.mrf.mxu3 }
  0xb1   : > { %v670_v43 = vmul.f32 %v944_v36, %v437_v41  ;;  %v672_v44 = vmul.f32 %v948_v38, %v454_v42  ;;  %v469_v45 = vpop.f32.mrf.mxu0  ;;  %v486_v46 = vpop.f32.mrf.mxu1 }
  0xb2   : > { %v673_v47 = vmul.f32 %v951_v39, %v469_v45  ;;  %v675_v48 = vmul.f32 %v955_v40, %v486_v46  ;;  %v980_v45 = vunpack.c.h.bf16 %v995_v22 }
  0xb3   : > { %v706_v51 = vadd.f32 %v1165_v37, %v670_v43  ;;  %v708_v52 = vadd.f32 %v1165_v37, %v672_v44  ;;  %v976_v44 = vunpack.c.h.bf16 %v994_v21 }
  0xb4   : > { %v709_v53 = vadd.f32 %v1165_v37, %v673_v47  ;;  %v711_v54 = vadd.f32 %v1165_v37, %v675_v48 }
  0xb5   : > { %738 = vst [vmem:[%s1172_s11 + $0x68] sm:$0xff] %v706_v51 }
  0xb6   : > { %740 = vst [vmem:[%s1172_s11 + $0x78] sm:$0xff] %v708_v52 }
  0xb7   : > { %741 = vst [vmem:[%s1172_s11 + $0x80] sm:$0xff] %v709_v53 }
  0xb8   : > { %743 = vst [vmem:[%s1172_s11 + $0x90] sm:$0xff] %v711_v54  ;;  %v503_v59 = vpop.f32.mrf.mxu2  ;;  %v520_v60 = vpop.f32.mrf.mxu3 }
  0xb9   : > { %v677_v61 = vmul.f32 %v959_v55, %v503_v59  ;;  %v679_v62 = vmul.f32 %v963_v56, %v520_v60  ;;  %v471_v63 = vpop.f32.mrf.mxu0  ;;  %v488_v0 = vpop.f32.mrf.mxu1 }
  0xba   : > { %v674_v1 = vmul.f32 %v952_v57, %v471_v63  ;;  %v676_v2 = vmul.f32 %v956_v58, %v488_v0 }
  0xbb   : > { %v713_v3 = vadd.f32 %v1165_v37, %v677_v61  ;;  %v715_v4 = vadd.f32 %v1165_v37, %v679_v62 }
  0xbc   : > { %v710_v7 = vadd.f32 %v1165_v37, %v674_v1  ;;  %v712_v8 = vadd.f32 %v1165_v37, %v676_v2 }
  0xbd   : > { %745 = vst [vmem:[%s1172_s11 + $0xa0] sm:$0xff] %v713_v3 }
  0xbe   : > { %747 = vst [vmem:[%s1172_s11 + $0xb0] sm:$0xff] %v715_v4 }
  0xbf   : > { %742 = vst [vmem:[%s1172_s11 + $0x88] sm:$0xff] %v710_v7 }
  0xc0   : > { %744 = vst [vmem:[%s1172_s11 + $0x98] sm:$0xff] %v712_v8  ;;  %v505_v13 = vpop.f32.mrf.mxu2  ;;  %v522_v14 = vpop.f32.mrf.mxu3 }
  0xc1   : > { %v678_v15 = vmul.f32 %v960_v9, %v505_v13  ;;  %v680_v16 = vmul.f32 %v964_v10, %v522_v14  ;;  %v537_v17 = vpop.f32.mrf.mxu0  ;;  %v554_v18 = vpop.f32.mrf.mxu1 }
  0xc2   : > { %v681_v19 = vmul.f32 %v967_v11, %v537_v17  ;;  %v683_v20 = vmul.f32 %v971_v12, %v554_v18 }
  0xc3   : > { %v714_v23 = vadd.f32 %v1165_v37, %v678_v15  ;;  %v716_v24 = vadd.f32 %v1165_v37, %v680_v16 }
  0xc4   : > { %v717_v25 = vadd.f32 %v1165_v37, %v681_v19  ;;  %v719_v26 = vadd.f32 %v1165_v37, %v683_v20 }
  0xc5   : > { %746 = vst [vmem:[%s1172_s11 + $0xa8] sm:$0xff] %v714_v23 }
  0xc6   : > { %748 = vst [vmem:[%s1172_s11 + $0xb8] sm:$0xff] %v716_v24 }
  0xc7   : > { %749 = vst [vmem:[%s1172_s11 + $0xc0] sm:$0xff] %v717_v25 }
  0xc8   : > { %751 = vst [vmem:[%s1172_s11 + $0xd0] sm:$0xff] %v719_v26  ;;  %v571_v31 = vpop.f32.mrf.mxu2  ;;  %v588_v32 = vpop.f32.mrf.mxu3 }
  0xc9   : > { %v685_v33 = vmul.f32 %v975_v27, %v571_v31  ;;  %v687_v34 = vmul.f32 %v979_v28, %v588_v32  ;;  %v539_v35 = vpop.f32.mrf.mxu0  ;;  %v556_v36 = vpop.f32.mrf.mxu1 }
  0xca   : > { %v682_v38 = vmul.f32 %v968_v29, %v539_v35  ;;  %v684_v39 = vmul.f32 %v972_v30, %v556_v36 }
  0xcb   : > { %v721_v40 = vadd.f32 %v1165_v37, %v685_v33  ;;  %v723_v41 = vadd.f32 %v1165_v37, %v687_v34 }
  0xcc   : > { %v718_v42 = vadd.f32 %v1165_v37, %v682_v38  ;;  %v720_v43 = vadd.f32 %v1165_v37, %v684_v39 }
  0xcd   : > { %753 = vst [vmem:[%s1172_s11 + $0xe0] sm:$0xff] %v721_v40 }
  0xce   : > { %755 = vst [vmem:[%s1172_s11 + $0xf0] sm:$0xff] %v723_v41 }
  0xcf   : > { %750 = vst [vmem:[%s1172_s11 + $0xc8] sm:$0xff] %v718_v42 }
  0xd0   : > { %752 = vst [vmem:[%s1172_s11 + $0xd8] sm:$0xff] %v720_v43  ;;  %v573_v46 = vpop.f32.mrf.mxu2  ;;  %v590_v47 = vpop.f32.mrf.mxu3 }
  0xd1   : > { %v686_v48 = vmul.f32 %v976_v44, %v573_v46  ;;  %v688_v49 = vmul.f32 %v980_v45, %v590_v47 }
  0xd3   : > { %v722_v50 = vadd.f32 %v1165_v37, %v686_v48  ;;  %v724_v51 = vadd.f32 %v1165_v37, %v688_v49 }
  0xd5   : > { %754 = vst [vmem:[%s1172_s11 + $0xe8] sm:$0xff] %v722_v50 }
  0xd6   : > { %756 = vst [vmem:[%s1172_s11 + $0xf8] sm:$0xff] %v724_v51 }
  0xd7 PF: > { %s14_s17 = sadd.s32 1, %s1043_s17   ;;  %s1264_s15 = smov %s1039_s16 }
  0xd8   : > { %p11_p5 = scmp.ge.s32.totalorder %s14_s17, 4   ;;  %s1265_s16 = smov %s1267_s18 }
  0xda   :  { %13 = sbr.rel (!%p11_p5) target bundleno = 2 (0x2), region = 72 }

</bundles_post_ra>
